<compile_context>
chip_gen: v7x
topology: tpu7x:2x2x1
jax: 0.10.0
libtpu: 0.0.40
codegen_flags: <defaults>
</compile_context>

<pallas_src>
import functools

import jax
import jax.numpy as jnp
import numpy as np
from jax.experimental import pallas as pl
from jax.experimental.pallas import tpu as pltpu

MXU_DTYPE = jnp.bfloat16   # MXU operands only; elementwise / stats math is f32


# ----------------------------------------------------------------------------
# Generation-dependent configuration
# ----------------------------------------------------------------------------
@functools.lru_cache(maxsize=None)
def _tpu_config():
    """VMEM limit / tile targets per TPU generation (conservative fallback)."""
    vmem = None
    try:
        info = pltpu.get_tpu_info()
        vmem = getattr(info, "vmem_capacity_bytes", None)
    except Exception:
        vmem = None
    if vmem is not None and vmem > 96 * 1024 * 1024:
        # v5e / v6e class (128 MiB VMEM): larger tiles, higher scoped limit.
        return {"vmem_limit": 80 * 1024 * 1024, "tco_cap": 512,
                "band_pixels": 1024}
    # v7x class (64 MiB VMEM per TensorCore) or unknown: stay conservative.
    return {"vmem_limit": 48 * 1024 * 1024, "tco_cap": 256,
            "band_pixels": 512}


def _compiler_params(semantics):
    return pltpu.CompilerParams(dimension_semantics=semantics,
                                vmem_limit_bytes=_tpu_config()["vmem_limit"])


def _pick_band_rows(H, W, target_pixels):
    """Largest divisor of H whose band (rows * W pixels) fits the target."""
    bh = max(1, min(H, max(1, target_pixels // max(W, 1))))
    while H % bh:
        bh -= 1
    return bh


def _cout_tile(cout, cap):
    """Largest divisor of cout that is a multiple of 128 and <= cap."""
    if cout <= cap:
        return cout
    best = None
    t = 128
    while t <= cap:
        if cout % t == 0:
            best = t
        t += 128
    # TODO(synk): pad Cout to the next 128 multiple instead of falling back to
    # an untiled weight block when no 128-multiple divisor exists.
    return best if best is not None else cout


# ----------------------------------------------------------------------------
# Pallas kernels
# ----------------------------------------------------------------------------
def _gn1_stats_shortcut_kernel(x_ref, ws_ref, bs_ref, sc_ref, st_ref):
    """Per-(batch, HW-tile): GN1 per-channel partial sums + 1x1 conv shortcut."""
    x = x_ref[0]                                                # (tile, Cin) f32
    st_ref[0, 0] = jnp.concatenate(
        [jnp.sum(x, axis=0, keepdims=True),
         jnp.sum(x * x, axis=0, keepdims=True)], axis=0)        # (2, Cin)
    sc = jnp.dot(x.astype(MXU_DTYPE), ws_ref[...],
                 preferred_element_type=jnp.float32) + bs_ref[...]
    sc_ref[0] = sc.astype(sc_ref.dtype)


def _silu_time_proj_kernel(t_ref, ws_ref, wsh_ref, bs_ref, bsh_ref,
                           os_ref, osh_ref):
    """temb projection: Linear(SiLU(temb)) split into (scale, shift) rows."""
    t = t_ref[0]                                                # (1, T) f32
    t = (t * jax.nn.sigmoid(t)).astype(MXU_DTYPE)
    os_ref[0] = (jnp.dot(t, ws_ref[...], preferred_element_type=jnp.float32)
                 + bs_ref[...]).astype(os_ref.dtype)
    osh_ref[0] = (jnp.dot(t, wsh_ref[...], preferred_element_type=jnp.float32)
                  + bsh_ref[...]).astype(osh_ref.dtype)


def _band_conv3x3(p_ref, w_ref, a_row, s_row, band, *, width, band_pix,
                  pad_pix, n_band):
    """Fused pointwise prologue (affine + SiLU) then 9-tap 3x3 conv on a band.

    p_ref[0, 0]: ((band_h+2)*W, Cin) bf16 raw H-zero-padded input band.
    a_row/s_row: (1, Cin) f32 folded GroupNorm (+ time emb) scale / shift.
    Returns the f32 (band_pix, TCO) accumulator (bias not yet added).
    """
    y = p_ref[0, 0].astype(jnp.float32) * a_row + s_row
    y = y * jax.nn.sigmoid(y)                                   # SiLU (f32)
    row = jax.lax.broadcasted_iota(jnp.int32, (pad_pix, 1), 0)
    # Re-zero the global top/bottom zero-pad rows (the affine made them != 0).
    pad_rows = jnp.logical_or(
        jnp.logical_and(band == 0, row < width),
        jnp.logical_and(band == n_band - 1, row >= band_pix + width))
    y = jnp.where(pad_rows, 0.0, y)
    # kx = 0 / 2 taps: XLU roll by +/-1 pixel + first/last-column zero mask.
    col = row % width
    y_l = jnp.where(col == 0, 0.0, pltpu.roll(y, 1, 0))
    y_r = jnp.where(col == width - 1, 0.0, pltpu.roll(y, pad_pix - 1, 0))
    planes = (y_l.astype(MXU_DTYPE), y.astype(MXU_DTYPE), y_r.astype(MXU_DTYPE))
    acc = None                    # chained accumulation (no VMEM scratch RMW)
    for ky in range(3):
        for kx in range(3):
            win = planes[kx][ky * width: ky * width + band_pix, :]
            d = jnp.dot(win, w_ref[3 * ky + kx],
                        preferred_element_type=jnp.float32)
            acc = d if acc is None else acc + d
    return acc


def _conv1_kernel(p_ref, w_ref, b_ref, a_ref, s_ref, c1_ref, st_ref, *,
                  width, band_pix, pad_pix, n_band):
    """GN1-normalize + SiLU + 3x3 conv1 + bias, emitting GN2 partial stats."""
    band = pl.program_id(2)
    acc = _band_conv3x3(p_ref, w_ref, a_ref[0], s_ref[0], band, width=width,
                        band_pix=band_pix, pad_pix=pad_pix, n_band=n_band)
    y = acc + b_ref[...]                                        # f32
    c1_ref[0] = y.astype(c1_ref.dtype)
    # GN2 per-channel partial sums from the f32 accumulator (free under MXU).
    st_ref[0, 0, 0] = jnp.concatenate(
        [jnp.sum(y, axis=0, keepdims=True),
         jnp.sum(y * y, axis=0, keepdims=True)], axis=0)        # (2, tco)


def _conv2_kernel(p_ref, w_ref, b_ref, a_ref, s_ref, res_ref, o_ref, *,
                  width, band_pix, pad_pix, n_band, inv_scale):
    """GN2-norm + time scale/shift + SiLU + 3x3 conv2 + residual + scaling."""
    band = pl.program_id(2)
    acc = _band_conv3x3(p_ref, w_ref, a_ref[0], s_ref[0], band, width=width,
                        band_pix=band_pix, pad_pix=pad_pix, n_band=n_band)
    out = (acc + b_ref[...] + res_ref[0].astype(jnp.float32)) * inv_scale
    o_ref[0] = out.astype(o_ref.dtype)


# ----------------------------------------------------------------------------
# Pallas wrappers
# ----------------------------------------------------------------------------
def gn1_stats_shortcut(x, ws, bs, band_pix):
    B, HW, Cin = x.shape
    Cout2 = ws.shape[-1]
    n_t = HW // band_pix
    return pl.pallas_call(
        _gn1_stats_shortcut_kernel,
        out_shape=(jax.ShapeDtypeStruct((B, HW, Cout2), MXU_DTYPE),
                   jax.ShapeDtypeStruct((B, n_t, 2, Cin), jnp.float32)),
        grid=(B, n_t),
        in_specs=[pl.BlockSpec((1, band_pix, Cin), lambda b, t: (b, t, 0)),
                  pl.BlockSpec((Cin, Cout2), lambda b, t: (0, 0)),
                  pl.BlockSpec((1, Cout2), lambda b, t: (0, 0))],
        out_specs=(pl.BlockSpec((1, band_pix, Cout2), lambda b, t: (b, t, 0)),
                   pl.BlockSpec((1, 1, 2, Cin), lambda b, t: (b, t, 0, 0))),
        compiler_params=_compiler_params(("parallel", "parallel")),
    )(x, ws, bs)


def silu_time_proj(temb, wt_s, wt_sh, bt_s, bt_sh):
    B, T = temb.shape
    Cout = wt_s.shape[-1]
    temb3 = temb.reshape(B, 1, T)
    return pl.pallas_call(
        _silu_time_proj_kernel,
        out_shape=(jax.ShapeDtypeStruct((B, 1, Cout), jnp.float32),
                   jax.ShapeDtypeStruct((B, 1, Cout), jnp.float32)),
        grid=(B,),
        in_specs=[pl.BlockSpec((1, 1, T), lambda b: (b, 0, 0)),
                  pl.BlockSpec((T, Cout), lambda b: (0, 0)),
                  pl.BlockSpec((T, Cout), lambda b: (0, 0)),
                  pl.BlockSpec((1, Cout), lambda b: (0, 0)),
                  pl.BlockSpec((1, Cout), lambda b: (0, 0))],
        out_specs=(pl.BlockSpec((1, 1, Cout), lambda b: (b, 0, 0)),
                   pl.BlockSpec((1, 1, Cout), lambda b: (b, 0, 0))),
        compiler_params=_compiler_params(("parallel",)),
    )(temb3, wt_s, wt_sh, bt_s, bt_sh)


def conv1_fused(bands, w9, bias, a_row, s_row, H, W, band_h, tco):
    B, n_band, pad_pix, Cin = bands.shape
    Cout = w9.shape[-1]
    band_pix = band_h * W
    HW = H * W
    nct = Cout // tco
    kern = functools.partial(_conv1_kernel, width=W, band_pix=band_pix,
                             pad_pix=pad_pix, n_band=n_band)
    # Cout-tile axis outermost: the (9, Cin, tco) weight block streams once.
    return pl.pallas_call(
        kern,
        out_shape=(jax.ShapeDtypeStruct((B, HW, Cout), MXU_DTYPE),
                   jax.ShapeDtypeStruct((B, n_band, nct, 2, tco), jnp.float32)),
        grid=(nct, B, n_band),
        in_specs=[
            pl.BlockSpec((1, 1, pad_pix, Cin), lambda c, b, t: (b, t, 0, 0)),
            pl.BlockSpec((9, Cin, tco), lambda c, b, t: (0, 0, c)),
            pl.BlockSpec((1, tco), lambda c, b, t: (0, c)),
            pl.BlockSpec((1, 1, Cin), lambda c, b, t: (b, 0, 0)),
            pl.BlockSpec((1, 1, Cin), lambda c, b, t: (b, 0, 0)),
        ],
        out_specs=(
            pl.BlockSpec((1, band_pix, tco), lambda c, b, t: (b, t, c)),
            pl.BlockSpec((1, 1, 1, 2, tco), lambda c, b, t: (b, t, c, 0, 0)),
        ),
        compiler_params=_compiler_params(("parallel", "parallel", "parallel")),
    )(bands, w9, bias, a_row, s_row)


def conv2_fused(bands, w9, bias, a_row, s_row, residual, H, W, band_h, tco,
                output_scale_factor):
    B, n_band, pad_pix, Cin = bands.shape
    Cout = w9.shape[-1]
    band_pix = band_h * W
    HW = H * W
    nct = Cout // tco
    kern = functools.partial(_conv2_kernel, width=W, band_pix=band_pix,
                             pad_pix=pad_pix, n_band=n_band,
                             inv_scale=1.0 / float(output_scale_factor))
    return pl.pallas_call(
        kern,
        out_shape=jax.ShapeDtypeStruct((B, HW, Cout), jnp.float32),
        grid=(nct, B, n_band),
        in_specs=[
            pl.BlockSpec((1, 1, pad_pix, Cin), lambda c, b, t: (b, t, 0, 0)),
            pl.BlockSpec((9, Cin, tco), lambda c, b, t: (0, 0, c)),
            pl.BlockSpec((1, tco), lambda c, b, t: (0, c)),
            pl.BlockSpec((1, 1, Cin), lambda c, b, t: (b, 0, 0)),
            pl.BlockSpec((1, 1, Cin), lambda c, b, t: (b, 0, 0)),
            pl.BlockSpec((1, band_pix, tco), lambda c, b, t: (b, t, c)),
        ],
        out_specs=pl.BlockSpec((1, band_pix, tco), lambda c, b, t: (b, t, c)),
        compiler_params=_compiler_params(("parallel", "parallel", "parallel")),
    )(bands, w9, bias, a_row, s_row, residual)


# ----------------------------------------------------------------------------
# Glue: band extraction, GroupNorm folding, parameter preparation
# ----------------------------------------------------------------------------
def _extract_bands(x_nhwc, band_h, dtype):
    """(B,H,W,C) -> (B, n_band, (band_h+2)*W, C) overlapping H-padded bands.

    A single ~(1 + 2/band_h)x wrapper copy replaces the old 3x kx-shifted
    plane materialization; kx taps come from pltpu.roll inside the kernels.
    """
    B, H, W, C = x_nhwc.shape
    x = x_nhwc.astype(dtype)
    xp = jnp.pad(x, ((0, 0), (1, 1), (0, 0), (0, 0)))
    n_band = H // band_h
    bands = [xp[:, i * band_h: i * band_h + band_h + 2] for i in range(n_band)]
    out = jnp.stack(bands, axis=1)               # (B, n_band, band_h+2, W, C)
    return out.reshape(B, n_band, (band_h + 2) * W, C)


def _fold_groupnorm(csum, csq, gamma, beta, groups, rows, eps):
    """Per-channel sums -> folded per-(batch, channel) scale / shift rows."""
    B, C = csum.shape
    cpg = C // groups
    n = float(rows * cpg)
    gsum = csum.reshape(B, groups, cpg).sum(-1)
    gsq = csq.reshape(B, groups, cpg).sum(-1)
    mean = gsum / n
    var = gsq / n - mean * mean   # TODO(synk): shifted variance if ranges grow
    rstd = jax.lax.rsqrt(var + eps)
    mean_c = jnp.repeat(mean, cpg, axis=1)                      # (B, C)
    rstd_c = jnp.repeat(rstd, cpg, axis=1)
    scale = rstd_c * gamma.reshape(1, C)
    shift = beta.reshape(1, C) - mean_c * scale
    return scale[:, None, :], shift[:, None, :]                 # (B, 1, C)


def prepare_params(raw):
    """One-time conversion to MXU-friendly bf16 layouts (done at load time)."""
    Cin = raw["w1"].shape[2]
    Cout = raw["w1"].shape[3]
    Cout2 = raw["w2"].shape[3]
    return {
        "gn1_g": raw["gn1_g"].reshape(1, Cin).astype(jnp.float32),
        "gn1_b": raw["gn1_b"].reshape(1, Cin).astype(jnp.float32),
        "gn2_g": raw["gn2_g"].reshape(1, Cout).astype(jnp.float32),
        "gn2_b": raw["gn2_b"].reshape(1, Cout).astype(jnp.float32),
        "w1": raw["w1"].reshape(9, Cin, Cout).astype(MXU_DTYPE),
        "b1": raw["b1"].reshape(1, Cout).astype(jnp.float32),
        "w2": raw["w2"].reshape(9, Cout, Cout2).astype(MXU_DTYPE),
        "b2": raw["b2"].reshape(1, Cout2).astype(jnp.float32),
        "ws": raw["ws"].astype(MXU_DTYPE),
        "bs": raw["bs"].reshape(1, Cout2).astype(jnp.float32),
        "wt_s": raw["wt"][:, :Cout].astype(MXU_DTYPE),
        "wt_sh": raw["wt"][:, Cout:].astype(MXU_DTYPE),
        "bt_s": raw["bt"][:, :Cout].reshape(1, Cout).astype(jnp.float32),
        "bt_sh": raw["bt"][:, Cout:].reshape(1, Cout).astype(jnp.float32),
    }


# ----------------------------------------------------------------------------
# ResnetBlock2D forward (Pallas)
# ----------------------------------------------------------------------------
def resnet_block_2d(x_nchw, temb, params, *, groups, groups_out, eps,
                    output_scale_factor, band_pixels=None):
    cfg = _tpu_config()
    B, Cin, H, W = x_nchw.shape
    HW = H * W
    Cout = params["w1"].shape[-1]
    Cout2 = params["w2"].shape[-1]
    if band_pixels is None:
        band_pixels = cfg["band_pixels"]
    band_h = _pick_band_rows(H, W, band_pixels)
    band_pix = band_h * W

    # TODO(synk): in an NHWC end-to-end model these boundary transposes vanish.
    x_nhwc = jnp.transpose(x_nchw, (0, 2, 3, 1))
    x_flat = x_nhwc.reshape(B, HW, Cin)

    # Pass 1: GN1 per-channel partial sums, fused with the 1x1 conv shortcut.
    shortcut, st1 = gn1_stats_shortcut(x_flat, params["ws"], params["bs"],
                                       band_pix)
    s1 = jnp.sum(st1, axis=1)                                   # (B, 2, Cin)
    sc1, sh1 = _fold_groupnorm(s1[:, 0], s1[:, 1], params["gn1_g"],
                               params["gn1_b"], groups, HW, eps)

    # Time embedding projection -> (scale, shift) rows.
    ts, tsh = silu_time_proj(temb, params["wt_s"], params["wt_sh"],
                             params["bt_s"], params["bt_sh"])

    # conv1: GN1-normalize + SiLU fused in; emits c1 (bf16) + GN2 partial sums.
    tco1 = _cout_tile(Cout, cfg["tco_cap"])
    bands1 = _extract_bands(x_nhwc, band_h, MXU_DTYPE)
    c1, st2 = conv1_fused(bands1, params["w1"], params["b1"], sc1, sh1,
                          H, W, band_h, tco1)

    # GN2 fold (tiny, JAX) and algebraic folding of the time scale/shift.
    s2 = jnp.transpose(jnp.sum(st2, axis=1), (0, 2, 1, 3)).reshape(B, 2, Cout)
    sc2, sh2 = _fold_groupnorm(s2[:, 0], s2[:, 1], params["gn2_g"],
                               params["gn2_b"], groups_out, HW, eps)
    sc2 = sc2 * (1.0 + ts)
    sh2 = sh2 * (1.0 + ts) + tsh

    # conv2: GN2-norm + scale/shift + SiLU fused in; residual add + scaling.
    # (dropout p=0.0 is the identity)
    tco2 = _cout_tile(Cout2, cfg["tco_cap"])
    bands2 = _extract_bands(c1.reshape(B, H, W, Cout), band_h, MXU_DTYPE)
    out = conv2_fused(bands2, params["w2"], params["b2"], sc2, sh2, shortcut,
                      H, W, band_h, tco2, output_scale_factor)

    return jnp.transpose(out.reshape(B, H, W, Cout2), (0, 3, 1, 2))   # NCHW


# ----------------------------------------------------------------------------
# Pure-JAX reference (for validation)
# ----------------------------------------------------------------------------
def ref_forward(x_nchw, temb, params, *, groups, groups_out, eps,
                output_scale_factor):
    x = jnp.transpose(x_nchw, (0, 2, 3, 1))

    def gn(v, gamma, beta, G):
        B, H, W, C = v.shape
        vr = v.reshape(B, H * W, G, C // G)
        mean = vr.mean(axis=(1, 3), keepdims=True)
        var = ((vr - mean) ** 2).mean(axis=(1, 3), keepdims=True)
        y = ((vr - mean) / jnp.sqrt(var + eps)).reshape(B, H, W, C)
        return y * gamma.reshape(1, 1, 1, C) + beta.reshape(1, 1, 1, C)

    def silu(v):
        return v * jax.nn.sigmoid(v)

    def conv(v, w_hwio, b, pad):
        y = jax.lax.conv_general_dilated(
            v, w_hwio, (1, 1), pad,
            dimension_numbers=("NHWC", "HWIO", "NHWC"))
        return y + b.reshape(1, 1, 1, -1)

    h = silu(gn(x, params["gn1_g"], params["gn1_b"], groups))
    shortcut = conv(x, params["ws"].reshape(1, 1, *params["ws"].shape),
                    params["bs"], "VALID")
    c1 = conv(h, params["w1"], params["b1"], "SAME")
    t = silu(temb) @ params["wt"] + params["bt"]
    Cout = params["w1"].shape[-1]
    tscale = t[:, :Cout].reshape(-1, 1, 1, Cout)
    tshift = t[:, Cout:].reshape(-1, 1, 1, Cout)
    h2 = gn(c1, params["gn2_g"], params["gn2_b"], groups_out)
    h2 = silu(h2 * (1.0 + tscale) + tshift)
    c2 = conv(h2, params["w2"], params["b2"], "SAME")
    out = (shortcut + c2) / output_scale_factor
    return jnp.transpose(out, (0, 3, 1, 2))


# ----------------------------------------------------------------------------
if __name__ == "__main__":
    # Small config: block_type='down', up=False, down=False, dropout=0.0,
    # use_in_shortcut -> True (in_channels != conv_2d_out_channels).
    B, Cin, H, W = 2, 8, 16, 16
    Cout = 16
    Cout2 = Cout            # conv_2d_out_channels defaults to out_channels
    T = 32                  # temb_channels
    groups = 4
    groups_out = 4
    eps = 1e-6
    output_scale_factor = 1.0

    key = jax.random.PRNGKey(0)
    ks = jax.random.split(key, 12)
    sc = 0.1
    raw = {
        "gn1_g": 1.0 + sc * jax.random.normal(ks[0], (1, Cin), jnp.float32),
        "gn1_b": sc * jax.random.normal(ks[1], (1, Cin), jnp.float32),
        "w1": sc * jax.random.normal(ks[2], (3, 3, Cin, Cout), jnp.float32),
        "b1": sc * jax.random.normal(ks[3], (1, Cout), jnp.float32),
        "wt": sc * jax.random.normal(ks[4], (T, 2 * Cout), jnp.float32),
        "bt": sc * jax.random.normal(ks[5], (1, 2 * Cout), jnp.float32),
        "gn2_g": 1.0 + sc * jax.random.normal(ks[6], (1, Cout), jnp.float32),
        "gn2_b": sc * jax.random.normal(ks[7], (1, Cout), jnp.float32),
        "w2": sc * jax.random.normal(ks[8], (3, 3, Cout, Cout2), jnp.float32),
        "b2": sc * jax.random.normal(ks[9], (1, Cout2), jnp.float32),
        "ws": sc * jax.random.normal(ks[10], (Cin, Cout2), jnp.float32),
        "bs": sc * jax.random.normal(ks[11], (1, Cout2), jnp.float32),
    }
    params = prepare_params(raw)    # one-time bf16 / layout conversion

    xkey, tkey = jax.random.split(jax.random.PRNGKey(1))
    x = jax.random.normal(xkey, (B, Cin, H, W), jnp.float32)
    temb = jax.random.normal(tkey, (B, T), jnp.float32)

    # band_pixels=128 -> 2 H-bands at this size, exercising the halo / mask
    # path of the banded conv kernels.
    fwd = jax.jit(functools.partial(
        resnet_block_2d, groups=groups, groups_out=groups_out, eps=eps,
        output_scale_factor=output_scale_factor, band_pixels=128))
    out = jax.block_until_ready(fwd(x, temb, params))

    ref = jax.block_until_ready(
        ref_forward(x, temb, raw, groups=groups, groups_out=groups_out,
                    eps=eps, output_scale_factor=output_scale_factor))

    assert out.shape == (B, Cout2, H, W), out.shape
    # bf16 MXU operands / bf16 sc & c1 intermediates (f32 accumulation and
    # stats) -> slightly looser tolerance than a pure-f32 pipeline.
    np.testing.assert_allclose(np.asarray(out), np.asarray(ref),
                               rtol=5e-2, atol=5e-2)
    print("KERNEL_OK")
</pallas_src>

<mosaic_0001>
module attributes {stable_mosaic.version = 11 : i64} {
  func.func @_gn1_stats_shortcut_kernel(%arg0: i32, %arg1: i32, %arg2: memref<1x128x8xf32, #tpu.memory_space<vmem>>, %arg3: memref<8x16xbf16, #tpu.memory_space<vmem>>, %arg4: memref<1x16xf32, #tpu.memory_space<vmem>>, %arg5: memref<1x128x16xbf16, #tpu.memory_space<vmem>>, %arg6: memref<1x1x2x8xf32, #tpu.memory_space<vmem>>) attributes {dimension_semantics = [#tpu.dimension_semantics<parallel>, #tpu.dimension_semantics<parallel>], iteration_bounds = array<i64: 2, 2>, scalar_prefetch = 0 : i64, scratch_operands = 0 : i64, tpu.core_type = #tpu.core_type<tc>, window_params = [{transform_indices = @transform_0, window_bounds = array<i64: 1, 128, 8>}, {pipeline_mode = #tpu.pipeline_mode<synchronous>, transform_indices = @transform_1, window_bounds = array<i64: 8, 16>}, {pipeline_mode = #tpu.pipeline_mode<synchronous>, transform_indices = @transform_2, window_bounds = array<i64: 1, 16>}, {transform_indices = @transform_3, window_bounds = array<i64: 1, 128, 16>}, {transform_indices = @transform_4, window_bounds = array<i64: 1, 1, 2, 8>}]} {
    %c0 = arith.constant 0 : index
    %c0_0 = arith.constant 0 : index
    %c0_1 = arith.constant 0 : index
    %0 = vector.load %arg2[%c0, %c0_0, %c0_1] : memref<1x128x8xf32, #tpu.memory_space<vmem>>, vector<1x128x8xf32>
    %1 = vector.shape_cast %0 : vector<1x128x8xf32> to vector<128x8xf32>
    %cst = arith.constant dense<0.000000e+00> : vector<8xf32>
    %2 = vector.multi_reduction <add>, %1, %cst [0] : vector<128x8xf32> to vector<8xf32>
    %3 = vector.shape_cast %2 : vector<8xf32> to vector<1x8xf32>
    %4 = arith.mulf %1, %1 : vector<128x8xf32>
    %cst_2 = arith.constant dense<0.000000e+00> : vector<8xf32>
    %5 = vector.multi_reduction <add>, %4, %cst_2 [0] : vector<128x8xf32> to vector<8xf32>
    %6 = vector.shape_cast %5 : vector<8xf32> to vector<1x8xf32>
    %7 = tpu.concatenate %3, %6 in 0 : vector<1x8xf32>, vector<1x8xf32> -> vector<2x8xf32>
    %c0_3 = arith.constant 0 : index
    %c0_4 = arith.constant 0 : index
    %c0_5 = arith.constant 0 : index
    %c0_6 = arith.constant 0 : index
    %8 = vector.load %arg6[%c0_3, %c0_4, %c0_5, %c0_6] : memref<1x1x2x8xf32, #tpu.memory_space<vmem>>, vector<1x1x2x8xf32>
    %9 = vector.shape_cast %8 : vector<1x1x2x8xf32> to vector<2x8xf32>
    %10 = vector.shape_cast %7 : vector<2x8xf32> to vector<1x1x2x8xf32>
    tpu.vector_store %arg6[%c0_3, %c0_4, %c0_5, %c0_6], %10 {strides = array<i32>} : memref<1x1x2x8xf32, #tpu.memory_space<vmem>>, vector<1x1x2x8xf32>,
    %11 = arith.truncf %1 : vector<128x8xf32> to vector<128x8xbf16>
    %c0_7 = arith.constant 0 : index
    %c0_8 = arith.constant 0 : index
    %12 = vector.load %arg3[%c0_7, %c0_8] : memref<8x16xbf16, #tpu.memory_space<vmem>>, vector<8x16xbf16>
    %cst_9 = arith.constant dense<0.000000e+00> : vector<128x16xf32>
    %13 = tpu.matmul %11, %12, %cst_9 {dimension_numbers = #tpu.dot_dimension_numbers<[1], [0], [0], [1], [0, 0, 1, 1], [], []>} : vector<128x8xbf16>, vector<8x16xbf16>, vector<128x16xf32> -> vector<128x16xf32>
    %c0_10 = arith.constant 0 : index
    %c0_11 = arith.constant 0 : index
    %14 = vector.load %arg4[%c0_10, %c0_11] : memref<1x16xf32, #tpu.memory_space<vmem>>, vector<1x16xf32>
    %15 = vector.broadcast %14 : vector<1x16xf32> to vector<128x16xf32>
    %16 = arith.addf %13, %15 : vector<128x16xf32>
    %17 = arith.truncf %16 : vector<128x16xf32> to vector<128x16xbf16>
    %c0_12 = arith.constant 0 : index
    %c0_13 = arith.constant 0 : index
    %c0_14 = arith.constant 0 : index
    %18 = vector.load %arg5[%c0_12, %c0_13, %c0_14] : memref<1x128x16xbf16, #tpu.memory_space<vmem>>, vector<1x128x16xbf16>
    %19 = vector.shape_cast %18 : vector<1x128x16xbf16> to vector<128x16xbf16>
    %20 = vector.shape_cast %17 : vector<128x16xbf16> to vector<1x128x16xbf16>
    tpu.vector_store %arg5[%c0_12, %c0_13, %c0_14], %20 {strides = array<i32>} : memref<1x128x16xbf16, #tpu.memory_space<vmem>>, vector<1x128x16xbf16>,
    return
  }
  func.func @transform_0(%arg0: i32, %arg1: i32) -> (i32, i32, i32) {
    %c0_i32 = arith.constant 0 : i32
    %c0_i32_0 = arith.constant 0 : i32
    return %arg0, %arg1, %c0_i32 : i32, i32, i32
  }
  func.func @transform_1(%arg0: i32, %arg1: i32) -> (i32, i32) {
    %c0_i32 = arith.constant 0 : i32
    %c0_i32_0 = arith.constant 0 : i32
    %c0_i32_1 = arith.constant 0 : i32
    return %c0_i32, %c0_i32_0 : i32, i32
  }
  func.func @transform_2(%arg0: i32, %arg1: i32) -> (i32, i32) {
    %c0_i32 = arith.constant 0 : i32
    %c0_i32_0 = arith.constant 0 : i32
    %c0_i32_1 = arith.constant 0 : i32
    return %c0_i32, %c0_i32_0 : i32, i32
  }
  func.func @transform_3(%arg0: i32, %arg1: i32) -> (i32, i32, i32) {
    %c0_i32 = arith.constant 0 : i32
    %c0_i32_0 = arith.constant 0 : i32
    return %arg0, %arg1, %c0_i32 : i32, i32, i32
  }
  func.func @transform_4(%arg0: i32, %arg1: i32) -> (i32, i32, i32, i32) {
    %c0_i32 = arith.constant 0 : i32
    %c0_i32_0 = arith.constant 0 : i32
    %c0_i32_1 = arith.constant 0 : i32
    return %arg0, %arg1, %c0_i32, %c0_i32_0 : i32, i32, i32, i32
  }
}

module attributes {stable_mosaic.version = 11 : i64} {
  func.func @_conv1_kernel(%arg0: i32, %arg1: i32, %arg2: i32, %arg3: memref<1x1x160x8xbf16, #tpu.memory_space<vmem>>, %arg4: memref<9x8x16xbf16, #tpu.memory_space<vmem>>, %arg5: memref<1x16xf32, #tpu.memory_space<vmem>>, %arg6: memref<1x1x8xf32, #tpu.memory_space<vmem>>, %arg7: memref<1x1x8xf32, #tpu.memory_space<vmem>>, %arg8: memref<1x128x16xbf16, #tpu.memory_space<vmem>>, %arg9: memref<1x1x1x2x16xf32, #tpu.memory_space<vmem>>) attributes {dimension_semantics = [#tpu.dimension_semantics<parallel>, #tpu.dimension_semantics<parallel>, #tpu.dimension_semantics<parallel>], iteration_bounds = array<i64: 1, 2, 2>, scalar_prefetch = 0 : i64, scratch_operands = 0 : i64, tpu.core_type = #tpu.core_type<tc>, window_params = [{transform_indices = @transform_0, window_bounds = array<i64: 1, 1, 160, 8>}, {transform_indices = @transform_1, window_bounds = array<i64: 9, 8, 16>}, {transform_indices = @transform_2, window_bounds = array<i64: 1, 16>}, {transform_indices = @transform_3, window_bounds = array<i64: 1, 1, 8>}, {transform_indices = @transform_4, window_bounds = array<i64: 1, 1, 8>}, {transform_indices = @transform_5, window_bounds = array<i64: 1, 128, 16>}, {transform_indices = @transform_6, window_bounds = array<i64: 1, 1, 1, 2, 16>}]} {
    %c0 = arith.constant 0 : index
    %c0_0 = arith.constant 0 : index
    %c0_1 = arith.constant 0 : index
    %0 = vector.load %arg6[%c0, %c0_0, %c0_1] : memref<1x1x8xf32, #tpu.memory_space<vmem>>, vector<1x1x8xf32>
    %1 = vector.shape_cast %0 : vector<1x1x8xf32> to vector<1x8xf32>
    %c0_2 = arith.constant 0 : index
    %c0_3 = arith.constant 0 : index
    %c0_4 = arith.constant 0 : index
    %2 = vector.load %arg7[%c0_2, %c0_3, %c0_4] : memref<1x1x8xf32, #tpu.memory_space<vmem>>, vector<1x1x8xf32>
    %3 = vector.shape_cast %2 : vector<1x1x8xf32> to vector<1x8xf32>
    %c0_5 = arith.constant 0 : index
    %c0_6 = arith.constant 0 : index
    %c0_7 = arith.constant 0 : index
    %c0_8 = arith.constant 0 : index
    %4 = vector.load %arg3[%c0_5, %c0_6, %c0_7, %c0_8] : memref<1x1x160x8xbf16, #tpu.memory_space<vmem>>, vector<1x1x160x8xbf16>
    %5 = vector.shape_cast %4 : vector<1x1x160x8xbf16> to vector<160x8xbf16>
    %6 = arith.extf %5 : vector<160x8xbf16> to vector<160x8xf32>
    %7 = vector.broadcast %1 : vector<1x8xf32> to vector<160x8xf32>
    %8 = arith.mulf %6, %7 : vector<160x8xf32>
    %9 = vector.broadcast %3 : vector<1x8xf32> to vector<160x8xf32>
    %10 = arith.addf %8, %9 : vector<160x8xf32>
    %11 = arith.negf %10 : vector<160x8xf32>
    %12 = math.exp %11 : vector<160x8xf32>
    %cst = arith.constant 1.000000e+00 : f32
    %13 = vector.broadcast %cst : f32 to vector<160x8xf32>
    %14 = arith.addf %13, %12 : vector<160x8xf32>
    %15 = arith.divf %13, %14 : vector<160x8xf32>
    %16 = arith.mulf %10, %15 : vector<160x8xf32>
    %17 = tpu.iota {dimensions = array<i32: 0>} : vector<160x1xi32>
    %c0_i32 = arith.constant 0 : i32
    %18 = arith.cmpi eq, %arg2, %c0_i32 : i32
    %c16_i32 = arith.constant 16 : i32
    %19 = vector.broadcast %c16_i32 : i32 to vector<160x1xi32>
    %20 = arith.cmpi slt, %17, %19 : vector<160x1xi32>
    %21 = vector.broadcast %18 : i1 to vector<160x1xi1>
    %22 = arith.andi %21, %20 : vector<160x1xi1>
    %c1_i32 = arith.constant 1 : i32
    %23 = arith.cmpi eq, %arg2, %c1_i32 : i32
    %c144_i32 = arith.constant 144 : i32
    %24 = vector.broadcast %c144_i32 : i32 to vector<160x1xi32>
    %25 = arith.cmpi sge, %17, %24 : vector<160x1xi32>
    %26 = vector.broadcast %23 : i1 to vector<160x1xi1>
    %27 = arith.andi %26, %25 : vector<160x1xi1>
    %28 = arith.ori %22, %27 : vector<160x1xi1>
    %cst_9 = arith.constant 0.000000e+00 : f32
    %29 = vector.shape_cast %28 : vector<160x1xi1> to vector<160x1xi1>
    %30 = vector.broadcast %29 : vector<160x1xi1> to vector<160x8xi1>
    %31 = vector.broadcast %cst_9 : f32 to vector<160x8xf32>
    %32 = arith.select %30, %31, %16 : vector<160x8xi1>, vector<160x8xf32>
    %c16_i32_10 = arith.constant 16 : i32
    %c0_i32_11 = arith.constant 0 : i32
    %33 = arith.cmpi eq, %c16_i32_10, %c0_i32_11 : i32
    %c1_i32_12 = arith.constant 1 : i32
    %34 = arith.select %33, %c1_i32_12, %c16_i32_10 : i32
    %35 = vector.broadcast %34 : i32 to vector<160x1xi32>
    %36 = arith.remsi %17, %35 : vector<160x1xi32>
    %c0_i32_13 = arith.constant 0 : i32
    %37 = vector.broadcast %c0_i32_13 : i32 to vector<160x1xi32>
    %38 = arith.cmpi ne, %36, %37 : vector<160x1xi32>
    %c0_i32_14 = arith.constant 0 : i32
    %39 = vector.broadcast %c0_i32_14 : i32 to vector<160x1xi32>
    %40 = arith.cmpi slt, %36, %39 : vector<160x1xi32>
    %c0_i32_15 = arith.constant 0 : i32
    %41 = arith.cmpi slt, %34, %c0_i32_15 : i32
    %42 = vector.broadcast %41 : i1 to vector<160x1xi1>
    %43 = vector.broadcast %42 : vector<160x1xi1> to vector<160x1xi1>
    %44 = arith.xori %40, %43 : vector<160x1xi1>
    %45 = arith.andi %44, %38 : vector<160x1xi1>
    %46 = vector.broadcast %34 : i32 to vector<160x1xi32>
    %47 = arith.addi %36, %46 : vector<160x1xi32>
    %48 = arith.select %45, %47, %36 : vector<160x1xi1>, vector<160x1xi32>
    %c0_i32_16 = arith.constant 0 : i32
    %49 = vector.broadcast %c0_i32_16 : i32 to vector<160x1xi32>
    %50 = arith.cmpi eq, %48, %49 : vector<160x1xi32>
    %c1_i32_17 = arith.constant 1 : i32
    %51 = tpu.dynamic_rotate %32 by %c1_i32_17 dim 0 : vector<160x8xf32>, i32 -> vector<160x8xf32>
    %cst_18 = arith.constant 0.000000e+00 : f32
    %52 = vector.shape_cast %50 : vector<160x1xi1> to vector<160x1xi1>
    %53 = vector.broadcast %52 : vector<160x1xi1> to vector<160x8xi1>
    %54 = vector.broadcast %cst_18 : f32 to vector<160x8xf32>
    %55 = arith.select %53, %54, %51 : vector<160x8xi1>, vector<160x8xf32>
    %c15_i32 = arith.constant 15 : i32
    %56 = vector.broadcast %c15_i32 : i32 to vector<160x1xi32>
    %57 = arith.cmpi eq, %48, %56 : vector<160x1xi32>
    %c159_i32 = arith.constant 159 : i32
    %58 = tpu.dynamic_rotate %32 by %c159_i32 dim 0 : vector<160x8xf32>, i32 -> vector<160x8xf32>
    %cst_19 = arith.constant 0.000000e+00 : f32
    %59 = vector.shape_cast %57 : vector<160x1xi1> to vector<160x1xi1>
    %60 = vector.broadcast %59 : vector<160x1xi1> to vector<160x8xi1>
    %61 = vector.broadcast %cst_19 : f32 to vector<160x8xf32>
    %62 = arith.select %60, %61, %58 : vector<160x8xi1>, vector<160x8xf32>
    %63 = arith.truncf %55 : vector<160x8xf32> to vector<160x8xbf16>
    %64 = arith.truncf %32 : vector<160x8xf32> to vector<160x8xbf16>
    %65 = arith.truncf %62 : vector<160x8xf32> to vector<160x8xbf16>
    %66 = vector.extract_strided_slice %63 {offsets = [0, 0], sizes = [128, 8], strides = [1, 1]} : vector<160x8xbf16> to vector<128x8xbf16>
    %c0_20 = arith.constant 0 : index
    %c0_21 = arith.constant 0 : index
    %c0_22 = arith.constant 0 : index
    %67 = vector.load %arg4[%c0_20, %c0_21, %c0_22] : memref<9x8x16xbf16, #tpu.memory_space<vmem>>, vector<1x8x16xbf16>
    %68 = vector.shape_cast %67 : vector<1x8x16xbf16> to vector<8x16xbf16>
    %cst_23 = arith.constant dense<0.000000e+00> : vector<128x16xf32>
    %69 = tpu.matmul %66, %68, %cst_23 {dimension_numbers = #tpu.dot_dimension_numbers<[1], [0], [0], [1], [0, 0, 1, 1], [], []>} : vector<128x8xbf16>, vector<8x16xbf16>, vector<128x16xf32> -> vector<128x16xf32>
    %70 = vector.extract_strided_slice %64 {offsets = [0, 0], sizes = [128, 8], strides = [1, 1]} : vector<160x8xbf16> to vector<128x8xbf16>
    %c1 = arith.constant 1 : index
    %c0_24 = arith.constant 0 : index
    %c0_25 = arith.constant 0 : index
    %71 = vector.load %arg4[%c1, %c0_24, %c0_25] : memref<9x8x16xbf16, #tpu.memory_space<vmem>>, vector<1x8x16xbf16>
    %72 = vector.shape_cast %71 : vector<1x8x16xbf16> to vector<8x16xbf16>
    %cst_26 = arith.constant dense<0.000000e+00> : vector<128x16xf32>
    %73 = tpu.matmul %70, %72, %cst_26 {dimension_numbers = #tpu.dot_dimension_numbers<[1], [0], [0], [1], [0, 0, 1, 1], [], []>} : vector<128x8xbf16>, vector<8x16xbf16>, vector<128x16xf32> -> vector<128x16xf32>
    %74 = arith.addf %69, %73 : vector<128x16xf32>
    %75 = vector.extract_strided_slice %65 {offsets = [0, 0], sizes = [128, 8], strides = [1, 1]} : vector<160x8xbf16> to vector<128x8xbf16>
    %c2 = arith.constant 2 : index
    %c0_27 = arith.constant 0 : index
    %c0_28 = arith.constant 0 : index
    %76 = vector.load %arg4[%c2, %c0_27, %c0_28] : memref<9x8x16xbf16, #tpu.memory_space<vmem>>, vector<1x8x16xbf16>
    %77 = vector.shape_cast %76 : vector<1x8x16xbf16> to vector<8x16xbf16>
    %cst_29 = arith.constant dense<0.000000e+00> : vector<128x16xf32>
    %78 = tpu.matmul %75, %77, %cst_29 {dimension_numbers = #tpu.dot_dimension_numbers<[1], [0], [0], [1], [0, 0, 1, 1], [], []>} : vector<128x8xbf16>, vector<8x16xbf16>, vector<128x16xf32> -> vector<128x16xf32>
    %79 = arith.addf %74, %78 : vector<128x16xf32>
    %80 = vector.extract_strided_slice %63 {offsets = [16, 0], sizes = [128, 8], strides = [1, 1]} : vector<160x8xbf16> to vector<128x8xbf16>
    %c3 = arith.constant 3 : index
    %c0_30 = arith.constant 0 : index
    %c0_31 = arith.constant 0 : index
    %81 = vector.load %arg4[%c3, %c0_30, %c0_31] : memref<9x8x16xbf16, #tpu.memory_space<vmem>>, vector<1x8x16xbf16>
    %82 = vector.shape_cast %81 : vector<1x8x16xbf16> to vector<8x16xbf16>
    %cst_32 = arith.constant dense<0.000000e+00> : vector<128x16xf32>
    %83 = tpu.matmul %80, %82, %cst_32 {dimension_numbers = #tpu.dot_dimension_numbers<[1], [0], [0], [1], [0, 0, 1, 1], [], []>} : vector<128x8xbf16>, vector<8x16xbf16>, vector<128x16xf32> -> vector<128x16xf32>
    %84 = arith.addf %79, %83 : vector<128x16xf32>
    %85 = vector.extract_strided_slice %64 {offsets = [16, 0], sizes = [128, 8], strides = [1, 1]} : vector<160x8xbf16> to vector<128x8xbf16>
    %c4 = arith.constant 4 : index
    %c0_33 = arith.constant 0 : index
    %c0_34 = arith.constant 0 : index
    %86 = vector.load %arg4[%c4, %c0_33, %c0_34] : memref<9x8x16xbf16, #tpu.memory_space<vmem>>, vector<1x8x16xbf16>
    %87 = vector.shape_cast %86 : vector<1x8x16xbf16> to vector<8x16xbf16>
    %cst_35 = arith.constant dense<0.000000e+00> : vector<128x16xf32>
    %88 = tpu.matmul %85, %87, %cst_35 {dimension_numbers = #tpu.dot_dimension_numbers<[1], [0], [0], [1], [0, 0, 1, 1], [], []>} : vector<128x8xbf16>, vector<8x16xbf16>, vector<128x16xf32> -> vector<128x16xf32>
    %89 = arith.addf %84, %88 : vector<128x16xf32>
    %90 = vector.extract_strided_slice %65 {offsets = [16, 0], sizes = [128, 8], strides = [1, 1]} : vector<160x8xbf16> to vector<128x8xbf16>
    %c5 = arith.constant 5 : index
    %c0_36 = arith.constant 0 : index
    %c0_37 = arith.constant 0 : index
    %91 = vector.load %arg4[%c5, %c0_36, %c0_37] : memref<9x8x16xbf16, #tpu.memory_space<vmem>>, vector<1x8x16xbf16>
    %92 = vector.shape_cast %91 : vector<1x8x16xbf16> to vector<8x16xbf16>
    %cst_38 = arith.constant dense<0.000000e+00> : vector<128x16xf32>
    %93 = tpu.matmul %90, %92, %cst_38 {dimension_numbers = #tpu.dot_dimension_numbers<[1], [0], [0], [1], [0, 0, 1, 1], [], []>} : vector<128x8xbf16>, vector<8x16xbf16>, vector<128x16xf32> -> vector<128x16xf32>
    %94 = arith.addf %89, %93 : vector<128x16xf32>
    %95 = vector.extract_strided_slice %63 {offsets = [32, 0], sizes = [128, 8], strides = [1, 1]} : vector<160x8xbf16> to vector<128x8xbf16>
    %c6 = arith.constant 6 : index
    %c0_39 = arith.constant 0 : index
    %c0_40 = arith.constant 0 : index
    %96 = vector.load %arg4[%c6, %c0_39, %c0_40] : memref<9x8x16xbf16, #tpu.memory_space<vmem>>, vector<1x8x16xbf16>
    %97 = vector.shape_cast %96 : vector<1x8x16xbf16> to vector<8x16xbf16>
    %cst_41 = arith.constant dense<0.000000e+00> : vector<128x16xf32>
    %98 = tpu.matmul %95, %97, %cst_41 {dimension_numbers = #tpu.dot_dimension_numbers<[1], [0], [0], [1], [0, 0, 1, 1], [], []>} : vector<128x8xbf16>, vector<8x16xbf16>, vector<128x16xf32> -> vector<128x16xf32>
    %99 = arith.addf %94, %98 : vector<128x16xf32>
    %100 = vector.extract_strided_slice %64 {offsets = [32, 0], sizes = [128, 8], strides = [1, 1]} : vector<160x8xbf16> to vector<128x8xbf16>
    %c7 = arith.constant 7 : index
    %c0_42 = arith.constant 0 : index
    %c0_43 = arith.constant 0 : index
    %101 = vector.load %arg4[%c7, %c0_42, %c0_43] : memref<9x8x16xbf16, #tpu.memory_space<vmem>>, vector<1x8x16xbf16>
    %102 = vector.shape_cast %101 : vector<1x8x16xbf16> to vector<8x16xbf16>
    %cst_44 = arith.constant dense<0.000000e+00> : vector<128x16xf32>
    %103 = tpu.matmul %100, %102, %cst_44 {dimension_numbers = #tpu.dot_dimension_numbers<[1], [0], [0], [1], [0, 0, 1, 1], [], []>} : vector<128x8xbf16>, vector<8x16xbf16>, vector<128x16xf32> -> vector<128x16xf32>
    %104 = arith.addf %99, %103 : vector<128x16xf32>
    %105 = vector.extract_strided_slice %65 {offsets = [32, 0], sizes = [128, 8], strides = [1, 1]} : vector<160x8xbf16> to vector<128x8xbf16>
    %c8 = arith.constant 8 : index
    %c0_45 = arith.constant 0 : index
    %c0_46 = arith.constant 0 : index
    %106 = vector.load %arg4[%c8, %c0_45, %c0_46] : memref<9x8x16xbf16, #tpu.memory_space<vmem>>, vector<1x8x16xbf16>
    %107 = vector.shape_cast %106 : vector<1x8x16xbf16> to vector<8x16xbf16>
    %cst_47 = arith.constant dense<0.000000e+00> : vector<128x16xf32>
    %108 = tpu.matmul %105, %107, %cst_47 {dimension_numbers = #tpu.dot_dimension_numbers<[1], [0], [0], [1], [0, 0, 1, 1], [], []>} : vector<128x8xbf16>, vector<8x16xbf16>, vector<128x16xf32> -> vector<128x16xf32>
    %109 = arith.addf %104, %108 : vector<128x16xf32>
    %c0_48 = arith.constant 0 : index
    %c0_49 = arith.constant 0 : index
    %110 = vector.load %arg5[%c0_48, %c0_49] : memref<1x16xf32, #tpu.memory_space<vmem>>, vector<1x16xf32>
    %111 = vector.broadcast %110 : vector<1x16xf32> to vector<128x16xf32>
    %112 = arith.addf %109, %111 : vector<128x16xf32>
    %113 = arith.truncf %112 : vector<128x16xf32> to vector<128x16xbf16>
    %c0_50 = arith.constant 0 : index
    %c0_51 = arith.constant 0 : index
    %c0_52 = arith.constant 0 : index
    %114 = vector.load %arg8[%c0_50, %c0_51, %c0_52] : memref<1x128x16xbf16, #tpu.memory_space<vmem>>, vector<1x128x16xbf16>
    %115 = vector.shape_cast %114 : vector<1x128x16xbf16> to vector<128x16xbf16>
    %116 = vector.shape_cast %113 : vector<128x16xbf16> to vector<1x128x16xbf16>
    tpu.vector_store %arg8[%c0_50, %c0_51, %c0_52], %116 {strides = array<i32>} : memref<1x128x16xbf16, #tpu.memory_space<vmem>>, vector<1x128x16xbf16>,
    %cst_53 = arith.constant dense<0.000000e+00> : vector<16xf32>
    %117 = vector.multi_reduction <add>, %112, %cst_53 [0] : vector<128x16xf32> to vector<16xf32>
    %118 = vector.shape_cast %117 : vector<16xf32> to vector<1x16xf32>
    %119 = arith.mulf %112, %112 : vector<128x16xf32>
    %cst_54 = arith.constant dense<0.000000e+00> : vector<16xf32>
    %120 = vector.multi_reduction <add>, %119, %cst_54 [0] : vector<128x16xf32> to vector<16xf32>
    %121 = vector.shape_cast %120 : vector<16xf32> to vector<1x16xf32>
    %122 = tpu.concatenate %118, %121 in 0 : vector<1x16xf32>, vector<1x16xf32> -> vector<2x16xf32>
    %c0_55 = arith.constant 0 : index
    %c0_56 = arith.constant 0 : index
    %c0_57 = arith.constant 0 : index
    %c0_58 = arith.constant 0 : index
    %c0_59 = arith.constant 0 : index
    %123 = vector.load %arg9[%c0_55, %c0_56, %c0_57, %c0_58, %c0_59] : memref<1x1x1x2x16xf32, #tpu.memory_space<vmem>>, vector<1x1x1x2x16xf32>
    %124 = vector.shape_cast %123 : vector<1x1x1x2x16xf32> to vector<2x16xf32>
    %125 = vector.shape_cast %122 : vector<2x16xf32> to vector<1x1x1x2x16xf32>
    tpu.vector_store %arg9[%c0_55, %c0_56, %c0_57, %c0_58, %c0_59], %125 {strides = array<i32>} : memref<1x1x1x2x16xf32, #tpu.memory_space<vmem>>, vector<1x1x1x2x16xf32>,
    return
  }
  func.func @transform_0(%arg0: i32, %arg1: i32, %arg2: i32) -> (i32, i32, i32, i32) {
    %c0_i32 = arith.constant 0 : i32
    %c0_i32_0 = arith.constant 0 : i32
    %c0_i32_1 = arith.constant 0 : i32
    return %arg1, %arg2, %c0_i32, %c0_i32_0 : i32, i32, i32, i32
  }
  func.func @transform_1(%arg0: i32, %arg1: i32, %arg2: i32) -> (i32, i32, i32) {
    %c0_i32 = arith.constant 0 : i32
    %c0_i32_0 = arith.constant 0 : i32
    %c0_i32_1 = arith.constant 0 : i32
    return %c0_i32, %c0_i32_0, %arg0 : i32, i32, i32
  }
  func.func @transform_2(%arg0: i32, %arg1: i32, %arg2: i32) -> (i32, i32) {
    %c0_i32 = arith.constant 0 : i32
    %c0_i32_0 = arith.constant 0 : i32
    return %c0_i32, %arg0 : i32, i32
  }
  func.func @transform_3(%arg0: i32, %arg1: i32, %arg2: i32) -> (i32, i32, i32) {
    %c0_i32 = arith.constant 0 : i32
    %c0_i32_0 = arith.constant 0 : i32
    %c0_i32_1 = arith.constant 0 : i32
    return %arg1, %c0_i32, %c0_i32_0 : i32, i32, i32
  }
  func.func @transform_4(%arg0: i32, %arg1: i32, %arg2: i32) -> (i32, i32, i32) {
    %c0_i32 = arith.constant 0 : i32
    %c0_i32_0 = arith.constant 0 : i32
    %c0_i32_1 = arith.constant 0 : i32
    return %arg1, %c0_i32, %c0_i32_0 : i32, i32, i32
  }
  func.func @transform_5(%arg0: i32, %arg1: i32, %arg2: i32) -> (i32, i32, i32) {
    %c0_i32 = arith.constant 0 : i32
    return %arg1, %arg2, %arg0 : i32, i32, i32
  }
  func.func @transform_6(%arg0: i32, %arg1: i32, %arg2: i32) -> (i32, i32, i32, i32, i32) {
    %c0_i32 = arith.constant 0 : i32
    %c0_i32_0 = arith.constant 0 : i32
    %c0_i32_1 = arith.constant 0 : i32
    return %arg1, %arg2, %arg0, %c0_i32, %c0_i32_0 : i32, i32, i32, i32, i32
  }
}

module attributes {stable_mosaic.version = 11 : i64} {
  func.func @_silu_time_proj_kernel(%arg0: i32, %arg1: memref<1x1x32xf32, #tpu.memory_space<vmem>>, %arg2: memref<32x16xbf16, #tpu.memory_space<vmem>>, %arg3: memref<32x16xbf16, #tpu.memory_space<vmem>>, %arg4: memref<1x16xf32, #tpu.memory_space<vmem>>, %arg5: memref<1x16xf32, #tpu.memory_space<vmem>>, %arg6: memref<1x1x16xf32, #tpu.memory_space<vmem>>, %arg7: memref<1x1x16xf32, #tpu.memory_space<vmem>>) attributes {dimension_semantics = [#tpu.dimension_semantics<parallel>], iteration_bounds = array<i64: 2>, scalar_prefetch = 0 : i64, scratch_operands = 0 : i64, tpu.core_type = #tpu.core_type<tc>, window_params = [{transform_indices = @transform_0, window_bounds = array<i64: 1, 1, 32>}, {pipeline_mode = #tpu.pipeline_mode<synchronous>, transform_indices = @transform_1, window_bounds = array<i64: 32, 16>}, {pipeline_mode = #tpu.pipeline_mode<synchronous>, transform_indices = @transform_2, window_bounds = array<i64: 32, 16>}, {pipeline_mode = #tpu.pipeline_mode<synchronous>, transform_indices = @transform_3, window_bounds = array<i64: 1, 16>}, {pipeline_mode = #tpu.pipeline_mode<synchronous>, transform_indices = @transform_4, window_bounds = array<i64: 1, 16>}, {transform_indices = @transform_5, window_bounds = array<i64: 1, 1, 16>}, {transform_indices = @transform_6, window_bounds = array<i64: 1, 1, 16>}]} {
    %c0 = arith.constant 0 : index
    %c0_0 = arith.constant 0 : index
    %c0_1 = arith.constant 0 : index
    %0 = vector.load %arg1[%c0, %c0_0, %c0_1] : memref<1x1x32xf32, #tpu.memory_space<vmem>>, vector<1x1x32xf32>
    %1 = vector.shape_cast %0 : vector<1x1x32xf32> to vector<1x32xf32>
    %2 = arith.negf %1 : vector<1x32xf32>
    %3 = math.exp %2 : vector<1x32xf32>
    %cst = arith.constant 1.000000e+00 : f32
    %4 = vector.broadcast %cst : f32 to vector<1x32xf32>
    %5 = arith.addf %4, %3 : vector<1x32xf32>
    %6 = arith.divf %4, %5 : vector<1x32xf32>
    %7 = arith.mulf %1, %6 : vector<1x32xf32>
    %8 = arith.truncf %7 : vector<1x32xf32> to vector<1x32xbf16>
    %c0_2 = arith.constant 0 : index
    %c0_3 = arith.constant 0 : index
    %9 = vector.load %arg2[%c0_2, %c0_3] : memref<32x16xbf16, #tpu.memory_space<vmem>>, vector<32x16xbf16>
    %cst_4 = arith.constant dense<0.000000e+00> : vector<1x16xf32>
    %10 = tpu.matmul %8, %9, %cst_4 {dimension_numbers = #tpu.dot_dimension_numbers<[1], [0], [0], [1], [0, 0, 1, 1], [], []>} : vector<1x32xbf16>, vector<32x16xbf16>, vector<1x16xf32> -> vector<1x16xf32>
    %c0_5 = arith.constant 0 : index
    %c0_6 = arith.constant 0 : index
    %11 = vector.load %arg4[%c0_5, %c0_6] : memref<1x16xf32, #tpu.memory_space<vmem>>, vector<1x16xf32>
    %12 = arith.addf %10, %11 : vector<1x16xf32>
    %c0_7 = arith.constant 0 : index
    %c0_8 = arith.constant 0 : index
    %c0_9 = arith.constant 0 : index
    %13 = vector.load %arg6[%c0_7, %c0_8, %c0_9] : memref<1x1x16xf32, #tpu.memory_space<vmem>>, vector<1x1x16xf32>
    %14 = vector.shape_cast %13 : vector<1x1x16xf32> to vector<1x16xf32>
    %15 = vector.shape_cast %12 : vector<1x16xf32> to vector<1x1x16xf32>
    tpu.vector_store %arg6[%c0_7, %c0_8, %c0_9], %15 {strides = array<i32>} : memref<1x1x16xf32, #tpu.memory_space<vmem>>, vector<1x1x16xf32>,
    %c0_10 = arith.constant 0 : index
    %c0_11 = arith.constant 0 : index
    %16 = vector.load %arg3[%c0_10, %c0_11] : memref<32x16xbf16, #tpu.memory_space<vmem>>, vector<32x16xbf16>
    %cst_12 = arith.constant dense<0.000000e+00> : vector<1x16xf32>
    %17 = tpu.matmul %8, %16, %cst_12 {dimension_numbers = #tpu.dot_dimension_numbers<[1], [0], [0], [1], [0, 0, 1, 1], [], []>} : vector<1x32xbf16>, vector<32x16xbf16>, vector<1x16xf32> -> vector<1x16xf32>
    %c0_13 = arith.constant 0 : index
    %c0_14 = arith.constant 0 : index
    %18 = vector.load %arg5[%c0_13, %c0_14] : memref<1x16xf32, #tpu.memory_space<vmem>>, vector<1x16xf32>
    %19 = arith.addf %17, %18 : vector<1x16xf32>
    %c0_15 = arith.constant 0 : index
    %c0_16 = arith.constant 0 : index
    %c0_17 = arith.constant 0 : index
    %20 = vector.load %arg7[%c0_15, %c0_16, %c0_17] : memref<1x1x16xf32, #tpu.memory_space<vmem>>, vector<1x1x16xf32>
    %21 = vector.shape_cast %20 : vector<1x1x16xf32> to vector<1x16xf32>
    %22 = vector.shape_cast %19 : vector<1x16xf32> to vector<1x1x16xf32>
    tpu.vector_store %arg7[%c0_15, %c0_16, %c0_17], %22 {strides = array<i32>} : memref<1x1x16xf32, #tpu.memory_space<vmem>>, vector<1x1x16xf32>,
    return
  }
  func.func @transform_0(%arg0: i32) -> (i32, i32, i32) {
    %c0_i32 = arith.constant 0 : i32
    %c0_i32_0 = arith.constant 0 : i32
    %c0_i32_1 = arith.constant 0 : i32
    return %arg0, %c0_i32, %c0_i32_0 : i32, i32, i32
  }
  func.func @transform_1(%arg0: i32) -> (i32, i32) {
    %c0_i32 = arith.constant 0 : i32
    %c0_i32_0 = arith.constant 0 : i32
    %c0_i32_1 = arith.constant 0 : i32
    return %c0_i32, %c0_i32_0 : i32, i32
  }
  func.func @transform_2(%arg0: i32) -> (i32, i32) {
    %c0_i32 = arith.constant 0 : i32
    %c0_i32_0 = arith.constant 0 : i32
    %c0_i32_1 = arith.constant 0 : i32
    return %c0_i32, %c0_i32_0 : i32, i32
  }
  func.func @transform_3(%arg0: i32) -> (i32, i32) {
    %c0_i32 = arith.constant 0 : i32
    %c0_i32_0 = arith.constant 0 : i32
    %c0_i32_1 = arith.constant 0 : i32
    return %c0_i32, %c0_i32_0 : i32, i32
  }
  func.func @transform_4(%arg0: i32) -> (i32, i32) {
    %c0_i32 = arith.constant 0 : i32
    %c0_i32_0 = arith.constant 0 : i32
    %c0_i32_1 = arith.constant 0 : i32
    return %c0_i32, %c0_i32_0 : i32, i32
  }
  func.func @transform_5(%arg0: i32) -> (i32, i32, i32) {
    %c0_i32 = arith.constant 0 : i32
    %c0_i32_0 = arith.constant 0 : i32
    %c0_i32_1 = arith.constant 0 : i32
    return %arg0, %c0_i32, %c0_i32_0 : i32, i32, i32
  }
  func.func @transform_6(%arg0: i32) -> (i32, i32, i32) {
    %c0_i32 = arith.constant 0 : i32
    %c0_i32_0 = arith.constant 0 : i32
    %c0_i32_1 = arith.constant 0 : i32
    return %arg0, %c0_i32, %c0_i32_0 : i32, i32, i32
  }
}

module attributes {stable_mosaic.version = 11 : i64} {
  func.func @_conv2_kernel(%arg0: i32, %arg1: i32, %arg2: i32, %arg3: memref<1x1x160x16xbf16, #tpu.memory_space<vmem>>, %arg4: memref<9x16x16xbf16, #tpu.memory_space<vmem>>, %arg5: memref<1x16xf32, #tpu.memory_space<vmem>>, %arg6: memref<1x1x16xf32, #tpu.memory_space<vmem>>, %arg7: memref<1x1x16xf32, #tpu.memory_space<vmem>>, %arg8: memref<1x128x16xbf16, #tpu.memory_space<vmem>>, %arg9: memref<1x128x16xf32, #tpu.memory_space<vmem>>) attributes {dimension_semantics = [#tpu.dimension_semantics<parallel>, #tpu.dimension_semantics<parallel>, #tpu.dimension_semantics<parallel>], iteration_bounds = array<i64: 1, 2, 2>, scalar_prefetch = 0 : i64, scratch_operands = 0 : i64, tpu.core_type = #tpu.core_type<tc>, window_params = [{transform_indices = @transform_0, window_bounds = array<i64: 1, 1, 160, 16>}, {transform_indices = @transform_1, window_bounds = array<i64: 9, 16, 16>}, {transform_indices = @transform_2, window_bounds = array<i64: 1, 16>}, {transform_indices = @transform_3, window_bounds = array<i64: 1, 1, 16>}, {transform_indices = @transform_4, window_bounds = array<i64: 1, 1, 16>}, {transform_indices = @transform_5, window_bounds = array<i64: 1, 128, 16>}, {transform_indices = @transform_6, window_bounds = array<i64: 1, 128, 16>}]} {
    %c0 = arith.constant 0 : index
    %c0_0 = arith.constant 0 : index
    %c0_1 = arith.constant 0 : index
    %0 = vector.load %arg6[%c0, %c0_0, %c0_1] : memref<1x1x16xf32, #tpu.memory_space<vmem>>, vector<1x1x16xf32>
    %1 = vector.shape_cast %0 : vector<1x1x16xf32> to vector<1x16xf32>
    %c0_2 = arith.constant 0 : index
    %c0_3 = arith.constant 0 : index
    %c0_4 = arith.constant 0 : index
    %2 = vector.load %arg7[%c0_2, %c0_3, %c0_4] : memref<1x1x16xf32, #tpu.memory_space<vmem>>, vector<1x1x16xf32>
    %3 = vector.shape_cast %2 : vector<1x1x16xf32> to vector<1x16xf32>
    %c0_5 = arith.constant 0 : index
    %c0_6 = arith.constant 0 : index
    %c0_7 = arith.constant 0 : index
    %c0_8 = arith.constant 0 : index
    %4 = vector.load %arg3[%c0_5, %c0_6, %c0_7, %c0_8] : memref<1x1x160x16xbf16, #tpu.memory_space<vmem>>, vector<1x1x160x16xbf16>
    %5 = vector.shape_cast %4 : vector<1x1x160x16xbf16> to vector<160x16xbf16>
    %6 = arith.extf %5 : vector<160x16xbf16> to vector<160x16xf32>
    %7 = vector.broadcast %1 : vector<1x16xf32> to vector<160x16xf32>
    %8 = arith.mulf %6, %7 : vector<160x16xf32>
    %9 = vector.broadcast %3 : vector<1x16xf32> to vector<160x16xf32>
    %10 = arith.addf %8, %9 : vector<160x16xf32>
    %11 = arith.negf %10 : vector<160x16xf32>
    %12 = math.exp %11 : vector<160x16xf32>
    %cst = arith.constant 1.000000e+00 : f32
    %13 = vector.broadcast %cst : f32 to vector<160x16xf32>
    %14 = arith.addf %13, %12 : vector<160x16xf32>
    %15 = arith.divf %13, %14 : vector<160x16xf32>
    %16 = arith.mulf %10, %15 : vector<160x16xf32>
    %17 = tpu.iota {dimensions = array<i32: 0>} : vector<160x1xi32>
    %c0_i32 = arith.constant 0 : i32
    %18 = arith.cmpi eq, %arg2, %c0_i32 : i32
    %c16_i32 = arith.constant 16 : i32
    %19 = vector.broadcast %c16_i32 : i32 to vector<160x1xi32>
    %20 = arith.cmpi slt, %17, %19 : vector<160x1xi32>
    %21 = vector.broadcast %18 : i1 to vector<160x1xi1>
    %22 = arith.andi %21, %20 : vector<160x1xi1>
    %c1_i32 = arith.constant 1 : i32
    %23 = arith.cmpi eq, %arg2, %c1_i32 : i32
    %c144_i32 = arith.constant 144 : i32
    %24 = vector.broadcast %c144_i32 : i32 to vector<160x1xi32>
    %25 = arith.cmpi sge, %17, %24 : vector<160x1xi32>
    %26 = vector.broadcast %23 : i1 to vector<160x1xi1>
    %27 = arith.andi %26, %25 : vector<160x1xi1>
    %28 = arith.ori %22, %27 : vector<160x1xi1>
    %cst_9 = arith.constant 0.000000e+00 : f32
    %29 = vector.shape_cast %28 : vector<160x1xi1> to vector<160x1xi1>
    %30 = vector.broadcast %29 : vector<160x1xi1> to vector<160x16xi1>
    %31 = vector.broadcast %cst_9 : f32 to vector<160x16xf32>
    %32 = arith.select %30, %31, %16 : vector<160x16xi1>, vector<160x16xf32>
    %c16_i32_10 = arith.constant 16 : i32
    %c0_i32_11 = arith.constant 0 : i32
    %33 = arith.cmpi eq, %c16_i32_10, %c0_i32_11 : i32
    %c1_i32_12 = arith.constant 1 : i32
    %34 = arith.select %33, %c1_i32_12, %c16_i32_10 : i32
    %35 = vector.broadcast %34 : i32 to vector<160x1xi32>
    %36 = arith.remsi %17, %35 : vector<160x1xi32>
    %c0_i32_13 = arith.constant 0 : i32
    %37 = vector.broadcast %c0_i32_13 : i32 to vector<160x1xi32>
    %38 = arith.cmpi ne, %36, %37 : vector<160x1xi32>
    %c0_i32_14 = arith.constant 0 : i32
    %39 = vector.broadcast %c0_i32_14 : i32 to vector<160x1xi32>
    %40 = arith.cmpi slt, %36, %39 : vector<160x1xi32>
    %c0_i32_15 = arith.constant 0 : i32
    %41 = arith.cmpi slt, %34, %c0_i32_15 : i32
    %42 = vector.broadcast %41 : i1 to vector<160x1xi1>
    %43 = vector.broadcast %42 : vector<160x1xi1> to vector<160x1xi1>
    %44 = arith.xori %40, %43 : vector<160x1xi1>
    %45 = arith.andi %44, %38 : vector<160x1xi1>
    %46 = vector.broadcast %34 : i32 to vector<160x1xi32>
    %47 = arith.addi %36, %46 : vector<160x1xi32>
    %48 = arith.select %45, %47, %36 : vector<160x1xi1>, vector<160x1xi32>
    %c0_i32_16 = arith.constant 0 : i32
    %49 = vector.broadcast %c0_i32_16 : i32 to vector<160x1xi32>
    %50 = arith.cmpi eq, %48, %49 : vector<160x1xi32>
    %c1_i32_17 = arith.constant 1 : i32
    %51 = tpu.dynamic_rotate %32 by %c1_i32_17 dim 0 : vector<160x16xf32>, i32 -> vector<160x16xf32>
    %cst_18 = arith.constant 0.000000e+00 : f32
    %52 = vector.shape_cast %50 : vector<160x1xi1> to vector<160x1xi1>
    %53 = vector.broadcast %52 : vector<160x1xi1> to vector<160x16xi1>
    %54 = vector.broadcast %cst_18 : f32 to vector<160x16xf32>
    %55 = arith.select %53, %54, %51 : vector<160x16xi1>, vector<160x16xf32>
    %c15_i32 = arith.constant 15 : i32
    %56 = vector.broadcast %c15_i32 : i32 to vector<160x1xi32>
    %57 = arith.cmpi eq, %48, %56 : vector<160x1xi32>
    %c159_i32 = arith.constant 159 : i32
    %58 = tpu.dynamic_rotate %32 by %c159_i32 dim 0 : vector<160x16xf32>, i32 -> vector<160x16xf32>
    %cst_19 = arith.constant 0.000000e+00 : f32
    %59 = vector.shape_cast %57 : vector<160x1xi1> to vector<160x1xi1>
    %60 = vector.broadcast %59 : vector<160x1xi1> to vector<160x16xi1>
    %61 = vector.broadcast %cst_19 : f32 to vector<160x16xf32>
    %62 = arith.select %60, %61, %58 : vector<160x16xi1>, vector<160x16xf32>
    %63 = arith.truncf %55 : vector<160x16xf32> to vector<160x16xbf16>
    %64 = arith.truncf %32 : vector<160x16xf32> to vector<160x16xbf16>
    %65 = arith.truncf %62 : vector<160x16xf32> to vector<160x16xbf16>
    %66 = vector.extract_strided_slice %63 {offsets = [0, 0], sizes = [128, 16], strides = [1, 1]} : vector<160x16xbf16> to vector<128x16xbf16>
    %c0_20 = arith.constant 0 : index
    %c0_21 = arith.constant 0 : index
    %c0_22 = arith.constant 0 : index
    %67 = vector.load %arg4[%c0_20, %c0_21, %c0_22] : memref<9x16x16xbf16, #tpu.memory_space<vmem>>, vector<1x16x16xbf16>
    %68 = vector.shape_cast %67 : vector<1x16x16xbf16> to vector<16x16xbf16>
    %cst_23 = arith.constant dense<0.000000e+00> : vector<128x16xf32>
    %69 = tpu.matmul %66, %68, %cst_23 {dimension_numbers = #tpu.dot_dimension_numbers<[1], [0], [0], [1], [0, 0, 1, 1], [], []>} : vector<128x16xbf16>, vector<16x16xbf16>, vector<128x16xf32> -> vector<128x16xf32>
    %70 = vector.extract_strided_slice %64 {offsets = [0, 0], sizes = [128, 16], strides = [1, 1]} : vector<160x16xbf16> to vector<128x16xbf16>
    %c1 = arith.constant 1 : index
    %c0_24 = arith.constant 0 : index
    %c0_25 = arith.constant 0 : index
    %71 = vector.load %arg4[%c1, %c0_24, %c0_25] : memref<9x16x16xbf16, #tpu.memory_space<vmem>>, vector<1x16x16xbf16>
    %72 = vector.shape_cast %71 : vector<1x16x16xbf16> to vector<16x16xbf16>
    %cst_26 = arith.constant dense<0.000000e+00> : vector<128x16xf32>
    %73 = tpu.matmul %70, %72, %cst_26 {dimension_numbers = #tpu.dot_dimension_numbers<[1], [0], [0], [1], [0, 0, 1, 1], [], []>} : vector<128x16xbf16>, vector<16x16xbf16>, vector<128x16xf32> -> vector<128x16xf32>
    %74 = arith.addf %69, %73 : vector<128x16xf32>
    %75 = vector.extract_strided_slice %65 {offsets = [0, 0], sizes = [128, 16], strides = [1, 1]} : vector<160x16xbf16> to vector<128x16xbf16>
    %c2 = arith.constant 2 : index
    %c0_27 = arith.constant 0 : index
    %c0_28 = arith.constant 0 : index
    %76 = vector.load %arg4[%c2, %c0_27, %c0_28] : memref<9x16x16xbf16, #tpu.memory_space<vmem>>, vector<1x16x16xbf16>
    %77 = vector.shape_cast %76 : vector<1x16x16xbf16> to vector<16x16xbf16>
    %cst_29 = arith.constant dense<0.000000e+00> : vector<128x16xf32>
    %78 = tpu.matmul %75, %77, %cst_29 {dimension_numbers = #tpu.dot_dimension_numbers<[1], [0], [0], [1], [0, 0, 1, 1], [], []>} : vector<128x16xbf16>, vector<16x16xbf16>, vector<128x16xf32> -> vector<128x16xf32>
    %79 = arith.addf %74, %78 : vector<128x16xf32>
    %80 = vector.extract_strided_slice %63 {offsets = [16, 0], sizes = [128, 16], strides = [1, 1]} : vector<160x16xbf16> to vector<128x16xbf16>
    %c3 = arith.constant 3 : index
    %c0_30 = arith.constant 0 : index
    %c0_31 = arith.constant 0 : index
    %81 = vector.load %arg4[%c3, %c0_30, %c0_31] : memref<9x16x16xbf16, #tpu.memory_space<vmem>>, vector<1x16x16xbf16>
    %82 = vector.shape_cast %81 : vector<1x16x16xbf16> to vector<16x16xbf16>
    %cst_32 = arith.constant dense<0.000000e+00> : vector<128x16xf32>
    %83 = tpu.matmul %80, %82, %cst_32 {dimension_numbers = #tpu.dot_dimension_numbers<[1], [0], [0], [1], [0, 0, 1, 1], [], []>} : vector<128x16xbf16>, vector<16x16xbf16>, vector<128x16xf32> -> vector<128x16xf32>
    %84 = arith.addf %79, %83 : vector<128x16xf32>
    %85 = vector.extract_strided_slice %64 {offsets = [16, 0], sizes = [128, 16], strides = [1, 1]} : vector<160x16xbf16> to vector<128x16xbf16>
    %c4 = arith.constant 4 : index
    %c0_33 = arith.constant 0 : index
    %c0_34 = arith.constant 0 : index
    %86 = vector.load %arg4[%c4, %c0_33, %c0_34] : memref<9x16x16xbf16, #tpu.memory_space<vmem>>, vector<1x16x16xbf16>
    %87 = vector.shape_cast %86 : vector<1x16x16xbf16> to vector<16x16xbf16>
    %cst_35 = arith.constant dense<0.000000e+00> : vector<128x16xf32>
    %88 = tpu.matmul %85, %87, %cst_35 {dimension_numbers = #tpu.dot_dimension_numbers<[1], [0], [0], [1], [0, 0, 1, 1], [], []>} : vector<128x16xbf16>, vector<16x16xbf16>, vector<128x16xf32> -> vector<128x16xf32>
    %89 = arith.addf %84, %88 : vector<128x16xf32>
    %90 = vector.extract_strided_slice %65 {offsets = [16, 0], sizes = [128, 16], strides = [1, 1]} : vector<160x16xbf16> to vector<128x16xbf16>
    %c5 = arith.constant 5 : index
    %c0_36 = arith.constant 0 : index
    %c0_37 = arith.constant 0 : index
    %91 = vector.load %arg4[%c5, %c0_36, %c0_37] : memref<9x16x16xbf16, #tpu.memory_space<vmem>>, vector<1x16x16xbf16>
    %92 = vector.shape_cast %91 : vector<1x16x16xbf16> to vector<16x16xbf16>
    %cst_38 = arith.constant dense<0.000000e+00> : vector<128x16xf32>
    %93 = tpu.matmul %90, %92, %cst_38 {dimension_numbers = #tpu.dot_dimension_numbers<[1], [0], [0], [1], [0, 0, 1, 1], [], []>} : vector<128x16xbf16>, vector<16x16xbf16>, vector<128x16xf32> -> vector<128x16xf32>
    %94 = arith.addf %89, %93 : vector<128x16xf32>
    %95 = vector.extract_strided_slice %63 {offsets = [32, 0], sizes = [128, 16], strides = [1, 1]} : vector<160x16xbf16> to vector<128x16xbf16>
    %c6 = arith.constant 6 : index
    %c0_39 = arith.constant 0 : index
    %c0_40 = arith.constant 0 : index
    %96 = vector.load %arg4[%c6, %c0_39, %c0_40] : memref<9x16x16xbf16, #tpu.memory_space<vmem>>, vector<1x16x16xbf16>
    %97 = vector.shape_cast %96 : vector<1x16x16xbf16> to vector<16x16xbf16>
    %cst_41 = arith.constant dense<0.000000e+00> : vector<128x16xf32>
    %98 = tpu.matmul %95, %97, %cst_41 {dimension_numbers = #tpu.dot_dimension_numbers<[1], [0], [0], [1], [0, 0, 1, 1], [], []>} : vector<128x16xbf16>, vector<16x16xbf16>, vector<128x16xf32> -> vector<128x16xf32>
    %99 = arith.addf %94, %98 : vector<128x16xf32>
    %100 = vector.extract_strided_slice %64 {offsets = [32, 0], sizes = [128, 16], strides = [1, 1]} : vector<160x16xbf16> to vector<128x16xbf16>
    %c7 = arith.constant 7 : index
    %c0_42 = arith.constant 0 : index
    %c0_43 = arith.constant 0 : index
    %101 = vector.load %arg4[%c7, %c0_42, %c0_43] : memref<9x16x16xbf16, #tpu.memory_space<vmem>>, vector<1x16x16xbf16>
    %102 = vector.shape_cast %101 : vector<1x16x16xbf16> to vector<16x16xbf16>
    %cst_44 = arith.constant dense<0.000000e+00> : vector<128x16xf32>
    %103 = tpu.matmul %100, %102, %cst_44 {dimension_numbers = #tpu.dot_dimension_numbers<[1], [0], [0], [1], [0, 0, 1, 1], [], []>} : vector<128x16xbf16>, vector<16x16xbf16>, vector<128x16xf32> -> vector<128x16xf32>
    %104 = arith.addf %99, %103 : vector<128x16xf32>
    %105 = vector.extract_strided_slice %65 {offsets = [32, 0], sizes = [128, 16], strides = [1, 1]} : vector<160x16xbf16> to vector<128x16xbf16>
    %c8 = arith.constant 8 : index
    %c0_45 = arith.constant 0 : index
    %c0_46 = arith.constant 0 : index
    %106 = vector.load %arg4[%c8, %c0_45, %c0_46] : memref<9x16x16xbf16, #tpu.memory_space<vmem>>, vector<1x16x16xbf16>
    %107 = vector.shape_cast %106 : vector<1x16x16xbf16> to vector<16x16xbf16>
    %cst_47 = arith.constant dense<0.000000e+00> : vector<128x16xf32>
    %108 = tpu.matmul %105, %107, %cst_47 {dimension_numbers = #tpu.dot_dimension_numbers<[1], [0], [0], [1], [0, 0, 1, 1], [], []>} : vector<128x16xbf16>, vector<16x16xbf16>, vector<128x16xf32> -> vector<128x16xf32>
    %109 = arith.addf %104, %108 : vector<128x16xf32>
    %c0_48 = arith.constant 0 : index
    %c0_49 = arith.constant 0 : index
    %110 = vector.load %arg5[%c0_48, %c0_49] : memref<1x16xf32, #tpu.memory_space<vmem>>, vector<1x16xf32>
    %111 = vector.broadcast %110 : vector<1x16xf32> to vector<128x16xf32>
    %112 = arith.addf %109, %111 : vector<128x16xf32>
    %c0_50 = arith.constant 0 : index
    %c0_51 = arith.constant 0 : index
    %c0_52 = arith.constant 0 : index
    %113 = vector.load %arg8[%c0_50, %c0_51, %c0_52] : memref<1x128x16xbf16, #tpu.memory_space<vmem>>, vector<1x128x16xbf16>
    %114 = vector.shape_cast %113 : vector<1x128x16xbf16> to vector<128x16xbf16>
    %115 = arith.extf %114 : vector<128x16xbf16> to vector<128x16xf32>
    %116 = arith.addf %112, %115 : vector<128x16xf32>
    %cst_53 = arith.constant 1.000000e+00 : f32
    %117 = vector.broadcast %cst_53 : f32 to vector<128x16xf32>
    %118 = arith.mulf %116, %117 : vector<128x16xf32>
    %c0_54 = arith.constant 0 : index
    %c0_55 = arith.constant 0 : index
    %c0_56 = arith.constant 0 : index
    %119 = vector.load %arg9[%c0_54, %c0_55, %c0_56] : memref<1x128x16xf32, #tpu.memory_space<vmem>>, vector<1x128x16xf32>
    %120 = vector.shape_cast %119 : vector<1x128x16xf32> to vector<128x16xf32>
    %121 = vector.shape_cast %118 : vector<128x16xf32> to vector<1x128x16xf32>
    tpu.vector_store %arg9[%c0_54, %c0_55, %c0_56], %121 {strides = array<i32>} : memref<1x128x16xf32, #tpu.memory_space<vmem>>, vector<1x128x16xf32>,
    return
  }
  func.func @transform_0(%arg0: i32, %arg1: i32, %arg2: i32) -> (i32, i32, i32, i32) {
    %c0_i32 = arith.constant 0 : i32
    %c0_i32_0 = arith.constant 0 : i32
    %c0_i32_1 = arith.constant 0 : i32
    return %arg1, %arg2, %c0_i32, %c0_i32_0 : i32, i32, i32, i32
  }
  func.func @transform_1(%arg0: i32, %arg1: i32, %arg2: i32) -> (i32, i32, i32) {
    %c0_i32 = arith.constant 0 : i32
    %c0_i32_0 = arith.constant 0 : i32
    %c0_i32_1 = arith.constant 0 : i32
    return %c0_i32, %c0_i32_0, %arg0 : i32, i32, i32
  }
  func.func @transform_2(%arg0: i32, %arg1: i32, %arg2: i32) -> (i32, i32) {
    %c0_i32 = arith.constant 0 : i32
    %c0_i32_0 = arith.constant 0 : i32
    return %c0_i32, %arg0 : i32, i32
  }
  func.func @transform_3(%arg0: i32, %arg1: i32, %arg2: i32) -> (i32, i32, i32) {
    %c0_i32 = arith.constant 0 : i32
    %c0_i32_0 = arith.constant 0 : i32
    %c0_i32_1 = arith.constant 0 : i32
    return %arg1, %c0_i32, %c0_i32_0 : i32, i32, i32
  }
  func.func @transform_4(%arg0: i32, %arg1: i32, %arg2: i32) -> (i32, i32, i32) {
    %c0_i32 = arith.constant 0 : i32
    %c0_i32_0 = arith.constant 0 : i32
    %c0_i32_1 = arith.constant 0 : i32
    return %arg1, %c0_i32, %c0_i32_0 : i32, i32, i32
  }
  func.func @transform_5(%arg0: i32, %arg1: i32, %arg2: i32) -> (i32, i32, i32) {
    %c0_i32 = arith.constant 0 : i32
    return %arg1, %arg2, %arg0 : i32, i32, i32
  }
  func.func @transform_6(%arg0: i32, %arg1: i32, %arg2: i32) -> (i32, i32, i32) {
    %c0_i32 = arith.constant 0 : i32
    return %arg1, %arg2, %arg0 : i32, i32, i32
  }
}

</mosaic_0001>

<bundles_post_ra>
// kernel: squeeze.4
= control target key start
LH: loop header
LB: loop body
LE: loop exit
PB: predicated region body
PF: predicated region fallthrough
CT: control target
= control target key end

     0   :  { %s43_s8 = smov 122   ;;  %vm7_vm0 = vcmask 15360   ;;  %s44_s9 = smov 124   ;;  %s64_s0 = inlined_call_operand.vmem [shape: f32[2,8], index: 0, kind: input, shape index: {}]   ;;  %s65_s1 = inlined_call_operand.vmem [shape: f32[2,4,2], index: 1, kind: output, shape index: {}]  }
   0x1   :  { %v4_v0 = vld [vmem:[%s64_s0] sm:$0x3]  ;;  %s42_s0 = smov 126  }
   0x2   :  { %5 = vst [vmem:[#allocation1] sm:$0x3] %v4_v0 }
   0x9   :  { %v9_v1 = vld [vmem:[#allocation1] sm:$0x3]  }
   0xa   :  { %v21_v2 = vld [vmem:[#allocation1] sm:$0x3]   ;;  %10 = vrot.lane.b32.xlu0 %v9_v1, %s42_s0 }
   0xb   :  { %22 = vrot.lane.b32.xlu1 %v21_v2, %s43_s8  ;;  %v6_v3 = vld [vmem:[#allocation1] sm:$0x3]  }
   0xc   :  { %v15_v4 = vld [vmem:[#allocation1] sm:$0x3]   ;;  %8 = vst.msk [vmem:[#allocation0] ss:$8 sm:$0x3] %vm7_vm0, %v6_v3  }
   0xe   :  { %16 = vrot.lane.b32.xlu0 %v15_v4, %s44_s9 }
  0x7c   :  { %v11_v5 = vpop.permute.xlu0 %10  }
  0x7d   :  { %v23_v6 = vpop.permute.xlu1 %22   ;;  %14 = vst.msk [vmem:[#allocation0 + $0x1] ss:$8 sm:$0x3] %vm7_vm0, %v11_v5  }
  0x7e   :  { %26 = vst.msk [vmem:[#allocation0 + $0x3] ss:$8 sm:$0x3] %vm7_vm0, %v23_v6  }
  0x80   :  { %v17_v7 = vpop.permute.xlu0 %16  }
  0x81   :  { %20 = vst.msk [vmem:[#allocation0 + $0x2] ss:$8 sm:$0x3] %vm7_vm0, %v17_v7  }
  0x88   :  { %v30_v8 = vld [vmem:[#allocation0] sm:$0xf]  ;;  %v34_v9 = vld [vmem:[#allocation0 + $0x8] sm:$0xf] }
  0x89   :  { %32 = vst [vmem:[%s65_s1] sm:$0xf] %v30_v8  ;;  %38 = vst [vmem:[%s65_s1 + $0x4] sm:$0xf] %v34_v9 }

// kernel: resnet_block_2d.4
= control target key start
LH: loop header
LB: loop body
LE: loop exit
PB: predicated region body
PF: predicated region fallthrough
CT: control target
= control target key end

     0   :  { %s921_s15 = smov 0   ;;  %s923_s16 = smov 0   ;;  %s1086_s0 = inlined_call_operand.vmem [shape: f32[2,256,8], index: 0, kind: input, shape index: {}]   ;;  %s1087_s1 = inlined_call_operand.vmem [shape: bf16[8,16], index: 1, kind: input, shape index: {}]   ;;  %s1088_s2 = inlined_call_operand.vmem [shape: f32[1,16], index: 2, kind: input, shape index: {}]   ;;  %s1089_s3 = inlined_call_operand.vmem [shape: bf16[2,256,16], index: 3, kind: output, shape index: {0}]   ;;  %s1090_s4 = inlined_call_operand.vmem [shape: f32[2,2,2,8], index: 4, kind: output, shape index: {1}]  }
   0x1   :  { %s925_s17 = smov 0   ;;  %s927_s18 = smov 0  }
   0x2   :  { %s929_s19 = smov 0  }
   0x3 LB: > { %s24_s20 = sadd.s32 1, %s886_s17  ;;  %s27_s21 = sadd.s32 1, %s890_s18  ;;  %s894_s19 = sphi %s929_s19, %s15_s19   ;;  %s890_s18 = sphi %s927_s18, %s1094_s18   ;;  %s886_s17 = sphi %s925_s17, %s1093_s17   ;;  %s882_s16 = sphi %s923_s16, %s1092_s16   ;;  %s878_s15 = sphi %s921_s15, %s1091_s15  }
   0x4   : > { %p25_p0 = scmp.ge.s32.totalorder %s24_s20, 2  ;;  %p733_p1 = scmp.ge.s32.totalorder %s894_s19, 1 }
   0x5   : > { %p188_p2 = scmp.lt.s32.totalorder %s894_s19, 5 }
   0x6   : > { %s1096_s20 = smov (%p25_p0, %s24_s20), 0  ;;  %s1098_s21 = smov (!%p25_p0, %s27_s21), %s890_s18 }
   0x7   : > { %p189_p3 = pnand %p733_p1, %p188_p2  ;;  %p29_p4 = scmp.ge.s32.totalorder %s1098_s21, 2 }
   0x8   : > { %v378_v0 = vld [vmem:[%s1087_s1] sm:$0xf] (!%p189_p3)  ;;  %vm410_vm0 = vcmask (!%p189_p3), 1043456   ;;  %s734_s24 = sshll.u32 (!%p189_p3), %s878_s15, 4  ;;  %p231_p5 = scmp.lt.s32.totalorder (!%p189_p3), %s882_s16, 1  ;;  %vm275_vm1 = vcmask (!%p189_p3), 64512  }
   0x9   : > { %s1100_s21 = smov (%p29_p4, %s1098_s21), 0  ;;  %192 = sbr.rel (%p189_p3) target bundleno = 260 (0x104), region = 32 }
   0xa   : > { %814 = vmatprep.subr.msk.bf16.mxu0 (!%p189_p3), %vm410_vm0, %v378_v0  ;;  %815 = vmatprep.subr.msk.bf16.mxu1 (!%p189_p3), %vm410_vm0, %v378_v0  ;;  %v412_v1 = vsel (!%p189_p3), %vm410_vm0, %v378_v0, 0  ;;  %p233_p6 = scmp.lt.s32.totalorder (!%p189_p3), %s734_s24, 31  ;;  %p252_p7 = scmp.lt.s32.totalorder (!%p189_p3), %s878_s15, 1  ;;  %vm366_vm2 = vcmask (!%p189_p3), 1040384   ;;  %vm368_vm3 = vcmask (!%p189_p3), 58368   ;;  %vm575_vm4 = vcmask (!%p189_p3), 125952  }
   0xb   : > { %795 = vmatpush3.bf16.msra.mxu0 (!%p189_p3), %v412_v1  ;;  %813 = vmatpush3.bf16.msra.mxu1 (!%p189_p3), %v412_v1 }
  0x10   : > { %s1102_s16 = smov (!%p231_p5, %s882_s16), 1  ;;  %s1104_s24 = smov (!%p233_p6, %s734_s24), 31 }
  0x11   : > { %s735_s25 = sshll.u32 %s1102_s16, 5  ;;  %s1106_s15 = smov (!%p252_p7, %s878_s15), 1 }
  0x12   : > { %s960_s26 = sadd.s32 %s735_s25, %s1104_s24  ;;  %s740_s5 = sshll.u32 %s1102_s16, 1 }
  0x13   : > { %s736_s27 = sshll.u32 %s960_s26, 3  ;;  %s255_s6 = sadd.s32 %s740_s5, %s1106_s15 }
  0x14   : > { %s966_s30 = scalar_lea.vmem %s1086_s0, %s736_s27  ;;  %s741_s7 = sshll.u32 %s255_s6, 1 }
  0x15   : > { %v259_v2 = vld [vmem:[%s966_s30] sm:$0xff]  ;;  %v260_v3 = vld [vmem:[%s966_s30 + $0x8] sm:$0xff]  ;;  %v261_v4 = vld [vmem:[%s966_s30 + $0x10] sm:$0xff]  ;;  %s257_s10 = scalar_lea.vmem %s1090_s4, %s741_s7  ;;  %s739_s13 = sshll.u32 %s960_s26, 2 }
  0x16   : > { %v276_v5 = vsel %vm275_vm1, %v259_v2, 0.0  ;;  %v277_v6 = vsel %vm275_vm1, %v260_v3, 0.0  ;;  %v279_v7 = vsel %vm275_vm1, %v261_v4, 0.0  ;;  %v313_v8 = vmul.f32 %v259_v2, %v259_v2  ;;  %v262_v13 = vld [vmem:[%s966_s30 + $0x18] sm:$0xff]  ;;  %v263_v19 = vld [vmem:[%s966_s30 + $0x20] sm:$0xff]  ;;  %v264_v22 = vld [vmem:[%s966_s30 + $0x28] sm:$0xff]  ;;  %s1037_s16 = scalar_lea.vmem %s1089_s3, %s739_s13 }
  0x17   : > { %v278_v9 = vadd.f32 %v277_v6, %v276_v5  ;;  %v314_v10 = vmul.f32 %v260_v3, %v260_v3  ;;  %v315_v11 = vmul.f32 %v261_v4, %v261_v4  ;;  %v370_v12 = vpack.c.bf16 %v260_v3, %v259_v2  ;;  %v265_v29 = vld [vmem:[%s966_s30 + $0x30] sm:$0xff]  ;;  %v267_v30 = vld [vmem:[%s966_s30 + $0x40] sm:$0xff]  ;;  %v268_v31 = vld [vmem:[%s966_s30 + $0x48] sm:$0xff] }
  0x18   : > { %v329_v14 = vsel %vm275_vm1, %v313_v8, 0.0  ;;  %v281_v15 = vsel %vm275_vm1, %v262_v13, 0.0  ;;  %v283_v21 = vsel %vm275_vm1, %v263_v19, 0.0  ;;  %v316_v24 = vmul.f32 %v262_v13, %v262_v13  ;;  %v266_v33 = vld [vmem:[%s966_s30 + $0x38] sm:$0xff]  ;;  %v269_v38 = vld [vmem:[%s966_s30 + $0x50] sm:$0xff]  ;;  %v271_v50 = vld [vmem:[%s966_s30 + $0x60] sm:$0xff] }
  0x19   : > { %v280_v16 = vadd.f32 %v279_v7, %v278_v9  ;;  %v330_v17 = vsel %vm275_vm1, %v314_v10, 0.0  ;;  %v332_v18 = vsel %vm275_vm1, %v315_v11, 0.0  ;;  %796 = vmatprep.mubr.msk.bf16.mxu0 %vm275_vm1, %v370_v12  ;;  %v317_v25 = vmul.f32 %v263_v19, %v263_v19  ;;  %v270_v42 = vld [vmem:[%s966_s30 + $0x58] sm:$0xff]  ;;  %v272_v51 = vld [vmem:[%s966_s30 + $0x68] sm:$0xff]  ;;  %v273_v0 = vld [vmem:[%s966_s30 + $0x70] sm:$0xff] }
  0x1a   : > { %v331_v20 = vadd.f32 %v330_v17, %v329_v14  ;;  %v285_v27 = vsel %vm275_vm1, %v264_v22, 0.0  ;;  %v318_v28 = vmul.f32 %v264_v22, %v264_v22  ;;  %v287_v34 = vsel %vm275_vm1, %v265_v29, 0.0  ;;  %v274_v1 = vld [vmem:[%s966_s30 + $0x78] sm:$0xff] }
  0x1b   : > { %v282_v23 = vadd.f32 %v281_v15, %v280_v16  ;;  %v319_v35 = vmul.f32 %v265_v29, %v265_v29  ;;  %v334_v36 = vsel %vm275_vm1, %v316_v24, 0.0  ;;  %v336_v37 = vsel %vm275_vm1, %v317_v25, 0.0 }
  0x1c   : > { %v333_v26 = vadd.f32 %v332_v18, %v331_v20  ;;  %v289_v40 = vsel %vm275_vm1, %v266_v33, 0.0  ;;  %v320_v43 = vmul.f32 %v266_v33, %v266_v33  ;;  %v338_v44 = vsel %vm275_vm1, %v318_v28, 0.0 }
  0x1d   : > { %v284_v32 = vadd.f32 %v283_v21, %v282_v23  ;;  %v374_v45 = vpack.c.bf16 %v268_v31, %v267_v30  ;;  %v371_v46 = vpack.c.bf16 %v262_v13, %v261_v4  ;;  %v291_v48 = vsel %vm275_vm1, %v267_v30, 0.0 }
  0x1e   : > { %v335_v41 = vadd.f32 %v334_v36, %v333_v26  ;;  %v321_v52 = vmul.f32 %v267_v30, %v267_v30  ;;  %v340_v53 = vsel %vm275_vm1, %v319_v35, 0.0  ;;  %v375_v54 = vpack.c.bf16 %v270_v42, %v269_v38 }
  0x1f   : > { %v286_v39 = vadd.f32 %v285_v27, %v284_v32  ;;  %804 = vmatprep.mubr.msk.bf16.mxu1 %vm275_vm1, %v374_v45  ;;  %797 = vmatmul.mubr.msk.bf16.vlgmr.msra.gmra.mrb[0].mxu0 %vm275_vm1, %v371_v46  ;;  %v372_v55 = vpack.c.bf16 %v264_v22, %v263_v19  ;;  %v293_v58 = vsel %vm275_vm1, %v268_v31, 0.0  ;;  %v322_v59 = vmul.f32 %v268_v31, %v268_v31 }
  0x20   : > { %v337_v49 = vadd.f32 %v336_v37, %v335_v41  ;;  %v342_v60 = vsel %vm275_vm1, %v320_v43, 0.0  ;;  %805 = vmatmul.mubr.msk.bf16.vlgmr.msra.gmra.mrb[0].mxu1 %vm275_vm1, %v375_v54  ;;  %v376_v61 = vpack.c.bf16 %v272_v51, %v271_v50  ;;  %v295_v2 = vsel %vm275_vm1, %v269_v38, 0.0 }
  0x21   : > { %v288_v47 = vadd.f32 %v287_v34, %v286_v39  ;;  %800 = vmatprep.mubr.msk.bf16.mxu0 %vm275_vm1, %v372_v55  ;;  %v323_v3 = vmul.f32 %v269_v38, %v269_v38  ;;  %v344_v4 = vsel %vm275_vm1, %v321_v52, 0.0  ;;  %v373_v5 = vpack.c.bf16 %v266_v33, %v265_v29 }
  0x22   : > { %v339_v57 = vadd.f32 %v338_v44, %v337_v49  ;;  %808 = vmatprep.mubr.msk.bf16.mxu1 %vm275_vm1, %v376_v61  ;;  %v346_v8 = vsel %vm275_vm1, %v322_v59, 0.0  ;;  %v297_v9 = vsel %vm275_vm1, %v270_v42, 0.0  ;;  %v324_v10 = vmul.f32 %v270_v42, %v270_v42 }
  0x23   : > { %v290_v56 = vadd.f32 %v289_v40, %v288_v47  ;;  %v377_v11 = vpack.c.bf16 %v274_v1, %v273_v0  ;;  %v348_v14 = vsel %vm275_vm1, %v323_v3, 0.0  ;;  %v299_v15 = vsel %vm275_vm1, %v271_v50, 0.0 }
  0x24   : > { %v341_v63 = vadd.f32 %v340_v53, %v339_v57  ;;  %v325_v16 = vmul.f32 %v271_v50, %v271_v50  ;;  %v350_v19 = vsel %vm275_vm1, %v324_v10, 0.0  ;;  %v301_v20 = vsel %vm275_vm1, %v272_v51, 0.0  ;;  %v742_v53 = vld [vmem:[%s1088_s2] ss:$0 sm:$0xff] }
  0x25   : > { %v292_v62 = vadd.f32 %v291_v48, %v290_v56  ;;  %v326_v21 = vmul.f32 %v272_v51, %v272_v51  ;;  %v303_v25 = vsel %vm275_vm1, %v273_v0, 0.0  ;;  %v327_v26 = vmul.f32 %v273_v0, %v273_v0 }
  0x26   : > { %v343_v7 = vadd.f32 %v342_v60, %v341_v63  ;;  %v352_v24 = vsel %vm275_vm1, %v325_v16, 0.0  ;;  %v305_v30 = vsel %vm275_vm1, %v274_v1, 0.0  ;;  %v328_v31 = vmul.f32 %v274_v1, %v274_v1 }
  0x27   : > { %v294_v6 = vadd.f32 %v293_v58, %v292_v62  ;;  %801 = vmatmul.mubr.msk.bf16.gmra.mrb[4].mxu0 %vm275_vm1, %v373_v5  ;;  %v354_v29 = vsel %vm275_vm1, %v326_v21, 0.0  ;;  %v356_v34 = vsel %vm275_vm1, %v327_v26, 0.0 }
  0x28   : > { %v345_v13 = vadd.f32 %v344_v4, %v343_v7  ;;  %809 = vmatmul.mubr.msk.bf16.gmra.mrb[4].mxu1 %vm275_vm1, %v377_v11  ;;  %v358_v37 = vsel %vm275_vm1, %v328_v31, 0.0 }
  0x29   : > { %v296_v12 = vadd.f32 %v295_v2, %v294_v6 }
  0x2a   : > { %v347_v17 = vadd.f32 %v346_v8, %v345_v13 }
  0x2b   : > { %v298_v18 = vadd.f32 %v297_v9, %v296_v12 }
  0x2c   : > { %v349_v22 = vadd.f32 %v348_v14, %v347_v17 }
  0x2d   : > { %v300_v23 = vadd.f32 %v299_v15, %v298_v18 }
  0x2e   : > { %v351_v27 = vadd.f32 %v350_v19, %v349_v22 }
  0x2f   : > { %v302_v28 = vadd.f32 %v301_v20, %v300_v23 }
  0x30   : > { %v353_v32 = vadd.f32 %v352_v24, %v351_v27 }
  0x31   : > { %v304_v33 = vadd.f32 %v303_v25, %v302_v28 }
  0x32   : > { %v355_v35 = vadd.f32 %v354_v29, %v353_v32 }
  0x33   : > { %v306_v36 = vadd.f32 %v305_v30, %v304_v33 }
  0x34   : > { %v357_v39 = vadd.f32 %v356_v34, %v355_v35 }
  0x35   : > { %v307_v38 = vrot.slane %v306_v36, 4 }
  0x36   : > { %v359_v41 = vadd.f32 %v358_v37, %v357_v39 }
  0x37   : > { %v308_v40 = vadd.f32 %v307_v38, %v306_v36 }
  0x38   : > { %v360_v43 = vrot.slane %v359_v41, 4 }
  0x39   : > { %v309_v42 = vrot.slane %v308_v40, 2 }
  0x3a   : > { %v361_v45 = vadd.f32 %v360_v43, %v359_v41 }
  0x3b   : > { %v310_v44 = vadd.f32 %v309_v42, %v308_v40 }
  0x3c   : > { %v362_v47 = vrot.slane %v361_v45, 2 }
  0x3d   : > { %v311_v46 = vrot.slane %v310_v44, 1 }
  0x3e   : > { %v363_v48 = vadd.f32 %v362_v47, %v361_v45 }
  0x3f   : > { %v312_v49 = vadd.f32 %v311_v46, %v310_v44 }
  0x40   : > { %v364_v50 = vrot.slane %v363_v48, 1 }
  0x42   : > { %v365_v51 = vadd.f32 %v364_v50, %v363_v48 }
  0x44   : > { %v367_v52 = vsel %vm366_vm2, %v312_v49, %v365_v51 }
  0x45   : > { %369 = vst.msk [vmem:[%s257_s10] sm:$0x3] %vm368_vm3, %v367_v52 }
  0xf2   : > { %v798_v54 = vpop.f32.mrb[0].mxu0 }
  0xf3   : > { %v457_v55 = vadd.f32 %v798_v54, %v742_v53  ;;  %v448_v56 = vpop.f32.mrb[1].mxu0  ;;  %v806_v57 = vpop.f32.mrb[0].mxu1 }
  0xf4   : > { %v449_v58 = vadd.f32 %v742_v53, %v448_v56  ;;  %v799_v59 = vpop.f32.mrb[2].mxu0  ;;  %v489_v61 = vadd.f32 %v806_v57, %v742_v53  ;;  %v480_v62 = vpop.f32.mrb[1].mxu1 }
  0xf5   : > { %v771_v60 = vpack.c.bf16 %v457_v55, %v457_v55  ;;  %v460_v63 = vadd.f32 %v799_v59, %v742_v53  ;;  %v451_v0 = vpop.f32.mrb[3].mxu0  ;;  %v481_v2 = vadd.f32 %v742_v53, %v480_v62  ;;  %v807_v3 = vpop.f32.mrb[2].mxu1 }
  0xf6   : > { %v769_v1 = vpack.c.bf16 %v449_v58, %v449_v58  ;;  %v452_v4 = vadd.f32 %v742_v53, %v451_v0  ;;  %v779_v5 = vpack.c.bf16 %v489_v61, %v489_v61  ;;  %v492_v7 = vadd.f32 %v807_v3, %v742_v53  ;;  %v483_v8 = vpop.f32.mrb[3].mxu1 }
  0xf7   : > { %578 = vst.msk [vmem:[%s1037_s16 + $0x8] sm:$0xf] %vm575_vm4, %v771_v60  ;;  %v772_v6 = vpack.c.bf16 %v460_v63, %v460_v63  ;;  %v777_v9 = vpack.c.bf16 %v481_v2, %v481_v2  ;;  %v484_v11 = vadd.f32 %v742_v53, %v483_v8 }
  0xf8   : > { %576 = vst.msk [vmem:[%s1037_s16] sm:$0xf] %vm575_vm4, %v769_v1  ;;  %v770_v10 = vpack.c.bf16 %v452_v4, %v452_v4  ;;  %586 = vst.msk [vmem:[%s1037_s16 + $0x28] sm:$0xf] %vm575_vm4, %v779_v5  ;;  %v780_v12 = vpack.c.bf16 %v492_v7, %v492_v7 }
  0xf9   : > { %579 = vst.msk [vmem:[%s1037_s16 + $0xc] sm:$0xf] %vm575_vm4, %v772_v6  ;;  %584 = vst.msk [vmem:[%s1037_s16 + $0x20] sm:$0xf] %vm575_vm4, %v777_v9  ;;  %v778_v13 = vpack.c.bf16 %v484_v11, %v484_v11 }
  0xfa   : > { %577 = vst.msk [vmem:[%s1037_s16 + $0x4] sm:$0xf] %vm575_vm4, %v770_v10  ;;  %v802_v14 = vpop.f32.mrb[4].mxu0  ;;  %587 = vst.msk [vmem:[%s1037_s16 + $0x2c] sm:$0xf] %vm575_vm4, %v780_v12 }
  0xfb   : > { %v473_v15 = vadd.f32 %v802_v14, %v742_v53  ;;  %v464_v16 = vpop.f32.mrb[5].mxu0  ;;  %585 = vst.msk [vmem:[%s1037_s16 + $0x24] sm:$0xf] %vm575_vm4, %v778_v13  ;;  %v810_v17 = vpop.f32.mrb[4].mxu1 }
  0xfc   : > { %v465_v18 = vadd.f32 %v742_v53, %v464_v16  ;;  %v803_v19 = vpop.f32.mrb[6].mxu0  ;;  %v505_v21 = vadd.f32 %v810_v17, %v742_v53  ;;  %v496_v22 = vpop.f32.mrb[5].mxu1 }
  0xfd   : > { %v775_v20 = vpack.c.bf16 %v473_v15, %v473_v15  ;;  %v476_v23 = vadd.f32 %v803_v19, %v742_v53  ;;  %v467_v24 = vpop.f32.mrb[7].mxu0  ;;  %v497_v26 = vadd.f32 %v742_v53, %v496_v22  ;;  %v811_v27 = vpop.f32.mrb[6].mxu1 }
  0xfe   : > { %v773_v25 = vpack.c.bf16 %v465_v18, %v465_v18  ;;  %v468_v28 = vadd.f32 %v742_v53, %v467_v24  ;;  %v783_v29 = vpack.c.bf16 %v505_v21, %v505_v21  ;;  %v508_v31 = vadd.f32 %v811_v27, %v742_v53  ;;  %v499_v32 = vpop.f32.mrb[7].mxu1 }
  0xff   : > { %582 = vst.msk [vmem:[%s1037_s16 + $0x18] sm:$0xf] %vm575_vm4, %v775_v20  ;;  %v776_v30 = vpack.c.bf16 %v476_v23, %v476_v23  ;;  %v781_v33 = vpack.c.bf16 %v497_v26, %v497_v26  ;;  %v500_v35 = vadd.f32 %v742_v53, %v499_v32 }
 0x100   : > { %580 = vst.msk [vmem:[%s1037_s16 + $0x10] sm:$0xf] %vm575_vm4, %v773_v25  ;;  %v774_v34 = vpack.c.bf16 %v468_v28, %v468_v28  ;;  %590 = vst.msk [vmem:[%s1037_s16 + $0x38] sm:$0xf] %vm575_vm4, %v783_v29  ;;  %v784_v36 = vpack.c.bf16 %v508_v31, %v508_v31 }
 0x101   : > { %583 = vst.msk [vmem:[%s1037_s16 + $0x1c] sm:$0xf] %vm575_vm4, %v776_v30  ;;  %588 = vst.msk [vmem:[%s1037_s16 + $0x30] sm:$0xf] %vm575_vm4, %v781_v33  ;;  %v782_v37 = vpack.c.bf16 %v500_v35, %v500_v35 }
 0x102   : > { %581 = vst.msk [vmem:[%s1037_s16 + $0x14] sm:$0xf] %vm575_vm4, %v774_v34  ;;  %591 = vst.msk [vmem:[%s1037_s16 + $0x3c] sm:$0xf] %vm575_vm4, %v784_v36 }
 0x103   : > { %589 = vst.msk [vmem:[%s1037_s16 + $0x34] sm:$0xf] %vm575_vm4, %v782_v37 }
 0x104 PF: > { %s15_s19 = sadd.s32 1, %s894_s19   ;;  %s1091_s15 = smov %s886_s17 }
 0x105   : > { %p12_p8 = scmp.ge.s32.totalorder %s15_s19, 6   ;;  %s1092_s16 = smov %s890_s18 }
 0x106   : > { %s1093_s17 = smov %s1096_s20  ;;  %s1094_s18 = smov %s1100_s21 }
 0x107   :  { %14 = sbr.rel (!%p12_p8) target bundleno = 3 (0x3), region = 74 }

// kernel: squeeze.6
= control target key start
LH: loop header
LB: loop body
LE: loop exit
PB: predicated region body
PF: predicated region fallthrough
CT: control target
= control target key end

     0   :  { %s43_s8 = smov 116   ;;  %vm7_vm0 = vcmask 31744   ;;  %s44_s9 = smov 120   ;;  %s64_s0 = inlined_call_operand.vmem [shape: f32[2,16], index: 0, kind: input, shape index: {}]   ;;  %s65_s1 = inlined_call_operand.vmem [shape: f32[2,4,4], index: 1, kind: output, shape index: {}]  }
   0x1   :  { %v4_v0 = vld [vmem:[%s64_s0] sm:$0x3]  ;;  %s42_s0 = smov 124  }
   0x2   :  { %5 = vst [vmem:[#allocation1] sm:$0x3] %v4_v0 }
   0x9   :  { %v9_v1 = vld [vmem:[#allocation1] sm:$0x3]  }
   0xa   :  { %v21_v2 = vld [vmem:[#allocation1] sm:$0x3]   ;;  %10 = vrot.lane.b32.xlu0 %v9_v1, %s42_s0 }
   0xb   :  { %22 = vrot.lane.b32.xlu1 %v21_v2, %s43_s8  ;;  %v6_v3 = vld [vmem:[#allocation1] sm:$0x3]  }
   0xc   :  { %v15_v4 = vld [vmem:[#allocation1] sm:$0x3]   ;;  %8 = vst.msk [vmem:[#allocation0] ss:$8 sm:$0x3] %vm7_vm0, %v6_v3  }
   0xe   :  { %16 = vrot.lane.b32.xlu0 %v15_v4, %s44_s9 }
  0x7c   :  { %v11_v5 = vpop.permute.xlu0 %10  }
  0x7d   :  { %v23_v6 = vpop.permute.xlu1 %22   ;;  %14 = vst.msk [vmem:[#allocation0 + $0x1] ss:$8 sm:$0x3] %vm7_vm0, %v11_v5  }
  0x7e   :  { %26 = vst.msk [vmem:[#allocation0 + $0x3] ss:$8 sm:$0x3] %vm7_vm0, %v23_v6  }
  0x80   :  { %v17_v7 = vpop.permute.xlu0 %16  }
  0x81   :  { %20 = vst.msk [vmem:[#allocation0 + $0x2] ss:$8 sm:$0x3] %vm7_vm0, %v17_v7  }
  0x88   :  { %v30_v8 = vld [vmem:[#allocation0] sm:$0xf]  ;;  %v34_v9 = vld [vmem:[#allocation0 + $0x8] sm:$0xf] }
  0x89   :  { %32 = vst [vmem:[%s65_s1] sm:$0xf] %v30_v8  ;;  %38 = vst [vmem:[%s65_s1 + $0x4] sm:$0xf] %v34_v9 }

// kernel: resnet_block_2d.5
= control target key start
LH: loop header
LB: loop body
LE: loop exit
PB: predicated region body
PF: predicated region fallthrough
CT: control target
= control target key end

     0   :  { %s550_s21 = smov 0   ;;  %s593_s0 = inlined_call_operand.vmem [shape: f32[2,1,32], index: 0, kind: input, shape index: {}]   ;;  %s594_s1 = inlined_call_operand.vmem [shape: bf16[32,16], index: 1, kind: input, shape index: {}]   ;;  %s595_s2 = inlined_call_operand.vmem [shape: bf16[32,16], index: 2, kind: input, shape index: {}]   ;;  %s596_s3 = inlined_call_operand.vmem [shape: f32[1,16], index: 3, kind: input, shape index: {}]   ;;  %s597_s4 = inlined_call_operand.vmem [shape: f32[1,16], index: 4, kind: input, shape index: {}]   ;;  %s598_s5 = inlined_call_operand.vmem [shape: f32[2,1,16], index: 5, kind: output, shape index: {0}]   ;;  %s599_s6 = inlined_call_operand.vmem [shape: f32[2,1,16], index: 6, kind: output, shape index: {1}]  }
   0x1 LB: > { %s451_s22 = sadd.s32 4294967295, %s511_s21   ;;  %p455_p0 = scmp.ge.s32.totalorder %s511_s21, 1  ;;  %s511_s21 = sphi %s550_s21, %s17_s21  }
   0x2   : > { %p213_p1 = scmp.lt.s32.totalorder %s511_s21, 3 }
   0x4   : > { %p214_p2 = pnand %p455_p0, %p213_p1 }
   0x5   : > { %v497_v0 = vld [vmem:[%s594_s1] sm:$0xff] (!%p214_p2)   ;;  %v513_v1 = vmov (!%p214_p2), 0.0   ;;  %v499_v3 = vld [vmem:[%s594_s1 + $0x8] sm:$0xff] (!%p214_p2)   ;;  %vm514_vm0 = vmmov (!%p214_p2), 0   ;;  %p242_p3 = scmp.lt.s32.totalorder (!%p214_p2), %s451_s22, 1  ;;  %vm278_vm1 = vcmask (!%p214_p2), 261120  }
   0x6   : > { %217 = sbr.rel (%p214_p2) target bundleno = 261 (0x105), region = 40  ;;  %471 = vmatprep.subr.bf16.mxu0 (!%p214_p2), %v513_v1  ;;  %479 = vmatprep.subr.bf16.mxu1 (!%p214_p2), %v513_v1  ;;  %v498_v2 = vld [vmem:[%s595_s2] sm:$0xff] (!%p214_p2)   ;;  %v500_v4 = vld [vmem:[%s595_s2 + $0x8] sm:$0xff] (!%p214_p2)   ;;  %vm322_vm2 = vcmask (!%p214_p2), 122880  }
   0x7   : > { %472 = vmatpush3.bf16.msra.mxu0 (!%p214_p2), %v497_v0  ;;  %475 = vmatprep.mubr.msk.bf16.mxu0 (!%p214_p2), %vm514_vm0, %v513_v1  ;;  %v265_v12 = vld [vmem:[%s596_s3] sm:$0x1] (!%p214_p2) }
   0x8   : > { %480 = vmatpush3.bf16.msra.mxu1 (!%p214_p2), %v498_v2  ;;  %473 = vmatprep.subr.bf16.mxu0 (!%p214_p2), %v513_v1  ;;  %v328_v13 = vld [vmem:[%s597_s4] sm:$0x1] (!%p214_p2) }
   0x9   : > { %481 = vmatprep.subr.bf16.mxu1 (!%p214_p2), %v513_v1  ;;  %483 = vmatprep.mubr.msk.bf16.mxu1 (!%p214_p2), %vm514_vm0, %v513_v1 }
   0xb   : > { %474 = vmatpush3.bf16.msra.mxu0 (!%p214_p2), %v499_v3 }
   0xc   : > { %482 = vmatpush3.bf16.msra.mxu1 (!%p214_p2), %v500_v4 }
   0xd   : > { %s601_s22 = smov (!%p242_p3, %s451_s22), 1 }
   0xe   : > { %s244_s9 = scalar_lea.vmem %s593_s0, %s601_s22  ;;  %s247_s16 = scalar_lea.vmem %s598_s5, %s601_s22 }
   0xf   : > { %v252_v5 = vld [vmem:[%s244_s9] sm:$0x1]  ;;  %s250_s19 = scalar_lea.vmem %s599_s6, %s601_s22 }
  0x10   : > { %v456_v6 = vmul.f32 -1.442695, %v252_v5 }
  0x12   : > { %501 = vpow2.f32 %v456_v6 }
  0x1c   : > { %v502_v7 = vpop.eup %501 }
  0x1d   : > { %v256_v8 = vadd.f32 1.0, %v502_v7 }
  0x1f   : > { %503 = vrcp.f32 %v256_v8 }
  0x29   : > { %v504_v9 = vpop.eup %503 }
  0x2a   : > { %v259_v10 = vmul.f32 %v504_v9, %v252_v5 }
  0x2c   : > { %v260_v11 = vpack.c.bf16 %v259_v10, %v259_v10 }
  0x2e   : > { %476 = vmatmul.mubr.msk.bf16.vlgmr.msra.gmra.mrb[0].mxu0 %vm278_vm1, %v260_v11  ;;  %484 = vmatmul.mubr.msk.bf16.vlgmr.msra.gmra.mrb[0].mxu1 %vm278_vm1, %v260_v11 }
 0x101   : > { %v316_v14 = vpop.f32.mrb[0].mxu0  ;;  %v375_v15 = vpop.f32.mrb[0].mxu1 }
 0x102   : > { %v317_v16 = vadd.f32 %v316_v14, %v265_v12  ;;  %v376_v17 = vadd.f32 %v375_v15, %v328_v13  ;;  %v477_v18 = vpop.f32.mrb[1].mxu0  ;;  %v485_v19 = vpop.f32.mrb[1].mxu1 }
 0x103   : > { %v319_v20 = vpop.f32.mrb[2].mxu0  ;;  %v378_v21 = vpop.f32.mrb[2].mxu1 }
 0x104   : > { %323 = vst.msk [vmem:[%s247_s16] sm:$0x1] %vm322_vm2, %v317_v16  ;;  %381 = vst.msk [vmem:[%s250_s19] sm:$0x1] %vm322_vm2, %v376_v17  ;;  %v478_v22 = vpop.f32.mrb[3].mxu0  ;;  %v486_v23 = vpop.f32.mrb[3].mxu1 }
 0x105 PF: > { %s17_s21 = sadd.s32 1, %s511_s21  }
 0x106   : > { %p14_p4 = scmp.ge.s32.totalorder %s17_s21, 4  }
 0x108   :  { %16 = sbr.rel (!%p14_p4) target bundleno = 1 (0x1), region = 82 }

// kernel: resnet_block_2d.6
= control target key start
LH: loop header
LB: loop body
LE: loop exit
PB: predicated region body
PF: predicated region fallthrough
CT: control target
= control target key end

     0   :  { %s3635_s21 = smov 0   ;;  %s3637_s22 = smov 0   ;;  %s4586_s0 = inlined_call_operand.vmem [shape: bf16[2,2,160,8], index: 0, kind: input, shape index: {}]   ;;  %s4587_s1 = inlined_call_operand.vmem [shape: bf16[9,8,16], index: 1, kind: input, shape index: {}]   ;;  %s4588_s2 = inlined_call_operand.vmem [shape: f32[1,16], index: 2, kind: input, shape index: {}]   ;;  %s4589_s3 = inlined_call_operand.vmem [shape: f32[2,1,8], index: 3, kind: input, shape index: {}]   ;;  %s4590_s4 = inlined_call_operand.vmem [shape: f32[2,1,8], index: 4, kind: input, shape index: {}]   ;;  %s4591_s5 = inlined_call_operand.vmem [shape: bf16[2,256,16], index: 5, kind: output, shape index: {0}]   ;;  %s4592_s6 = inlined_call_operand.vmem [shape: f32[2,2,1,2,16], index: 6, kind: output, shape index: {1}]  }
   0x1   :  { %s3639_s23 = smov 0   ;;  %s3641_s24 = smov 0  }
   0x2   :  { %s3643_s25 = smov 0  }
   0x3 LB: > { %s29_s26 = sadd.s32 1, %s3590_s23  ;;  %s32_s27 = sadd.s32 1, %s3594_s24  ;;  %s3598_s25 = sphi %s3643_s25, %s17_s25   ;;  %s3594_s24 = sphi %s3641_s24, %s4632_s24   ;;  %s3590_s23 = sphi %s3639_s23, %s4631_s23   ;;  %s3586_s22 = sphi %s3637_s22, %s4630_s22   ;;  %s3582_s21 = sphi %s3635_s21, %s4629_s21  }
   0x4   : > { %p30_p0 = scmp.ge.s32.totalorder %s29_s26, 2  ;;  %p2862_p1 = scmp.ge.s32.totalorder %s3598_s25, 1 }
   0x5   : > { %p281_p2 = scmp.lt.s32.totalorder %s3598_s25, 5 }
   0x6   : > { %s4634_s26 = smov (%p30_p0, %s29_s26), 0  ;;  %s4636_s27 = smov (!%p30_p0, %s32_s27), %s3594_s24 }
   0x7   : > { %p282_p3 = pnand %p2862_p1, %p281_p2  ;;  %p34_p4 = scmp.ge.s32.totalorder %s4636_s27, 2 }
   0x8   : > { %v2891_v0 = vld [vmem:[%s4587_s1 + $0x4] sm:$0xf] (!%p282_p3)  ;;  %vm1356_vm0 = vcmask (!%p282_p3), 1043456   ;;  %v3673_v1 = vld [vmem:[%s4587_s1 + $0x10] sm:$0xf] (!%p282_p3)  ;;  %p346_p5 = scmp.lt.s32.totalorder (!%p282_p3), %s3586_s22, 1 }
   0x9   : > { %s4638_s27 = smov (%p34_p4, %s4636_s27), 0  ;;  %285 = sbr.rel (%p282_p3) target bundleno = 454 (0x1c6), region = 40 }
   0xa   : > { %3428 = vmatprep.subr.msk.bf16.mxu1 (!%p282_p3), %vm1356_vm0, %v2891_v0  ;;  %3432 = vmatprep.subr.msk.bf16.mxu0 (!%p282_p3), %vm1356_vm0, %v3673_v1  ;;  %v1358_v2 = vsel (!%p282_p3), %vm1356_vm0, %v2891_v0, 0  ;;  %v3681_v3 = vsel (!%p282_p3), %vm1356_vm0, %v3673_v1, 0  ;;  %p348_p6 = scmp.lt.s32.totalorder (!%p282_p3), %s3582_s21, 1  ;;  %v3690_v4 = vld [vmem:[%s4587_s1] sm:$0xf] (!%p282_p3)  ;;  %p648_p7 = scmp.eq.s32.totalorder (!%p282_p3), %s3582_s21, 0 }
   0xb   : > { %3137 = vmatpush3.bf16.msra.mxu1 (!%p282_p3), %v1358_v2  ;;  %3209 = vmatpush3.bf16.msra.mxu0 (!%p282_p3), %v3681_v3  ;;  %v3695_v5 = vld [vmem:[%s4587_s1 + $0x14] sm:$0xf] (!%p282_p3)  ;;  %vm1331_vm1 = vcmask (!%p282_p3), 64512   ;;  %p692_p8 = scmp.eq.s32.totalorder (!%p282_p3), %s3582_s21, 1 }
   0xc   : > { %3429 = vmatprep.subr.msk.bf16.mxu1 (!%p282_p3), %vm1356_vm0, %v3690_v4  ;;  %3434 = vmatprep.subr.msk.bf16.mxu0 (!%p282_p3), %vm1356_vm0, %v3695_v5 }
  0x10   : > { %s4640_s22 = smov (!%p346_p5, %s3586_s22), 1 }
  0x11   : > { %s3698_s12 = scalar_select %p348_p6, %s3582_s21, 1 }
  0x12   : > { %s3439_s13 = smul.u32 40, %s4640_s22  ;;  %s364_s17 = scalar_lea.vmem %s4589_s3, %s4640_s22 }
  0x13   : > { %s3438_s14 = smul.u32 20, %s3698_s12  ;;  %s367_s8 = scalar_lea.vmem %s4590_s4, %s4640_s22  ;;  %v3719_v6 = vld [vmem:[%s364_s17] ss:$0 sm:$0xff] }
  0x14   : > { %v3725_v15 = vld [vmem:[%s367_s8] ss:$0 sm:$0xff]  ;;  %s3806_s9 = scalar_select %p648_p7, 1, 0 }
  0x15   : > { %s352_s18 = sadd.s32 %s3439_s13, %s3438_s14  ;;  %s2865_s30 = sshll.u32 %s4640_s22, 5 }
  0x16   : > { %s2863_s19 = sshll.u32 %s352_s18, 2  ;;  %s2867_s14 = sshll.u32 %s4640_s22, 1 }
  0x17   : > { %s3713_s29 = scalar_lea.vmem %s4586_s0, %s2863_s19 }
  0x18   : > { %v3046_v7 = vld [vmem:[%s3713_s29 + $0x8] sm:$0xff]   ;;  %v3007_v8 = vld [vmem:[%s3713_s29] sm:$0xff]   ;;  %v3047_v9 = vld [vmem:[%s3713_s29 + $0x10] sm:$0xff]   ;;  %s4039_s15 = scalar_select %p692_p8, 1, 0 }
  0x19   : > { %v3012_v10 = vunpack.c.l.bf16 %v3046_v7  ;;  %v3013_v11 = vunpack.c.h.bf16 %v3046_v7  ;;  %v3008_v12 = vunpack.c.l.bf16 %v3007_v8  ;;  %v3009_v13 = vunpack.c.h.bf16 %v3007_v8  ;;  %v3048_v14 = vld [vmem:[%s3713_s29 + $0x18] sm:$0xff]   ;;  %v3049_v34 = vld [vmem:[%s3713_s29 + $0x20] sm:$0xff]   ;;  %v3050_v35 = vld [vmem:[%s3713_s29 + $0x28] sm:$0xff]  }
  0x1a   : > { %v3016_v16 = vunpack.c.l.bf16 %v3047_v9  ;;  %v3017_v17 = vunpack.c.h.bf16 %v3047_v9  ;;  %v3020_v18 = vunpack.c.l.bf16 %v3048_v14  ;;  %v3021_v19 = vunpack.c.h.bf16 %v3048_v14  ;;  %v3051_v43 = vld [vmem:[%s3713_s29 + $0x30] sm:$0xff]   ;;  %v3796_v9 = vld [vmem:[%s3713_s29 + $0x38] sm:$0xff]  }
  0x1b   : > { %v443_v20 = vmul.f32 %v3012_v10, %v3719_v6  ;;  %v444_v21 = vmul.f32 %v3013_v11, %v3719_v6  ;;  %v441_v22 = vmul.f32 %v3008_v12, %v3719_v6  ;;  %v442_v23 = vmul.f32 %v3009_v13, %v3719_v6 }
  0x1c   : > { %v445_v24 = vmul.f32 %v3016_v16, %v3719_v6  ;;  %v446_v25 = vmul.f32 %v3017_v17, %v3719_v6  ;;  %v447_v26 = vmul.f32 %v3020_v18, %v3719_v6  ;;  %v448_v33 = vmul.f32 %v3021_v19, %v3719_v6 }
  0x1d   : > { %v3735_v27 = vadd.f32 %v3725_v15, %v443_v20  ;;  %v3738_v28 = vadd.f32 %v3725_v15, %v444_v21  ;;  %v3741_v29 = vadd.f32 %v3725_v15, %v441_v22  ;;  %v3744_v30 = vadd.f32 %v3725_v15, %v442_v23 }
  0x1e   : > { %v3747_v31 = vadd.f32 %v3725_v15, %v445_v24  ;;  %v3750_v32 = vadd.f32 %v3725_v15, %v446_v25  ;;  %v3759_v39 = vadd.f32 %v3725_v15, %v447_v26  ;;  %v3764_v42 = vadd.f32 %v3725_v15, %v448_v33 }
  0x1f   : > { %v2873_v36 = vmul.f32 -1.442695, %v3735_v27  ;;  %v2874_v37 = vmul.f32 -1.442695, %v3738_v28  ;;  %v2871_v38 = vmul.f32 -1.442695, %v3741_v29  ;;  %v3024_v45 = vunpack.c.l.bf16 %v3049_v34 }
  0x20   : > { %v2872_v40 = vmul.f32 -1.442695, %v3744_v30  ;;  %v2875_v41 = vmul.f32 -1.442695, %v3747_v31  ;;  %v2876_v44 = vmul.f32 -1.442695, %v3750_v32  ;;  %v3025_v46 = vunpack.c.h.bf16 %v3049_v34 }
  0x21   : > { %3480 = vpow2.f32 %v2873_v36  ;;  %v2877_v47 = vmul.f32 -1.442695, %v3759_v39  ;;  %v3028_v48 = vunpack.c.l.bf16 %v3050_v35  ;;  %v3029_v49 = vunpack.c.h.bf16 %v3050_v35 }
  0x22   : > { %3482 = vpow2.f32 %v2874_v37  ;;  %v449_v50 = vmul.f32 %v3024_v45, %v3719_v6  ;;  %v450_v51 = vmul.f32 %v3025_v46, %v3719_v6  ;;  %v3032_v52 = vunpack.c.l.bf16 %v3051_v43 }
  0x23   : > { %3484 = vpow2.f32 %v2871_v38  ;;  %v2878_v53 = vmul.f32 -1.442695, %v3764_v42  ;;  %v451_v54 = vmul.f32 %v3028_v48, %v3719_v6  ;;  %v452_v55 = vmul.f32 %v3029_v49, %v3719_v6 }
  0x24   : > { %3486 = vpow2.f32 %v2872_v40  ;;  %v3775_v56 = vadd.f32 %v3725_v15, %v449_v50  ;;  %v3778_v57 = vadd.f32 %v3725_v15, %v450_v51  ;;  %v453_v58 = vmul.f32 %v3032_v52, %v3719_v6 }
  0x25   : > { %3488 = vpow2.f32 %v2875_v41  ;;  %v3782_v59 = vadd.f32 %v3725_v15, %v451_v54  ;;  %v3785_v60 = vadd.f32 %v3725_v15, %v452_v55  ;;  %v3033_v8 = vunpack.c.h.bf16 %v3051_v43 }
  0x26   : > { %3490 = vpow2.f32 %v2876_v44  ;;  %v2879_v61 = vmul.f32 -1.442695, %v3775_v56  ;;  %v2880_v62 = vmul.f32 -1.442695, %v3778_v57  ;;  %v3790_v63 = vadd.f32 %v3725_v15, %v453_v58 }
  0x27   : > { %3492 = vpow2.f32 %v2877_v47  ;;  %v2881_v0 = vmul.f32 -1.442695, %v3782_v59  ;;  %v2882_v2 = vmul.f32 -1.442695, %v3785_v60  ;;  %v627_v13 = vlaneseq }
  0x28   : > { %3494 = vpow2.f32 %v2878_v53  ;;  %v2883_v7 = vmul.f32 -1.442695, %v3790_v63  ;;  %v3036_v17 = vunpack.c.l.bf16 %v3796_v9  ;;  %v454_v20 = vmul.f32 %v3033_v8, %v3719_v6 }
  0x29   : > { %3496 = vpow2.f32 %v2879_v61  ;;  %v3801_v24 = vshrl.u32 %v627_v13, 7  ;;  %v670_v51 = vstv %s3806_s9  ;;  %v3826_v52 = vsel %vm1356_vm0, %v3690_v4, 0 }
  0x2a   : > { %3498 = vpow2.f32 %v2880_v62  ;;  %v455_v34 = vmul.f32 %v3036_v17, %v3719_v6  ;;  %v3809_v37 = vadd.f32 %v3725_v15, %v454_v20  ;;  %v3831_v55 = vsel %vm1356_vm0, %v3695_v5, 0  ;;  %v3054_v62 = vld [vmem:[%s3713_s29 + $0x48] sm:$0xff]  }
  0x2b   : > { %v3481_v10 = vpop.eup %3480  ;;  %3500 = vpow2.f32 %v2881_v0  ;;  %v3812_v43 = vadd.s32 16, %v3801_v24  ;;  %v3815_v45 = vadd.s32 24, %v3801_v24  ;;  %v3818_v48 = vadd.s32 40, %v3801_v24  ;;  %v3053_v0 = vld [vmem:[%s3713_s29 + $0x40] sm:$0xff]   ;;  %s2864_s29 = sshll.u32 %s3582_s21, 4 }
  0x2c   : > { %v3483_v11 = vpop.eup %3482  ;;  %v549_v12 = vadd.f32 1.0, %v3481_v10  ;;  %3502 = vpow2.f32 %v2882_v2  ;;  %v3821_v49 = vadd.f32 %v3725_v15, %v455_v34  ;;  %v2884_v53 = vmul.f32 -1.442695, %v3809_v37  ;;  %p371_p9 = scmp.lt.s32.totalorder %s2864_s29, 31 }
  0x2d   : > { %v3485_v14 = vpop.eup %3484  ;;  %v550_v16 = vadd.f32 1.0, %v3483_v11  ;;  %3504 = vpow2.f32 %v2883_v7  ;;  %v3834_v61 = vadd.s32 56, %v3801_v24  ;;  %v834_v7 = vand.u32 15, %v3812_v43  ;;  %v4077_v43 = vld [vmem:[%s4587_s1 + $0x1c] sm:$0xf] }
  0x2e   : > { %v3487_v18 = vpop.eup %3486  ;;  %3506 = vrcp.f32 %v549_v12  ;;  %v547_v19 = vadd.f32 1.0, %v3485_v14  ;;  %v841_v4 = vand.u32 15, %v3815_v45  ;;  %vm1217_vm2 = vcmp.lt.s32.totalorder %v3801_v24, 7  ;;  %s4642_s29 = smov (!%p371_p9, %s2864_s29), 31 }
  0x2f   : > { %v3489_v21 = vpop.eup %3488  ;;  %3508 = vrcp.f32 %v550_v16  ;;  %v548_v22 = vadd.f32 1.0, %v3487_v18  ;;  %v3037_v10 = vunpack.c.h.bf16 %v3796_v9  ;;  %vm3845_vm3 = vcmp.eq.s32.totalorder %v670_v51, 1  ;;  %s377_s7 = sadd.s32 %s2865_s30, %s4642_s29 }
  0x30   : > { %v3491_v23 = vpop.eup %3490  ;;  %3510 = vrcp.f32 %v547_v19  ;;  %v551_v25 = vadd.f32 1.0, %v3489_v21  ;;  %v855_v13 = vand.u32 15, %v3818_v48  ;;  %v2885_v14 = vmul.f32 -1.442695, %v3821_v49  ;;  %s2866_s10 = sshll.u32 %s377_s7, 2 }
  0x31   : > { %v3493_v26 = vpop.eup %3492  ;;  %3512 = vrcp.f32 %v548_v22  ;;  %v552_v33 = vadd.f32 1.0, %v3491_v23  ;;  %v3045_v18 = vunpack.c.h.bf16 %v3054_v62  ;;  %v3040_v19 = vunpack.c.l.bf16 %v3053_v0  ;;  %s4485_s13 = scalar_lea.vmem %s4591_s5, %s2866_s10 }
  0x32   : > { %v3495_v35 = vpop.eup %3494  ;;  %3514 = vrcp.f32 %v551_v25  ;;  %v553_v36 = vadd.f32 1.0, %v3493_v26  ;;  %v3041_v34 = vunpack.c.h.bf16 %v3053_v0  ;;  %vm3886_vm4 = vcmp.eq.s32.totalorder %v841_v4, 15  ;;  %v3909_v0 = vld [vmem:[%s4587_s1 + $0x18] sm:$0xf] }
  0x33   : > { %v3497_v38 = vpop.eup %3496  ;;  %3516 = vrcp.f32 %v552_v33  ;;  %v554_v40 = vadd.f32 1.0, %v3495_v35  ;;  %vm3966_vm5 = vcmp.eq.s32.totalorder %v855_v13, 15  ;;  %vm1096_vm7 = vcmp.lt.s32.totalorder %v3801_v24, 1 }
  0x34   : > { %v3499_v41 = vpop.eup %3498  ;;  %3518 = vrcp.f32 %v553_v36  ;;  %v555_v44 = vadd.f32 1.0, %v3497_v38  ;;  %v457_v38 = vmul.f32 %v3040_v19, %v3719_v6  ;;  %vm4058_vm9 = vcmp.eq.s32.totalorder %v834_v7, 0 }
  0x35   : > { %v3501_v46 = vpop.eup %3500  ;;  %3520 = vrcp.f32 %v554_v40  ;;  %v556_v47 = vadd.f32 1.0, %v3499_v41  ;;  %v3044_v40 = vunpack.c.l.bf16 %v3054_v62 }
  0x36   : > { %v3503_v50 = vpop.eup %3502  ;;  %3522 = vrcp.f32 %v555_v44  ;;  %v557_v58 = vadd.f32 1.0, %v3501_v46  ;;  %v3915_v4 = vadd.f32 %v3725_v15, %v457_v38 }
  0x37   : > { %v3505_v54 = vpop.eup %3504  ;;  %3524 = vrcp.f32 %v556_v47  ;;  %v558_v8 = vadd.f32 1.0, %v3503_v50 }
  0x38   : > { %v3507_v2 = vpop.eup %3506  ;;  %3526 = vpow2.f32 %v2884_v53  ;;  %v559_v21 = vadd.f32 1.0, %v3505_v54  ;;  %v2887_v48 = vmul.f32 -1.442695, %v3915_v4 }
  0x39   : > { %v3509_v11 = vpop.eup %3508  ;;  %v3843_v5 = vmul.f32 %v3507_v2, %v3735_v27  ;;  %3528 = vrcp.f32 %v557_v58  ;;  %v869_v27 = vand.u32 15, %v3834_v61 }
  0x3a   : > { %v3511_v16 = vpop.eup %3510  ;;  %v3852_v17 = vmul.f32 %v3509_v11, %v3738_v28  ;;  %3530 = vrcp.f32 %v558_v8  ;;  %v456_v28 = vmul.f32 %v3037_v10, %v3719_v6  ;;  %v459_v8 = vmul.f32 %v3044_v40, %v3719_v6 }
  0x3b   : > { %v3513_v9 = vpop.eup %3512  ;;  %v607_v20 = vmul.f32 %v3511_v16, %v3741_v29  ;;  %3532 = vpow2.f32 %v2885_v14  ;;  %v1199_v58 = vrot.slane %v3843_v5, 1  ;;  %v3932_v14 = vadd.s32 72, %v3801_v24 }
  0x3c   : > { %v3515_v22 = vpop.eup %3514  ;;  %v1309_v23 = vpack.c.bf16 %v3852_v17, %v3843_v5  ;;  %v608_v25 = vmul.f32 %v3513_v9, %v3744_v30  ;;  %v460_v30 = vmul.f32 %v3045_v18, %v3719_v6  ;;  %v1200_v44 = vrot.slane %v3852_v17, 1 }
  0x3d   : > { %v3517_v26 = vpop.eup %3516  ;;  %v3862_v33 = vsel %vm3845_vm3, 0.0, %v607_v20  ;;  %v3865_v29 = vmul.f32 %v3515_v22, %v3747_v31  ;;  %3534 = vrcp.f32 %v559_v21  ;;  %v3945_v16 = vadd.s32 88, %v3801_v24 }
  0x3e   : > { %v3519_v35 = vpop.eup %3518  ;;  %3210 = vmatprep.mubr.msk.bf16.mxu0 %vm1331_vm1, %v1309_v23  ;;  %v3870_v36 = vsel %vm3845_vm3, 0.0, %v608_v25  ;;  %v3878_v45 = vmul.f32 %v3517_v26, %v3750_v32  ;;  %v3912_v2 = vadd.f32 %v3725_v15, %v460_v30  ;;  %v3948_v18 = vadd.s32 104, %v3801_v24 }
  0x3f   : > { %v3521_v41 = vpop.eup %3520  ;;  %v1308_v31 = vpack.c.bf16 %v3870_v36, %v3862_v33  ;;  %v3881_v47 = vmul.f32 %v3519_v35, %v3759_v39  ;;  %v1201_v53 = vrot.slane %v3865_v29, 1  ;;  %v3898_v39 = vadd.f32 %v3725_v15, %v456_v28 }
  0x40   : > { %v3523_v46 = vpop.eup %3522  ;;  %v3884_v50 = vmul.f32 %v3521_v41, %v3764_v42  ;;  %v3895_v32 = vpack.c.bf16 %v3878_v45, %v3865_v29  ;;  %v458_v42 = vmul.f32 %v3041_v34, %v3719_v6  ;;  %v3937_v6 = vld [vmem:[%s4587_s1 + $0x8] sm:$0xf]  ;;  %v2890_v30 = vmul.f32 -1.442695, %v3912_v2 }
  0x41   : > { %v3525_v54 = vpop.eup %3524  ;;  %3138 = vmatprep.mubr.msk.bf16.mxu1 %vm1331_vm1, %v1308_v31  ;;  %v3922_v10 = vmul.f32 %v3523_v46, %v3775_v56  ;;  %v1233_v12 = vsel %vm1217_vm2, %v1200_v44, %v1201_v53  ;;  %v1202_v56 = vrot.slane %v3878_v45, 1  ;;  %v2886_v20 = vmul.f32 -1.442695, %v3898_v39 }
  0x42   : > { %3139 = vmatmul.mubr.msk.bf16.vlgmr.msra.gmra.mrb[0].mxu1 %vm1331_vm1, %v1309_v23  ;;  %v3904_v62 = vpack.c.bf16 %v3884_v50, %v3881_v47  ;;  %3211 = vmatmul.mubr.msk.bf16.vlgmr.msra.gmra.mrb[0].mxu0 %vm1331_vm1, %v3895_v32  ;;  %v3925_v11 = vmul.f32 %v3525_v54, %v3778_v57  ;;  %v1203_v57 = vrot.slane %v3881_v47, 1  ;;  %v1281_v9 = vsel %vm3886_vm4, 0.0, %v1233_v12 }
  0x43   : > { %3155 = vmatpush3.bf16.msra.mxu1 %v3826_v52  ;;  %v3527_v52 = vpop.eup %3526  ;;  %3227 = vmatpush3.bf16.msra.mxu0 %v3831_v55  ;;  %v1234_v55 = vsel %vm1217_vm2, %v1199_v58, %v1200_v44  ;;  %v3962_v21 = vadd.f32 %v3725_v15, %v458_v42  ;;  %v1204_v25 = vrot.slane %v3884_v50, 1  ;;  %v1205_v28 = vrot.slane %v3922_v10, 1 }
  0x44   : > { %3214 = vmatprep.mubr.msk.bf16.mxu0 %vm1331_vm1, %v3904_v62  ;;  %v3529_v19 = vpop.eup %3528  ;;  %3142 = vmatprep.mubr.msk.bf16.mxu1 %vm1331_vm1, %v3895_v32  ;;  %v560_v26 = vadd.f32 1.0, %v3527_v52  ;;  %v3976_v35 = vpack.c.bf16 %v3925_v11, %v3922_v10  ;;  %v3981_v13 = vadd.f32 %v3725_v15, %v459_v8  ;;  %v3983_v38 = vpack.c.bf16 %v1281_v9, %v1234_v55 }
  0x45   : > { %3435 = vmatprep.subr.msk.bf16.mxu0 %vm1356_vm0, %v3909_v0  ;;  %v3531_v22 = vpop.eup %3530  ;;  %3430 = vmatprep.subr.msk.bf16.mxu1 %vm1356_vm0, %v3937_v6  ;;  %v1231_v40 = vsel %vm1217_vm2, %v1202_v56, %v1203_v57  ;;  %vm3989_vm6 = vcmp.eq.s32.totalorder %v869_v27, 15  ;;  %v883_v46 = vand.u32 15, %v3932_v14  ;;  %v2888_v15 = vmul.f32 -1.442695, %v3962_v21 }
  0x46   : > { %v3533_v34 = vpop.eup %3532  ;;  %3536 = vrcp.f32 %v560_v26  ;;  %v3998_v51 = vmul.f32 %v3529_v19, %v3782_v59  ;;  %v4001_v54 = vmul.f32 %v3531_v22, %v3785_v60  ;;  %v1229_v61 = vsel %vm1217_vm2, %v1204_v25, %v1205_v28 }
  0x47   : > { %v561_v41 = vadd.f32 1.0, %v3533_v34  ;;  %v3535_v44 = vpop.eup %3534  ;;  %3538 = vpow2.f32 %v2886_v20  ;;  %v1232_v59 = vsel %vm1217_vm2, %v1201_v53, %v1202_v56  ;;  %v1283_v60 = vsel %vm3966_vm5, 0.0, %v1231_v40 }
  0x48   : > { %v897_v27 = vand.u32 15, %v3945_v16  ;;  %v1230_v42 = vsel %vm1217_vm2, %v1203_v57, %v1204_v25  ;;  %v4024_v8 = vmul.f32 %v3535_v44, %v3790_v63  ;;  %v2889_v12 = vmul.f32 -1.442695, %v3981_v13 }
  0x49   : > { %3540 = vrcp.f32 %v561_v41  ;;  %v1285_v53 = vsel %vm3989_vm6, 0.0, %v1229_v61  ;;  %v1206_v14 = vrot.slane %v3925_v11, 1  ;;  %v1207_v52 = vrot.slane %v3998_v51, 1 }
  0x4a   : > { %3143 = vmatmul.mubr.msk.bf16.gmra.mrb[4].mxu1 %vm1331_vm1, %v3904_v62  ;;  %3215 = vmatmul.mubr.msk.bf16.gmra.mrb[4].mxu0 %vm1331_vm1, %v3976_v35  ;;  %3542 = vpow2.f32 %v2890_v30  ;;  %v4033_v56 = vpack.c.bf16 %v4001_v54, %v3998_v51  ;;  %v1208_v57 = vrot.slane %v4001_v54, 1  ;;  %v1209_v63 = vrot.slane %v4024_v8, 1 }
  0x4b   : > { %3146 = vmatprep.mubr.msk.bf16.mxu1 %vm1331_vm1, %v3976_v35  ;;  %3228 = vmatprep.mubr.msk.bf16.mxu0 %vm1331_vm1, %v3983_v38  ;;  %3544 = vpow2.f32 %v2887_v48  ;;  %v4041_v16 = vpack.c.bf16 %v1283_v60, %v1232_v59  ;;  %v911_v19 = vand.u32 15, %v3948_v18  ;;  %v632_v55 = vadd.s32 32, %v3801_v24 }
  0x4c   : > { %3546 = vpow2.f32 %v2888_v15  ;;  %v4045_v9 = vpack.c.bf16 %v1285_v53, %v1230_v42  ;;  %v2092_v20 = vsel %vm1356_vm0, %v3909_v0, 0  ;;  %vm4050_vm8 = vcmp.eq.s32.totalorder %v883_v46, 15 }
  0x4d   : > { %3548 = vpow2.f32 %v2889_v12  ;;  %v1227_v23 = vsel %vm1217_vm2, %v1206_v14, %v1207_v52  ;;  %vm4064_vm10 = vcmp.eq.s32.totalorder %v897_v27, 15  ;;  %v1225_v0 = vsel %vm1217_vm2, %v1208_v57, %v1209_v63 }
  0x4e   : > { %v714_v34 = vstv %s4039_s15  ;;  %v820_v30 = vand.u32 15, %v3801_v24  ;;  %vm4084_vm11 = vcmp.eq.s32.totalorder %v911_v19, 15  ;;  %v4089_v41 = vadd.s32 120, %v3801_v24  ;;  %s389_s15 = sadd.s32 %s2867_s14, %s3698_s12 }
  0x4f   : > { %v848_v44 = vand.u32 15, %v632_v55  ;;  %v1228_v46 = vsel %vm1217_vm2, %v1205_v28, %v1206_v14  ;;  %v1226_v61 = vsel %vm1217_vm2, %v1207_v52, %v1208_v57  ;;  %v1289_v42 = vsel %vm4064_vm10, 0.0, %v1225_v0  ;;  %s2868_s16 = sshll.u32 %s389_s15, 1 }
  0x50   : > { %v3537_v25 = vpop.eup %3536  ;;  %v1078_v53 = vrot.slane %v3843_v5, 7  ;;  %v1077_v14 = vrot.slane %v3870_v36, 7  ;;  %v1079_v0 = vrot.slane %v3852_v17, 7  ;;  %v925_v17 = vand.u32 15, %v4089_v41  ;;  %s391_s19 = scalar_lea.vmem %s4592_s6, %s2868_s16 }
  0x51   : > { %v3539_v7 = vpop.eup %3538  ;;  %v4082_v48 = vmul.f32 %v3537_v25, %v3809_v37  ;;  %v1287_v37 = vsel %vm4050_vm8, 0.0, %v1227_v23  ;;  %v4121_v23 = vpack.c.bf16 %v1289_v42, %v1226_v61  ;;  %v1080_v25 = vrot.slane %v3865_v29, 7 }
  0x52   : > { %3147 = vmatmul.mubr.msk.bf16.gmra.mrb[8].mxu1 %vm1331_vm1, %v4033_v56  ;;  %3229 = vmatmul.mubr.msk.bf16.vlgmr.msra.gmra.mrb[0].mxu0 %vm1331_vm1, %v4041_v16  ;;  %v562_v15 = vadd.f32 1.0, %v3539_v7  ;;  %vm4136_vm12 = vcmp.eq.s32.totalorder %v848_v44, 0  ;;  %v1081_v61 = vrot.slane %v3878_v45, 7  ;;  %v629_v44 = vadd.s32 8, %v3801_v24 }
  0x53   : > { %v3541_v31 = vpop.eup %3540  ;;  %3245 = vmatpush3.bf16.msra.mxu0 %v2092_v20  ;;  %3232 = vmatprep.mubr.msk.bf16.mxu0 %vm1331_vm1, %v4045_v9  ;;  %v4103_v60 = vpack.c.bf16 %v4082_v48, %v4024_v8  ;;  %v1210_v28 = vrot.slane %v4082_v48, 1  ;;  %v645_v20 = vadd.s32 136, %v3801_v24  ;;  %v1112_v41 = vsel %vm1096_vm7, %v1079_v0, %v1080_v25 }
  0x54   : > { %v3543_v59 = vpop.eup %3542  ;;  %v4106_v27 = vmul.f32 %v3541_v31, %v3821_v49  ;;  %3436 = vmatprep.subr.msk.bf16.mxu0 %vm1356_vm0, %v4077_v43  ;;  %3550 = vrcp.f32 %v562_v15  ;;  %v4117_v49 = vpack.c.bf16 %v1287_v37, %v1228_v46  ;;  %v1114_v46 = vsel %vm1096_vm7, %v1077_v14, %v1078_v53 }
  0x55   : > { %v3545_v12 = vpop.eup %3544  ;;  %v566_v52 = vadd.f32 1.0, %v3543_v59  ;;  %3150 = vmatprep.mubr.msk.bf16.mxu1 %vm1331_vm1, %v4103_v60  ;;  %v1197_v37 = vrot.slane %v3862_v33, 1  ;;  %v1198_v15 = vrot.slane %v3870_v36, 1  ;;  %v1224_v36 = vsel %vm1217_vm2, %v1209_v63, %v1210_v28 }
  0x56   : > { %v3547_v57 = vpop.eup %3546  ;;  %v1211_v19 = vrot.slane %v4106_v27, 1  ;;  %v563_v55 = vadd.f32 1.0, %v3545_v12  ;;  %v1076_v42 = vrot.slane %v3862_v33, 7  ;;  %v1113_v12 = vsel %vm1096_vm7, %v1078_v53, %v1079_v0 }
  0x57   : > { %v3549_v22 = vpop.eup %3548  ;;  %3552 = vrcp.f32 %v566_v52  ;;  %v564_v26 = vadd.f32 1.0, %v3547_v57  ;;  %v1159_v52 = vsel %vm4058_vm9, 0.0, %v1114_v46  ;;  %v939_v57 = vand.u32 15, %v645_v20 }
  0x58   : > { %v1223_v7 = vsel %vm1217_vm2, %v1210_v28, %v1211_v19  ;;  %3554 = vrcp.f32 %v563_v55  ;;  %v565_v31 = vadd.f32 1.0, %v3549_v22  ;;  %vm4157_vm13 = vcmp.eq.s32.totalorder %v820_v30, 0 }
  0x59   : > { %3556 = vrcp.f32 %v564_v26  ;;  %v1291_v59 = vsel %vm4084_vm11, 0.0, %v1223_v7  ;;  %v634_v63 = vadd.s32 48, %v3801_v24  ;;  %v827_v40 = vand.u32 15, %v629_v44 }
  0x5a   : > { %3233 = vmatmul.mubr.msk.bf16.gmra.mrb[4].mxu0 %vm1331_vm1, %v4117_v49  ;;  %3558 = vrcp.f32 %v565_v31  ;;  %v1235_v28 = vsel %vm1217_vm2, %v1198_v15, %v1199_v58  ;;  %v1236_v53 = vsel %vm1217_vm2, %v1197_v37, %v1198_v15  ;;  %vm4172_vm14 = vcmp.eq.s32.totalorder %v714_v34, 1 }
  0x5b   : > { %3236 = vmatprep.mubr.msk.bf16.mxu0 %vm1331_vm1, %v4121_v23  ;;  %v4176_v30 = vpack.c.bf16 %v1291_v59, %v1224_v36  ;;  %v1111_v5 = vsel %vm1096_vm7, %v1080_v25, %v1081_v61  ;;  %v1161_v58 = vsel %vm4136_vm12, 0.0, %v1112_v41  ;;  %v4184_v22 = vpack.c.bf16 %v1113_v12, %v1159_v52 }
  0x5c   : > { %v4188_v26 = vsel %vm1356_vm0, %v3937_v6, 0  ;;  %vm4190_vm15 = vcmp.eq.s32.totalorder %v925_v17, 15  ;;  %vm1178_vm3 = vcmp.eq.s32.totalorder %v827_v40, 15  ;;  %v1115_v25 = vsel %vm1096_vm7, %v1076_v42, %v1077_v14 }
  0x5d   : > { %vm4199_vm4 = vcmp.eq.s32.totalorder %v939_v57, 15  ;;  %v1279_v31 = vsel %vm1178_vm3, 0.0, %v1235_v28  ;;  %v4203_v15 = vpack.c.bf16 %v1111_v5, %v1161_v58  ;;  %v862_v6 = vand.u32 15, %v634_v63 }
  0x5e   : > { %v3551_v20 = vpop.eup %3550  ;;  %v4205_v17 = vpack.c.bf16 %v1279_v31, %v1236_v53  ;;  %v647_v29 = vadd.s32 152, %v3801_v24  ;;  %v636_v41 = vadd.s32 64, %v3801_v24  ;;  %v1082_v52 = vrot.slane %v3881_v47, 7 }
  0x5f   : > { %v4195_v0 = vmul.f32 %v3551_v20, %v3898_v39  ;;  %v1083_v57 = vrot.slane %v3884_v50, 7  ;;  %v1084_v63 = vrot.slane %v3922_v10, 7  ;;  %v638_v53 = vadd.s32 80, %v3801_v24 }
  0x60   : > { %v953_v5 = vand.u32 15, %v647_v29  ;;  %vm4242_vm5 = vcmp.eq.s32.totalorder %v862_v6, 0 }
  0x61   : > { %v3553_v46 = vpop.eup %3552  ;;  %v4210_v39 = vpack.c.bf16 %v4195_v0, %v4106_v27  ;;  %v1212_v59 = vrot.slane %v4195_v0, 1  ;;  %v1108_v45 = vsel %vm1096_vm7, %v1083_v57, %v1084_v63 }
  0x62   : > { %v3555_v36 = vpop.eup %3554  ;;  %v626_v14 = vmul.f32 %v3553_v46, %v3912_v2  ;;  %3237 = vmatmul.mubr.msk.bf16.gmra.mrb[8].mxu0 %vm1331_vm1, %v4176_v30  ;;  %vm4270_vm6 = vcmp.eq.s32.totalorder %v953_v5, 15 }
  0x63   : > { %v3557_v44 = vpop.eup %3556  ;;  %v4218_v12 = vmul.f32 %v3555_v36, %v3915_v4  ;;  %3151 = vmatmul.mubr.msk.bf16.gmra.mrb[12].mxu1 %vm1331_vm1, %v4210_v39  ;;  %v1085_v4 = vrot.slane %v3925_v11, 7  ;;  %v1222_v58 = vsel %vm1217_vm2, %v1211_v19, %v1212_v59  ;;  %v876_v11 = vand.u32 15, %v636_v41 }
  0x64   : > { %v3559_v40 = vpop.eup %3558  ;;  %v4227_v2 = vsel %vm4172_vm14, 0.0, %v626_v14  ;;  %v4230_v28 = vmul.f32 %v3557_v44, %v3962_v21  ;;  %v640_v44 = vadd.s32 96, %v3801_v24  ;;  %v1090_v41 = vrot.slane %v4106_v27, 7 }
  0x65   : > { %v1095_v47 = vrot.slane %v4227_v2, 7  ;;  %v1213_v50 = vrot.slane %v4218_v12, 1  ;;  %v625_v10 = vmul.f32 %v3559_v40, %v3981_v13  ;;  %v1216_v19 = vrot.slane %v4227_v2, 1  ;;  %v4293_v40 = vld [vmem:[%s4587_s1 + $0xc] sm:$0xf] }
  0x66   : > { %v1214_v20 = vrot.slane %v4230_v28, 1  ;;  %vm4276_vm8 = vcmp.eq.s32.totalorder %v876_v11, 0  ;;  %v890_v11 = vand.u32 15, %v638_v53  ;;  %v1089_v53 = vrot.slane %v4082_v48, 7 }
  0x67   : > { %v1116_v31 = vsel %vm1096_vm7, %v1095_v47, %v1076_v42  ;;  %v1221_v13 = vsel %vm1217_vm2, %v1212_v59, %v1213_v50  ;;  %v4254_v46 = vsel %vm4172_vm14, 0.0, %v625_v10  ;;  %v1110_v42 = vsel %vm1096_vm7, %v1081_v61, %v1082_v52 }
  0x68   : > { %v1157_v6 = vsel %vm4157_vm13, 0.0, %v1116_v31  ;;  %v1293_v29 = vsel %vm4190_vm15, 0.0, %v1221_v13  ;;  %v1215_v36 = vrot.slane %v4254_v46, 1  ;;  %v1220_v18 = vsel %vm1217_vm2, %v1213_v50, %v1214_v20 }
  0x69   : > { %v1298_v14 = vpack.c.bf16 %v1115_v25, %v1157_v6  ;;  %v4266_v59 = vpack.c.bf16 %v1293_v29, %v1222_v58  ;;  %v1317_v61 = vpack.c.bf16 %v4227_v2, %v4254_v46  ;;  %v1237_v10 = vsel %vm1217_vm2, %v1216_v19, %v1197_v37 }
  0x6a   : > { %v1219_v55 = vsel %vm1217_vm2, %v1214_v20, %v1215_v36  ;;  %v1218_v50 = vsel %vm1217_vm2, %v1215_v36, %v1216_v19  ;;  %v1297_v5 = vsel %vm4270_vm6, 0.0, %v1237_v10  ;;  %v1109_v58 = vsel %vm1096_vm7, %v1082_v52, %v1083_v57 }
  0x6b   : > { %3156 = vmatprep.mubr.msk.bf16.mxu1 %vm1331_vm1, %v1298_v14  ;;  %3240 = vmatprep.mubr.msk.bf16.mxu0 %vm1331_vm1, %v4266_v59  ;;  %v1295_v25 = vsel %vm4199_vm4, 0.0, %v1219_v55  ;;  %v1163_v33 = vsel %vm4242_vm5, 0.0, %v1110_v42  ;;  %v4314_v37 = vpack.c.bf16 %v1297_v5, %v1218_v50  ;;  %v1107_v20 = vsel %vm1096_vm7, %v1084_v63, %v1085_v4  ;;  %v2962_v42 = vld [vmem:[%s4587_s1 + $0x20] sm:$0xf] }
  0x6c   : > { %3157 = vmatmul.mubr.msk.bf16.vlgmr.msra.gmra.mrb[0].mxu1 %vm1331_vm1, %v4184_v22  ;;  %v4303_v7 = vpack.c.bf16 %v1295_v25, %v1220_v18  ;;  %v1086_v31 = vrot.slane %v3998_v51, 7  ;;  %v904_v52 = vand.u32 15, %v640_v44  ;;  %v1088_v57 = vrot.slane %v4024_v8, 7 }
  0x6d   : > { %3173 = vmatpush3.bf16.msra.mxu1 %v4188_v26  ;;  %3160 = vmatprep.mubr.msk.bf16.mxu1 %vm1331_vm1, %v4203_v15  ;;  %v1165_v26 = vsel %vm4276_vm8, 0.0, %v1108_v45  ;;  %v4328_v21 = vpack.c.bf16 %v1109_v58, %v1163_v33  ;;  %v1087_v63 = vrot.slane %v4001_v54, 7  ;;  %vm4333_vm2 = vcmp.eq.s32.totalorder %v890_v11, 0 }
  0x6e   : > { %3241 = vmatmul.mubr.msk.bf16.gmra.mrb[12].mxu0 %vm1331_vm1, %v4303_v7  ;;  %3431 = vmatprep.subr.msk.bf16.mxu1 %vm1356_vm0, %v4293_v40  ;;  %v4330_v13 = vpack.c.bf16 %v1107_v20, %v1165_v26  ;;  %v1106_v51 = vsel %vm1096_vm7, %v1085_v4, %v1086_v31  ;;  %v642_v6 = vadd.s32 112, %v3801_v24  ;;  %vm4341_vm9 = vcmp.eq.s32.totalorder %v904_v52, 0 }
  0x6f   : > { %3246 = vmatprep.mubr.msk.bf16.mxu0 %vm1331_vm1, %v4203_v15  ;;  %v1104_v8 = vsel %vm1096_vm7, %v1087_v63, %v1088_v57  ;;  %v2213_v54 = vsel %vm1356_vm0, %v4077_v43, 0  ;;  %v1105_v48 = vsel %vm1096_vm7, %v1086_v31, %v1087_v63  ;;  %v1167_v4 = vsel %vm4333_vm2, 0.0, %v1106_v51 }
  0x70   : > { %v644_v36 = vadd.s32 128, %v3801_v24  ;;  %v1103_v43 = vsel %vm1096_vm7, %v1088_v57, %v1089_v53  ;;  %v1169_v14 = vsel %vm4341_vm9, 0.0, %v1104_v8  ;;  %v918_v18 = vand.u32 15, %v642_v6 }
  0x71   : > { %v1303_v55 = vpack.c.bf16 %v1105_v48, %v1167_v4  ;;  %v1304_v34 = vpack.c.bf16 %v1103_v43, %v1169_v14  ;;  %v1091_v45 = vrot.slane %v4195_v0, 7  ;;  %v1092_v44 = vrot.slane %v4218_v12, 7 }
  0x72   : > { %v932_v25 = vand.u32 15, %v644_v36  ;;  %vm1070_vm10 = vcmp.eq.s32.totalorder %v918_v18, 0  ;;  %v1102_v50 = vsel %vm1096_vm7, %v1089_v53, %v1090_v41  ;;  %v646_v10 = vadd.s32 144, %v3801_v24 }
  0x73   : > { %v1093_v27 = vrot.slane %v4230_v28, 7  ;;  %v1101_v5 = vsel %vm1096_vm7, %v1090_v41, %v1091_v45  ;;  %v1171_v58 = vsel %vm1070_vm10, 0.0, %v1102_v50  ;;  %v1100_v0 = vsel %vm1096_vm7, %v1091_v45, %v1092_v44 }
  0x74   : > { %3161 = vmatmul.mubr.msk.bf16.gmra.mrb[4].mxu1 %vm1331_vm1, %v4328_v21  ;;  %vm1072_vm11 = vcmp.eq.s32.totalorder %v932_v25, 0  ;;  %v946_v33 = vand.u32 15, %v646_v10  ;;  %v1305_v20 = vpack.c.bf16 %v1101_v5, %v1171_v58  ;;  %v1094_v31 = vrot.slane %v4254_v46, 7 }
  0x75   : > { %3164 = vmatprep.mubr.msk.bf16.mxu1 %vm1331_vm1, %v4330_v13  ;;  %v1099_v26 = vsel %vm1096_vm7, %v1092_v44, %v1093_v27  ;;  %v1173_v11 = vsel %vm1072_vm11, 0.0, %v1100_v0  ;;  %v1729_v51 = vsel %vm1356_vm0, %v4293_v40, 0  ;;  %v2334_v24 = vsel %vm1356_vm0, %v2962_v42, 0 }
  0x76   : > { %3247 = vmatmul.mubr.msk.bf16.vlgmr.msra.gmra.mrb[0].mxu0 %vm1331_vm1, %v4328_v21  ;;  %v1306_v52 = vpack.c.bf16 %v1099_v26, %v1173_v11  ;;  %vm1074_vm12 = vcmp.eq.s32.totalorder %v946_v33, 0  ;;  %v1098_v57 = vsel %vm1096_vm7, %v1093_v27, %v1094_v31  ;;  %v1097_v63 = vsel %vm1096_vm7, %v1094_v31, %v1095_v47 }
  0x77   : > { %3263 = vmatpush3.bf16.msra.mxu0 %v2213_v54  ;;  %3250 = vmatprep.mubr.msk.bf16.mxu0 %vm1331_vm1, %v4330_v13  ;;  %v1175_v19 = vsel %vm1074_vm12, 0.0, %v1098_v57  ;;  %vm2644_vm7 = vcmask 1040384   ;;  %vm2646_vm13 = vcmask 123904  }
  0x78   : > { %3437 = vmatprep.subr.msk.bf16.mxu0 %vm1356_vm0, %v2962_v42  ;;  %v1307_v53 = vpack.c.bf16 %v1097_v63, %v1175_v19 }
  0x7c   : > { %3165 = vmatmul.mubr.msk.bf16.gmra.mrb[8].mxu1 %vm1331_vm1, %v1303_v55 }
  0x7d   : > { %3168 = vmatprep.mubr.msk.bf16.mxu1 %vm1331_vm1, %v1304_v34 }
  0x7e   : > { %3251 = vmatmul.mubr.msk.bf16.gmra.mrb[4].mxu0 %vm1331_vm1, %v1303_v55 }
  0x7f   : > { %3254 = vmatprep.mubr.msk.bf16.mxu0 %vm1331_vm1, %v1304_v34 }
  0x84   : > { %3169 = vmatmul.mubr.msk.bf16.gmra.mrb[12].mxu1 %vm1331_vm1, %v1305_v20 }
  0x85   : > { %3174 = vmatprep.mubr.msk.bf16.mxu1 %vm1331_vm1, %v4205_v17 }
  0x86   : > { %3255 = vmatmul.mubr.msk.bf16.gmra.mrb[8].mxu0 %vm1331_vm1, %v1305_v20 }
  0x87   : > { %3258 = vmatprep.mubr.msk.bf16.mxu0 %vm1331_vm1, %v1306_v52 }
  0x8c   : > { %3175 = vmatmul.mubr.msk.bf16.vlgmr.msra.gmra.mrb[0].mxu1 %vm1331_vm1, %v3983_v38 }
  0x8d   : > { %3191 = vmatpush3.bf16.msra.mxu1 %v1729_v51  ;;  %3178 = vmatprep.mubr.msk.bf16.mxu1 %vm1331_vm1, %v4041_v16 }
  0x8e   : > { %3259 = vmatmul.mubr.msk.bf16.gmra.mrb[12].mxu0 %vm1331_vm1, %v1307_v53  ;;  %3433 = vmatprep.subr.msk.bf16.mxu1 %vm1356_vm0, %v3673_v1  ;;  %v1316_v1 = vpack.c.bf16 %v4230_v28, %v4218_v12  ;;  %vm2536_vm0 = vcmask 125952  }
  0x8f   : > { %3264 = vmatprep.mubr.msk.bf16.mxu0 %vm1331_vm1, %v3895_v32 }
  0x94   : > { %3179 = vmatmul.mubr.msk.bf16.gmra.mrb[4].mxu1 %vm1331_vm1, %v4045_v9 }
  0x95   : > { %3182 = vmatprep.mubr.msk.bf16.mxu1 %vm1331_vm1, %v4117_v49 }
  0x96   : > { %3265 = vmatmul.mubr.msk.bf16.vlgmr.msra.gmra.mrb[0].mxu0 %vm1331_vm1, %v3904_v62 }
  0x97   : > { %3281 = vmatpush3.bf16.msra.mxu0 %v2334_v24  ;;  %3268 = vmatprep.mubr.msk.bf16.mxu0 %vm1331_vm1, %v3976_v35 }
  0x9c   : > { %3183 = vmatmul.mubr.msk.bf16.gmra.mrb[8].mxu1 %vm1331_vm1, %v4121_v23 }
  0x9d   : > { %3186 = vmatprep.mubr.msk.bf16.mxu1 %vm1331_vm1, %v4176_v30 }
  0x9e   : > { %3269 = vmatmul.mubr.msk.bf16.gmra.mrb[4].mxu0 %vm1331_vm1, %v4033_v56 }
  0x9f   : > { %3272 = vmatprep.mubr.msk.bf16.mxu0 %vm1331_vm1, %v4103_v60 }
  0xa4   : > { %3187 = vmatmul.mubr.msk.bf16.gmra.mrb[12].mxu1 %vm1331_vm1, %v4266_v59 }
  0xa5   : > { %3192 = vmatprep.mubr.msk.bf16.mxu1 %vm1331_vm1, %v4184_v22 }
  0xa6   : > { %3273 = vmatmul.mubr.msk.bf16.gmra.mrb[8].mxu0 %vm1331_vm1, %v4210_v39 }
  0xa7   : > { %3276 = vmatprep.mubr.msk.bf16.mxu0 %vm1331_vm1, %v1316_v1 }
  0xac   : > { %3193 = vmatmul.mubr.msk.bf16.vlgmr.msra.gmra.mrb[0].mxu1 %vm1331_vm1, %v4203_v15 }
  0xad   : > { %3299 = vmatpush3.bf16.msra.mxu1 %v3681_v3  ;;  %3196 = vmatprep.mubr.msk.bf16.mxu1 %vm1331_vm1, %v4328_v21 }
  0xae   : > { %3277 = vmatmul.mubr.msk.bf16.gmra.mrb[12].mxu0 %vm1331_vm1, %v1317_v61 }
  0xaf   : > { %3282 = vmatprep.mubr.msk.bf16.mxu0 %vm1331_vm1, %v4041_v16 }
  0xb4   : > { %3197 = vmatmul.mubr.msk.bf16.gmra.mrb[4].mxu1 %vm1331_vm1, %v4330_v13 }
  0xb5   : > { %3200 = vmatprep.mubr.msk.bf16.mxu1 %vm1331_vm1, %v1303_v55 }
  0xb6   : > { %3283 = vmatmul.mubr.msk.bf16.vlgmr.msra.gmra.mrb[0].mxu0 %vm1331_vm1, %v4045_v9 }
  0xb7   : > { %3286 = vmatprep.mubr.msk.bf16.mxu0 %vm1331_vm1, %v4117_v49 }
  0xbc   : > { %3201 = vmatmul.mubr.msk.bf16.gmra.mrb[8].mxu1 %vm1331_vm1, %v1304_v34 }
  0xbd   : > { %3204 = vmatprep.mubr.msk.bf16.mxu1 %vm1331_vm1, %v1305_v20 }
  0xbe   : > { %3287 = vmatmul.mubr.msk.bf16.gmra.mrb[4].mxu0 %vm1331_vm1, %v4121_v23 }
  0xbf   : > { %3290 = vmatprep.mubr.msk.bf16.mxu0 %vm1331_vm1, %v4176_v30 }
  0xc4   : > { %3205 = vmatmul.mubr.msk.bf16.gmra.mrb[12].mxu1 %vm1331_vm1, %v1306_v52 }
  0xc5   : > { %3218 = vmatprep.mubr.msk.bf16.mxu1 %vm1331_vm1, %v4033_v56 }
  0xc6   : > { %3291 = vmatmul.mubr.msk.bf16.gmra.mrb[8].mxu0 %vm1331_vm1, %v4266_v59 }
  0xc7   : > { %3294 = vmatprep.mubr.msk.bf16.mxu0 %vm1331_vm1, %v4303_v7 }
  0xcc   : > { %3219 = vmatmul.mubr.msk.bf16.vlgmr.msra.gmra.mrb[8].mxu1 %vm1331_vm1, %v4103_v60  ;;  %v4479_v60 = vld [vmem:[%s4588_s2] ss:$0 sm:$0xff] }
  0xcd   : > { %3222 = vmatprep.mubr.msk.bf16.mxu1 %vm1331_vm1, %v4210_v39 }
  0xce   : > { %3295 = vmatmul.mubr.msk.bf16.gmra.mrb[12].mxu0 %vm1331_vm1, %v4314_v37 }
  0xd4   : > { %3223 = vmatmul.mubr.msk.bf16.gmra.mrb[12].mxu1 %vm1331_vm1, %v1316_v1  ;;  %vm2553_vm1 = vcmask 130048  }
 0x17f   : > { %v3194_v3 = vpop.f32.mrb[0].mxu1 }
 0x180   : > { %v1765_v32 = vpop.f32.mrb[1].mxu1 }
 0x181   : > { %v3195_v62 = vpop.f32.mrb[2].mxu1 }
 0x182   : > { %v1768_v35 = vpop.f32.mrb[3].mxu1 }
 0x187   : > { %v3198_v38 = vpop.f32.mrb[4].mxu1 }
 0x188   : > { %v1781_v56 = vpop.f32.mrb[5].mxu1 }
 0x189   : > { %v3199_v16 = vpop.f32.mrb[6].mxu1  ;;  %v3284_v9 = vpop.f32.mrb[0].mxu0 }
 0x18a   : > { %v1784_v49 = vpop.f32.mrb[7].mxu1  ;;  %v3300_v23 = vadd.f32 %v3284_v9, %v3194_v3  ;;  %v2370_v30 = vpop.f32.mrb[1].mxu0 }
 0x18b   : > { %v3301_v22 = vadd.f32 %v2370_v30, %v1765_v32  ;;  %v3285_v15 = vpop.f32.mrb[2].mxu0 }
 0x18c   : > { %v2458_v17 = vadd.f32 %v3300_v23, %v4479_v60  ;;  %v3302_v39 = vadd.f32 %v3285_v15, %v3195_v62  ;;  %v2373_v12 = vpop.f32.mrb[3].mxu0 }
 0x18d   : > { %v2456_v2 = vadd.f32 %v3301_v22, %v4479_v60  ;;  %v3303_v28 = vadd.f32 %v2373_v12, %v1768_v35 }
 0x18e   : > { %v2992_v47 = vpack.c.bf16 %v2458_v17, %v2458_v17  ;;  %v2459_v46 = vadd.f32 %v3302_v39, %v4479_v60  ;;  %v2593_v7 = vmul.f32 %v2458_v17, %v2458_v17  ;;  %v2557_v42 = vsel %vm2553_vm1, %v2458_v17, 0.0 }
 0x18f   : > { %v2990_v59 = vpack.c.bf16 %v2456_v2, %v2456_v2  ;;  %v2591_v61 = vmul.f32 %v2456_v2, %v2456_v2  ;;  %v2457_v40 = vadd.f32 %v3303_v28, %v4479_v60  ;;  %v2554_v21 = vsel %vm2553_vm1, %v2456_v2, 0.0 }
 0x190   : > { %2539 = vst.msk [vmem:[%s4485_s13 + $0x8] sm:$0xf] %vm2536_vm0, %v2992_v47  ;;  %v2993_v37 = vpack.c.bf16 %v2459_v46, %v2459_v46  ;;  %v2594_v54 = vmul.f32 %v2459_v46, %v2459_v46  ;;  %v2610_v50 = vsel %vm2553_vm1, %v2593_v7, 0.0  ;;  %v2559_v5 = vsel %vm2553_vm1, %v2459_v46, 0.0 }
 0x191   : > { %2537 = vst.msk [vmem:[%s4485_s13] sm:$0xf] %vm2536_vm0, %v2990_v59  ;;  %v2991_v13 = vpack.c.bf16 %v2457_v40, %v2457_v40  ;;  %v2555_v6 = vsel %vm2553_vm1, %v2457_v40, 0.0  ;;  %v2592_v29 = vmul.f32 %v2457_v40, %v2457_v40  ;;  %v3288_v8 = vpop.f32.mrb[4].mxu0  ;;  %v2607_v43 = vsel %vm2553_vm1, %v2591_v61, 0.0 }
 0x192   : > { %2540 = vst.msk [vmem:[%s4485_s13 + $0xc] sm:$0xf] %vm2536_vm0, %v2993_v37  ;;  %v2556_v48 = vadd.f32 %v2555_v6, %v2554_v21  ;;  %v3304_v4 = vadd.f32 %v3288_v8, %v3198_v38  ;;  %v2386_v36 = vpop.f32.mrb[5].mxu0  ;;  %v2612_v58 = vsel %vm2553_vm1, %v2594_v54, 0.0 }
 0x193   : > { %2538 = vst.msk [vmem:[%s4485_s13 + $0x4] sm:$0xf] %vm2536_vm0, %v2991_v13  ;;  %v2608_v14 = vsel %vm2553_vm1, %v2592_v29, 0.0  ;;  %v3305_v18 = vadd.f32 %v2386_v36, %v1781_v56  ;;  %v3289_v41 = vpop.f32.mrb[6].mxu0 }
 0x194   : > { %v2558_v55 = vadd.f32 %v2557_v42, %v2556_v48  ;;  %v2609_v34 = vadd.f32 %v2608_v14, %v2607_v43  ;;  %v2462_v45 = vadd.f32 %v3304_v4, %v4479_v60  ;;  %v3306_v25 = vadd.f32 %v3289_v41, %v3199_v16  ;;  %v2389_v44 = vpop.f32.mrb[7].mxu0 }
 0x195   : > { %v2460_v10 = vadd.f32 %v3305_v18, %v4479_v60  ;;  %v3307_v27 = vadd.f32 %v2389_v44, %v1784_v49 }
 0x196   : > { %v2611_v0 = vadd.f32 %v2610_v50, %v2609_v34  ;;  %v2996_v33 = vpack.c.bf16 %v2462_v45, %v2462_v45  ;;  %v2560_v26 = vadd.f32 %v2559_v5, %v2558_v55  ;;  %v2463_v57 = vadd.f32 %v3306_v25, %v4479_v60 }
 0x197   : > { %v2994_v20 = vpack.c.bf16 %v2460_v10, %v2460_v10  ;;  %v2561_v11 = vsel %vm2553_vm1, %v2460_v10, 0.0  ;;  %v2595_v31 = vmul.f32 %v2460_v10, %v2460_v10  ;;  %v2461_v63 = vadd.f32 %v3307_v27, %v4479_v60 }
 0x198   : > { %2543 = vst.msk [vmem:[%s4485_s13 + $0x18] sm:$0xf] %vm2536_vm0, %v2996_v33  ;;  %v2613_v52 = vadd.f32 %v2612_v58, %v2611_v0  ;;  %v2562_v19 = vadd.f32 %v2561_v11, %v2560_v26  ;;  %v2997_v1 = vpack.c.bf16 %v2463_v57, %v2463_v57  ;;  %v2597_v32 = vmul.f32 %v2462_v45, %v2462_v45 }
 0x199   : > { %2541 = vst.msk [vmem:[%s4485_s13 + $0x10] sm:$0xf] %vm2536_vm0, %v2994_v20  ;;  %v2614_v51 = vsel %vm2553_vm1, %v2595_v31, 0.0  ;;  %v3292_v53 = vpop.f32.mrb[8].mxu0  ;;  %v2995_v62 = vpack.c.bf16 %v2461_v63, %v2461_v63  ;;  %v2563_v35 = vsel %vm2553_vm1, %v2461_v63, 0.0  ;;  %v2596_v38 = vmul.f32 %v2461_v63, %v2461_v63 }
 0x19a   : > { %v2615_v24 = vadd.f32 %v2614_v51, %v2613_v52  ;;  %v2402_v3 = vpop.f32.mrb[9].mxu0  ;;  %2544 = vst.msk [vmem:[%s4485_s13 + $0x1c] sm:$0xf] %vm2536_vm0, %v2997_v1  ;;  %v2564_v16 = vadd.f32 %v2563_v35, %v2562_v19  ;;  %v2565_v49 = vsel %vm2553_vm1, %v2462_v45, 0.0  ;;  %v2598_v23 = vmul.f32 %v2463_v57, %v2463_v57 }
 0x19b   : > { %v3293_v56 = vpop.f32.mrb[10].mxu0  ;;  %2542 = vst.msk [vmem:[%s4485_s13 + $0x14] sm:$0xf] %vm2536_vm0, %v2995_v62  ;;  %v2616_v30 = vsel %vm2553_vm1, %v2596_v38, 0.0  ;;  %v2618_v17 = vsel %vm2553_vm1, %v2597_v32, 0.0  ;;  %v2567_v39 = vsel %vm2553_vm1, %v2463_v57, 0.0 }
 0x19c   : > { %v2405_v9 = vpop.f32.mrb[11].mxu0  ;;  %v2566_v22 = vadd.f32 %v2565_v49, %v2564_v16  ;;  %v2617_v15 = vadd.f32 %v2616_v30, %v2615_v24  ;;  %v2620_v59 = vsel %vm2553_vm1, %v2598_v23, 0.0 }
 0x19e   : > { %v2619_v2 = vadd.f32 %v2618_v17, %v2617_v15  ;;  %v2568_v46 = vadd.f32 %v2567_v39, %v2566_v22 }
 0x19f   : > { %v3220_v12 = vpop.f32.mrb[8].mxu1 }
 0x1a0   : > { %v3308_v28 = vadd.f32 %v3292_v53, %v3220_v12  ;;  %v1918_v47 = vpop.f32.mrb[9].mxu1  ;;  %v2621_v21 = vadd.f32 %v2620_v59, %v2619_v2 }
 0x1a1   : > { %v3309_v61 = vadd.f32 %v2402_v3, %v1918_v47  ;;  %v3221_v40 = vpop.f32.mrb[10].mxu1  ;;  %v3296_v7 = vpop.f32.mrb[12].mxu0 }
 0x1a2   : > { %v2466_v37 = vadd.f32 %v3308_v28, %v4479_v60  ;;  %v3310_v13 = vadd.f32 %v3293_v56, %v3221_v40  ;;  %v1921_v6 = vpop.f32.mrb[11].mxu1  ;;  %v2418_v29 = vpop.f32.mrb[13].mxu0 }
 0x1a3   : > { %v2464_v8 = vadd.f32 %v3309_v61, %v4479_v60  ;;  %v3311_v54 = vadd.f32 %v2405_v9, %v1921_v6  ;;  %v3297_v48 = vpop.f32.mrb[14].mxu0 }
 0x1a4   : > { %v3000_v4 = vpack.c.bf16 %v2466_v37, %v2466_v37  ;;  %v2467_v36 = vadd.f32 %v3310_v13, %v4479_v60  ;;  %v2421_v42 = vpop.f32.mrb[15].mxu0  ;;  %v2601_v45 = vmul.f32 %v2466_v37, %v2466_v37  ;;  %v2573_v20 = vsel %vm2553_vm1, %v2466_v37, 0.0 }
 0x1a5   : > { %v2998_v43 = vpack.c.bf16 %v2464_v8, %v2464_v8  ;;  %v2569_v14 = vsel %vm2553_vm1, %v2464_v8, 0.0  ;;  %v2599_v18 = vmul.f32 %v2464_v8, %v2464_v8  ;;  %v2465_v41 = vadd.f32 %v3311_v54, %v4479_v60 }
 0x1a6   : > { %2547 = vst.msk [vmem:[%s4485_s13 + $0x28] sm:$0xf] %vm2536_vm0, %v3000_v4  ;;  %v2570_v55 = vadd.f32 %v2569_v14, %v2568_v46  ;;  %v3001_v34 = vpack.c.bf16 %v2467_v36, %v2467_v36  ;;  %v2602_v26 = vmul.f32 %v2467_v36, %v2467_v36  ;;  %v2575_v53 = vsel %vm2553_vm1, %v2467_v36, 0.0 }
 0x1a7   : > { %2545 = vst.msk [vmem:[%s4485_s13 + $0x20] sm:$0xf] %vm2536_vm0, %v2998_v43  ;;  %v2622_v25 = vsel %vm2553_vm1, %v2599_v18, 0.0  ;;  %v2999_v44 = vpack.c.bf16 %v2465_v41, %v2465_v41  ;;  %v2571_v50 = vsel %vm2553_vm1, %v2465_v41, 0.0  ;;  %v3224_v10 = vpop.f32.mrb[12].mxu1  ;;  %v2600_v58 = vmul.f32 %v2465_v41, %v2465_v41 }
 0x1a8   : > { %v2623_v27 = vadd.f32 %v2622_v25, %v2621_v21  ;;  %2548 = vst.msk [vmem:[%s4485_s13 + $0x2c] sm:$0xf] %vm2536_vm0, %v3001_v34  ;;  %v2572_v5 = vadd.f32 %v2571_v50, %v2570_v55  ;;  %v3312_v0 = vadd.f32 %v3296_v7, %v3224_v10  ;;  %v1934_v33 = vpop.f32.mrb[13].mxu1  ;;  %v2626_v32 = vsel %vm2553_vm1, %v2601_v45, 0.0 }
 0x1a9   : > { %2546 = vst.msk [vmem:[%s4485_s13 + $0x24] sm:$0xf] %vm2536_vm0, %v2999_v44  ;;  %v3313_v11 = vadd.f32 %v2418_v29, %v1934_v33  ;;  %v3225_v31 = vpop.f32.mrb[14].mxu1  ;;  %v2624_v57 = vsel %vm2553_vm1, %v2600_v58, 0.0  ;;  %v2628_v49 = vsel %vm2553_vm1, %v2602_v26, 0.0 }
 0x1aa   : > { %v2574_v52 = vadd.f32 %v2573_v20, %v2572_v5  ;;  %v2470_v63 = vadd.f32 %v3312_v0, %v4479_v60  ;;  %v3314_v19 = vadd.f32 %v3297_v48, %v3225_v31  ;;  %v1937_v51 = vpop.f32.mrb[15].mxu1  ;;  %v2625_v24 = vadd.f32 %v2624_v57, %v2623_v27 }
 0x1ab   : > { %v2468_v1 = vadd.f32 %v3313_v11, %v4479_v60  ;;  %v3315_v3 = vadd.f32 %v2421_v42, %v1937_v51 }
 0x1ac   : > { %v3004_v62 = vpack.c.bf16 %v2470_v63, %v2470_v63  ;;  %v2576_v35 = vadd.f32 %v2575_v53, %v2574_v52  ;;  %v2627_v38 = vadd.f32 %v2626_v32, %v2625_v24  ;;  %v2471_v30 = vadd.f32 %v3314_v19, %v4479_v60 }
 0x1ad   : > { %v3002_v56 = vpack.c.bf16 %v2468_v1, %v2468_v1  ;;  %v2577_v16 = vsel %vm2553_vm1, %v2468_v1, 0.0  ;;  %v2603_v9 = vmul.f32 %v2468_v1, %v2468_v1  ;;  %v2469_v22 = vadd.f32 %v3315_v3, %v4479_v60 }
 0x1ae   : > { %2551 = vst.msk [vmem:[%s4485_s13 + $0x38] sm:$0xf] %vm2536_vm0, %v3004_v62  ;;  %v2578_v23 = vadd.f32 %v2577_v16, %v2576_v35  ;;  %v2629_v15 = vadd.f32 %v2628_v49, %v2627_v38  ;;  %v3005_v39 = vpack.c.bf16 %v2471_v30, %v2471_v30  ;;  %v2605_v2 = vmul.f32 %v2470_v63, %v2470_v63 }
 0x1af   : > { %2549 = vst.msk [vmem:[%s4485_s13 + $0x30] sm:$0xf] %vm2536_vm0, %v3002_v56  ;;  %v2630_v17 = vsel %vm2553_vm1, %v2603_v9, 0.0  ;;  %v3003_v12 = vpack.c.bf16 %v2469_v22, %v2469_v22  ;;  %v2579_v47 = vsel %vm2553_vm1, %v2469_v22, 0.0  ;;  %v2604_v46 = vmul.f32 %v2469_v22, %v2469_v22 }
 0x1b0   : > { %v2631_v28 = vadd.f32 %v2630_v17, %v2629_v15  ;;  %2552 = vst.msk [vmem:[%s4485_s13 + $0x3c] sm:$0xf] %vm2536_vm0, %v3005_v39  ;;  %v2580_v59 = vadd.f32 %v2579_v47, %v2578_v23  ;;  %v2581_v60 = vsel %vm2553_vm1, %v2470_v63, 0.0  ;;  %v2606_v61 = vmul.f32 %v2471_v30, %v2471_v30 }
 0x1b1   : > { %2550 = vst.msk [vmem:[%s4485_s13 + $0x34] sm:$0xf] %vm2536_vm0, %v3003_v12  ;;  %v2632_v40 = vsel %vm2553_vm1, %v2604_v46, 0.0  ;;  %v2634_v21 = vsel %vm2553_vm1, %v2605_v2, 0.0  ;;  %v2583_v13 = vsel %vm2553_vm1, %v2471_v30, 0.0 }
 0x1b2   : > { %v2582_v7 = vadd.f32 %v2581_v60, %v2580_v59  ;;  %v2633_v37 = vadd.f32 %v2632_v40, %v2631_v28  ;;  %v2636_v8 = vsel %vm2553_vm1, %v2606_v61, 0.0 }
 0x1b4   : > { %v2584_v6 = vadd.f32 %v2583_v13, %v2582_v7  ;;  %v2635_v29 = vadd.f32 %v2634_v21, %v2633_v37 }
 0x1b6   : > { %v2585_v54 = vrot.slane %v2584_v6, 4  ;;  %v2637_v48 = vadd.f32 %v2636_v8, %v2635_v29 }
 0x1b8   : > { %v2586_v4 = vadd.f32 %v2585_v54, %v2584_v6  ;;  %v2638_v36 = vrot.slane %v2637_v48, 4 }
 0x1ba   : > { %v2587_v42 = vrot.slane %v2586_v4, 2  ;;  %v2639_v43 = vadd.f32 %v2638_v36, %v2637_v48 }
 0x1bc   : > { %v2588_v14 = vadd.f32 %v2587_v42, %v2586_v4  ;;  %v2640_v18 = vrot.slane %v2639_v43, 2 }
 0x1be   : > { %v2589_v41 = vrot.slane %v2588_v14, 1  ;;  %v2641_v55 = vadd.f32 %v2640_v18, %v2639_v43 }
 0x1c0   : > { %v2642_v34 = vrot.slane %v2641_v55, 1  ;;  %v2590_v45 = vadd.f32 %v2589_v41, %v2588_v14 }
 0x1c2   : > { %v2643_v25 = vadd.f32 %v2642_v34, %v2641_v55 }
 0x1c4   : > { %v2645_v44 = vsel %vm2644_vm7, %v2590_v45, %v2643_v25 }
 0x1c5   : > { %2647 = vst.msk [vmem:[%s391_s19] sm:$0x3] %vm2646_vm13, %v2645_v44 }
 0x1c6 PF: > { %s17_s25 = sadd.s32 1, %s3598_s25   ;;  %s4629_s21 = smov %s3590_s23 }
 0x1c7   : > { %p14_p10 = scmp.ge.s32.totalorder %s17_s25, 6   ;;  %s4630_s22 = smov %s3594_s24 }
 0x1c8   : > { %s4631_s23 = smov %s4634_s26  ;;  %s4632_s24 = smov %s4638_s27 }
 0x1c9   :  { %16 = sbr.rel (!%p14_p10) target bundleno = 3 (0x3), region = 102 }

// kernel: resnet_block_2d.7
= control target key start
LH: loop header
LB: loop body
LE: loop exit
PB: predicated region body
PF: predicated region fallthrough
CT: control target
= control target key end

     0   :  { %s3565_s21 = smov 0   ;;  %s3567_s22 = smov 0   ;;  %s4454_s0 = inlined_call_operand.vmem [shape: bf16[2,2,160,16], index: 0, kind: input, shape index: {}]   ;;  %s4455_s1 = inlined_call_operand.vmem [shape: bf16[9,16,16], index: 1, kind: input, shape index: {}]   ;;  %s4456_s2 = inlined_call_operand.vmem [shape: f32[1,16], index: 2, kind: input, shape index: {}]   ;;  %s4457_s3 = inlined_call_operand.vmem [shape: f32[2,1,16], index: 3, kind: input, shape index: {}]   ;;  %s4458_s4 = inlined_call_operand.vmem [shape: f32[2,1,16], index: 4, kind: input, shape index: {}]   ;;  %s4459_s5 = inlined_call_operand.vmem [shape: bf16[2,256,16], index: 5, kind: input, shape index: {}]   ;;  %s4460_s6 = inlined_call_operand.vmem [shape: f32[2,256,16], index: 6, kind: output, shape index: {}]  }
   0x1   :  { %s3569_s23 = smov 0   ;;  %s3571_s24 = smov 0  }
   0x2   :  { %s3573_s25 = smov 0  }
   0x3 LB: > { %s28_s26 = sadd.s32 1, %s3520_s23  ;;  %s31_s27 = sadd.s32 1, %s3524_s24  ;;  %s3528_s25 = sphi %s3573_s25, %s16_s25   ;;  %s3524_s24 = sphi %s3571_s24, %s4500_s24   ;;  %s3520_s23 = sphi %s3569_s23, %s4499_s23   ;;  %s3516_s22 = sphi %s3567_s22, %s4498_s22   ;;  %s3512_s21 = sphi %s3565_s21, %s4497_s21  }
   0x4   : > { %p29_p0 = scmp.ge.s32.totalorder %s28_s26, 2  ;;  %p2767_p1 = scmp.ge.s32.totalorder %s3528_s25, 1 }
   0x5   : > { %p296_p2 = scmp.lt.s32.totalorder %s3528_s25, 5 }
   0x6   : > { %s4502_s26 = smov (%p29_p0, %s28_s26), 0  ;;  %s4504_s27 = smov (!%p29_p0, %s31_s27), %s3524_s24 }
   0x7   : > { %p297_p3 = pnand %p2767_p1, %p296_p2  ;;  %p33_p4 = scmp.ge.s32.totalorder %s4504_s27, 2 }
   0x8   : > { %v3400_v0 = vld [vmem:[%s4455_s1 + $0x8] sm:$0xff] (!%p297_p3)   ;;  %p362_p5 = scmp.lt.s32.totalorder (!%p297_p3), %s3516_s22, 1  ;;  %v3603_v1 = vld [vmem:[%s4455_s1 + $0x20] sm:$0xff] (!%p297_p3)   ;;  %p364_p6 = scmp.lt.s32.totalorder (!%p297_p3), %s3512_s21, 1  ;;  %vm1357_vm0 = vcmask (!%p297_p3), 130048  }
   0x9   : > { %s4506_s27 = smov (%p33_p4, %s4504_s27), 0  ;;  %300 = sbr.rel (%p297_p3) target bundleno = 433 (0x1b1), region = 44 }
   0xa   : > { %3066 = vmatprep.subr.bf16.mxu1 (!%p297_p3), %v3400_v0  ;;  %v3611_v2 = vld [vmem:[%s4455_s1] sm:$0xff] (!%p297_p3)   ;;  %3138 = vmatprep.subr.bf16.mxu0 (!%p297_p3), %v3603_v1  ;;  %v3618_v3 = vld [vmem:[%s4455_s1 + $0x28] sm:$0xff] (!%p297_p3)   ;;  %p666_p7 = scmp.eq.s32.totalorder (!%p297_p3), %s3512_s21, 0  ;;  %p710_p8 = scmp.eq.s32.totalorder (!%p297_p3), %s3512_s21, 1 }
   0xb   : > { %3067 = vmatpush3.bf16.msra.mxu1 (!%p297_p3), %v3400_v0  ;;  %3139 = vmatpush3.bf16.msra.mxu0 (!%p297_p3), %v3603_v1  ;;  %s2769_s30 = sshll.u32 (!%p297_p3), %s3512_s21, 4 }
   0xc   : > { %3084 = vmatprep.subr.bf16.mxu1 (!%p297_p3), %v3611_v2  ;;  %3156 = vmatprep.subr.bf16.mxu0 (!%p297_p3), %v3618_v3  ;;  %p387_p9 = scmp.lt.s32.totalorder (!%p297_p3), %s2769_s30, 31 }
  0x10   : > { %s4508_s22 = smov (!%p362_p5, %s3516_s22), 1  ;;  %s4510_s30 = smov (!%p387_p9, %s2769_s30), 31 }
  0x11   : > { %s365_s10 = scalar_select %p364_p6, %s3512_s21, 1 }
  0x12   : > { %s3359_s13 = smul.u32 40, %s4508_s22  ;;  %s380_s17 = scalar_lea.vmem %s4457_s3, %s4508_s22 }
  0x13   : > { %s3358_s14 = smul.u32 20, %s365_s10  ;;  %s383_s8 = scalar_lea.vmem %s4458_s4, %s4508_s22  ;;  %v3637_v4 = vld [vmem:[%s380_s17] ss:$0 sm:$0xff] }
  0x14   : > { %v3643_v13 = vld [vmem:[%s383_s8] ss:$0 sm:$0xff]  ;;  %s3722_s9 = scalar_select %p666_p7, 1, 0 }
  0x15   : > { %s368_s18 = sadd.s32 %s3359_s13, %s3358_s14  ;;  %s2770_s7 = sshll.u32 %s4508_s22, 5 }
  0x16   : > { %s2768_s19 = sshll.u32 %s368_s18, 2  ;;  %s393_s8 = sadd.s32 %s2770_s7, %s4510_s30 }
  0x17   : > { %s3631_s29 = scalar_lea.vmem %s4454_s0, %s2768_s19  ;;  %s2774_s13 = sshll.u32 %s393_s8, 3 }
  0x18   : > { %v2969_v5 = vld [vmem:[%s3631_s29 + $0x8] sm:$0xff]   ;;  %v2898_v6 = vld [vmem:[%s3631_s29] sm:$0xff]   ;;  %v2970_v7 = vld [vmem:[%s3631_s29 + $0x10] sm:$0xff]   ;;  %s3996_s16 = scalar_select %p710_p8, 1, 0 }
  0x19   : > { %v2903_v8 = vunpack.c.l.bf16 %v2969_v5  ;;  %v2904_v9 = vunpack.c.h.bf16 %v2969_v5  ;;  %v2899_v10 = vunpack.c.l.bf16 %v2898_v6  ;;  %v2900_v11 = vunpack.c.h.bf16 %v2898_v6  ;;  %v2971_v12 = vld [vmem:[%s3631_s29 + $0x18] sm:$0xff]   ;;  %v2972_v24 = vld [vmem:[%s3631_s29 + $0x20] sm:$0xff]   ;;  %v2973_v33 = vld [vmem:[%s3631_s29 + $0x28] sm:$0xff]  }
  0x1a   : > { %v2907_v14 = vunpack.c.l.bf16 %v2970_v7  ;;  %v2908_v15 = vunpack.c.h.bf16 %v2970_v7  ;;  %v2911_v16 = vunpack.c.l.bf16 %v2971_v12  ;;  %v2912_v23 = vunpack.c.h.bf16 %v2971_v12  ;;  %v2974_v45 = vld [vmem:[%s3631_s29 + $0x30] sm:$0xff]   ;;  %v3714_v6 = vld [vmem:[%s3631_s29 + $0x38] sm:$0xff]  }
  0x1b   : > { %v461_v17 = vmul.f32 %v2903_v8, %v3637_v4  ;;  %v462_v18 = vmul.f32 %v2904_v9, %v3637_v4  ;;  %v459_v19 = vmul.f32 %v2899_v10, %v3637_v4  ;;  %v460_v20 = vmul.f32 %v2900_v11, %v3637_v4 }
  0x1c   : > { %v463_v21 = vmul.f32 %v2907_v14, %v3637_v4  ;;  %v464_v22 = vmul.f32 %v2908_v15, %v3637_v4  ;;  %v465_v31 = vmul.f32 %v2911_v16, %v3637_v4  ;;  %v466_v32 = vmul.f32 %v2912_v23, %v3637_v4 }
  0x1d   : > { %v3653_v25 = vadd.f32 %v3643_v13, %v461_v17  ;;  %v3656_v26 = vadd.f32 %v3643_v13, %v462_v18  ;;  %v3659_v27 = vadd.f32 %v3643_v13, %v459_v19  ;;  %v3662_v28 = vadd.f32 %v3643_v13, %v460_v20 }
  0x1e   : > { %v3665_v29 = vadd.f32 %v3643_v13, %v463_v21  ;;  %v3668_v30 = vadd.f32 %v3643_v13, %v464_v22  ;;  %v2915_v37 = vunpack.c.l.bf16 %v2972_v24  ;;  %v3680_v41 = vadd.f32 %v3643_v13, %v465_v31 }
  0x1f   : > { %v2779_v34 = vmul.f32 -1.442695, %v3653_v25  ;;  %v2780_v35 = vmul.f32 -1.442695, %v3656_v26  ;;  %v2777_v36 = vmul.f32 -1.442695, %v3659_v27  ;;  %v3683_v42 = vadd.f32 %v3643_v13, %v466_v32 }
  0x20   : > { %v2778_v38 = vmul.f32 -1.442695, %v3662_v28  ;;  %v2781_v39 = vmul.f32 -1.442695, %v3665_v29  ;;  %v2782_v40 = vmul.f32 -1.442695, %v3668_v30  ;;  %v2916_v43 = vunpack.c.h.bf16 %v2972_v24 }
  0x21   : > { %3409 = vpow2.f32 %v2779_v34  ;;  %v467_v44 = vmul.f32 %v2915_v37, %v3637_v4  ;;  %v2783_v46 = vmul.f32 -1.442695, %v3680_v41  ;;  %v2919_v47 = vunpack.c.l.bf16 %v2973_v33 }
  0x22   : > { %3411 = vpow2.f32 %v2780_v35  ;;  %v2920_v48 = vunpack.c.h.bf16 %v2973_v33  ;;  %v2784_v49 = vmul.f32 -1.442695, %v3683_v42  ;;  %v468_v50 = vmul.f32 %v2916_v43, %v3637_v4 }
  0x23   : > { %3413 = vpow2.f32 %v2777_v36  ;;  %v3691_v51 = vadd.f32 %v3643_v13, %v467_v44  ;;  %v469_v52 = vmul.f32 %v2919_v47, %v3637_v4  ;;  %v2923_v54 = vunpack.c.l.bf16 %v2974_v45 }
  0x24   : > { %3415 = vpow2.f32 %v2778_v38  ;;  %v470_v53 = vmul.f32 %v2920_v48, %v3637_v4  ;;  %v3696_v55 = vadd.f32 %v3643_v13, %v468_v50  ;;  %v2924_v0 = vunpack.c.h.bf16 %v2974_v45  ;;  %v3736_v50 = vld [vmem:[%s3631_s29 + $0x48] sm:$0xff]  }
  0x25   : > { %3417 = vpow2.f32 %v2781_v39  ;;  %v2785_v56 = vmul.f32 -1.442695, %v3691_v51  ;;  %v3700_v57 = vadd.f32 %v3643_v13, %v469_v52  ;;  %v471_v59 = vmul.f32 %v2923_v54, %v3637_v4  ;;  %v3739_v52 = vld [vmem:[%s3631_s29 + $0x40] sm:$0xff]  }
  0x26   : > { %3419 = vpow2.f32 %v2782_v40  ;;  %v3703_v58 = vadd.f32 %v3643_v13, %v470_v53  ;;  %v2786_v60 = vmul.f32 -1.442695, %v3696_v55  ;;  %v2927_v12 = vunpack.c.l.bf16 %v3714_v6 }
  0x27   : > { %3421 = vpow2.f32 %v2783_v46  ;;  %v2787_v61 = vmul.f32 -1.442695, %v3700_v57  ;;  %v3710_v63 = vadd.f32 %v3643_v13, %v471_v59  ;;  %v472_v16 = vmul.f32 %v2924_v0, %v3637_v4 }
  0x28   : > { %3423 = vpow2.f32 %v2784_v49  ;;  %v2788_v62 = vmul.f32 -1.442695, %v3703_v58  ;;  %v645_v19 = vlaneseq  ;;  %v473_v24 = vmul.f32 %v2927_v12, %v3637_v4 }
  0x29   : > { %3425 = vpow2.f32 %v2785_v56  ;;  %v2789_v5 = vmul.f32 -1.442695, %v3710_v63  ;;  %v3725_v33 = vadd.f32 %v3643_v13, %v472_v16  ;;  %v688_v45 = vstv %s3722_s9  ;;  %s2771_s9 = sshll.u32 %s393_s8, 2 }
  0x2a   : > { %3427 = vpow2.f32 %v2786_v60  ;;  %v3727_v35 = vshrl.u32 %v645_v19, 7  ;;  %v3730_v43 = vadd.f32 %v3643_v13, %v473_v24  ;;  %vm3751_vm2 = vcmp.eq.s32.totalorder %v688_v45, 1  ;;  %s4371_s12 = scalar_lea.vmem %s4459_s5, %s2771_s9 }
  0x2b   : > { %v3410_v7 = vpop.eup %3409  ;;  %3429 = vpow2.f32 %v2787_v61  ;;  %v2790_v46 = vmul.f32 -1.442695, %v3725_v33  ;;  %v2928_v0 = vunpack.c.h.bf16 %v3714_v6  ;;  %v2932_v45 = vunpack.c.h.bf16 %v3739_v52 }
  0x2c   : > { %v3412_v8 = vpop.eup %3411  ;;  %v567_v9 = vadd.f32 1.0, %v3410_v7  ;;  %3431 = vpow2.f32 %v2788_v62  ;;  %v649_v48 = vadd.s32 24, %v3727_v35  ;;  %v3742_v54 = vadd.s32 16, %v3727_v35 }
  0x2d   : > { %v3414_v10 = vpop.eup %3413  ;;  %v568_v11 = vadd.f32 1.0, %v3412_v8  ;;  %3433 = vpow2.f32 %v2789_v5  ;;  %vm1235_vm1 = vcmp.lt.s32.totalorder %v3727_v35, 7  ;;  %v3746_v56 = vadd.s32 40, %v3727_v35 }
  0x2e   : > { %v3416_v14 = vpop.eup %3415  ;;  %3435 = vrcp.f32 %v567_v9  ;;  %v565_v15 = vadd.f32 1.0, %v3414_v10  ;;  %v2791_v5 = vmul.f32 -1.442695, %v3730_v43  ;;  %v2936_v9 = vunpack.c.h.bf16 %v3736_v50 }
  0x2f   : > { %v3418_v17 = vpop.eup %3417  ;;  %3437 = vrcp.f32 %v568_v11  ;;  %v566_v18 = vadd.f32 1.0, %v3416_v14  ;;  %v2931_v10 = vunpack.c.l.bf16 %v3739_v52  ;;  %v859_v12 = vand.u32 15, %v649_v48 }
  0x30   : > { %v3420_v20 = vpop.eup %3419  ;;  %3439 = vrcp.f32 %v565_v15  ;;  %v569_v21 = vadd.f32 1.0, %v3418_v17  ;;  %v474_v19 = vmul.f32 %v2928_v0, %v3637_v4  ;;  %vm1114_vm7 = vcmp.lt.s32.totalorder %v3727_v35, 1 }
  0x31   : > { %v3422_v22 = vpop.eup %3421  ;;  %3441 = vrcp.f32 %v566_v18  ;;  %v570_v23 = vadd.f32 1.0, %v3420_v20  ;;  %vm3821_vm3 = vcmp.eq.s32.totalorder %v859_v12, 15 }
  0x32   : > { %v3424_v31 = vpop.eup %3423  ;;  %3443 = vrcp.f32 %v569_v21  ;;  %v571_v32 = vadd.f32 1.0, %v3422_v22  ;;  %v873_v21 = vand.u32 15, %v3746_v56  ;;  %v478_v22 = vmul.f32 %v2936_v9, %v3637_v4 }
  0x33   : > { %v3426_v34 = vpop.eup %3425  ;;  %3445 = vrcp.f32 %v570_v23  ;;  %v572_v36 = vadd.f32 1.0, %v3424_v31  ;;  %v475_v23 = vmul.f32 %v2931_v10, %v3637_v4  ;;  %v476_v9 = vmul.f32 %v2932_v45, %v3637_v4 }
  0x34   : > { %v3428_v37 = vpop.eup %3427  ;;  %3447 = vrcp.f32 %v571_v32  ;;  %v573_v38 = vadd.f32 1.0, %v3426_v34  ;;  %v3826_v48 = vadd.f32 %v3643_v13, %v478_v22  ;;  %vm3870_vm4 = vcmp.eq.s32.totalorder %v873_v21, 15 }
  0x35   : > { %v3430_v39 = vpop.eup %3429  ;;  %3449 = vrcp.f32 %v572_v36  ;;  %v574_v40 = vadd.f32 1.0, %v3428_v37  ;;  %v3834_v52 = vadd.f32 %v3643_v13, %v475_v23 }
  0x36   : > { %v3432_v44 = vpop.eup %3431  ;;  %3451 = vrcp.f32 %v573_v38  ;;  %v575_v49 = vadd.f32 1.0, %v3430_v39  ;;  %v3799_v39 = vadd.s32 72, %v3727_v35 }
  0x37   : > { %v3434_v47 = vpop.eup %3433  ;;  %3453 = vrcp.f32 %v574_v40  ;;  %v576_v59 = vadd.f32 1.0, %v3432_v44 }
  0x38   : > { %v3436_v53 = vpop.eup %3435  ;;  %3455 = vpow2.f32 %v2790_v46  ;;  %v577_v14 = vadd.f32 1.0, %v3434_v47 }
  0x39   : > { %v3438_v60 = vpop.eup %3437  ;;  %v3749_v61 = vmul.f32 %v3436_v53, %v3653_v25  ;;  %3457 = vrcp.f32 %v575_v49  ;;  %v3831_v49 = vld [vmem:[%s4455_s1 + $0x10] sm:$0xff]  }
  0x3a   : > { %v3440_v7 = vpop.eup %3439  ;;  %v3758_v8 = vmul.f32 %v3438_v60, %v3656_v26  ;;  %3459 = vrcp.f32 %v576_v59  ;;  %v3767_v26 = vadd.s32 56, %v3727_v35  ;;  %v2935_v60 = vunpack.c.l.bf16 %v3736_v50 }
  0x3b   : > { %v3442_v11 = vpop.eup %3441  ;;  %v625_v25 = vmul.f32 %v3440_v7, %v3659_v27  ;;  %3461 = vpow2.f32 %v2791_v5  ;;  %v1217_v44 = vrot.slane %v3749_v61, 1 }
  0x3c   : > { %v3444_v15 = vpop.eup %3443  ;;  %v1327_v6 = vpack.c.bf16 %v3758_v8, %v3749_v61  ;;  %v626_v16 = vmul.f32 %v3442_v11, %v3662_v28  ;;  %3463 = vrcp.f32 %v577_v14 }
  0x3d   : > { %v3446_v17 = vpop.eup %3445  ;;  %v3771_v18 = vsel %vm3751_vm2, 0.0, %v625_v25  ;;  %v3774_v27 = vmul.f32 %v3444_v15, %v3665_v29  ;;  %v1218_v29 = vrot.slane %v3758_v8, 1 }
  0x3e   : > { %v3448_v20 = vpop.eup %3447  ;;  %3140 = vmatprep.mubr.msk.bf16.mxu0 %vm1357_vm0, %v1327_v6  ;;  %v3780_v28 = vsel %vm3751_vm2, 0.0, %v626_v16  ;;  %v3789_v32 = vmul.f32 %v3446_v17, %v3668_v30  ;;  %v2796_v16 = vmul.f32 -1.442695, %v3826_v48  ;;  %v477_v17 = vmul.f32 %v2935_v60, %v3637_v4 }
  0x3f   : > { %v3450_v24 = vpop.eup %3449  ;;  %v1326_v31 = vpack.c.bf16 %v3780_v28, %v3771_v18  ;;  %v3792_v36 = vmul.f32 %v3448_v20, %v3680_v41  ;;  %v1219_v38 = vrot.slane %v3774_v27, 1  ;;  %v3810_v41 = vld [vmem:[%s4455_s1 + $0x30] sm:$0xff]   ;;  %v1252_v50 = vsel %vm1235_vm1, %v1217_v44, %v1218_v29 }
  0x40   : > { %v3452_v34 = vpop.eup %3451  ;;  %v3795_v37 = vmul.f32 %v3450_v24, %v3683_v42  ;;  %v3805_v30 = vpack.c.bf16 %v3789_v32, %v3774_v27  ;;  %v3813_v42 = vadd.f32 %v3643_v13, %v474_v19  ;;  %v1220_v0 = vrot.slane %v3789_v32, 1 }
  0x41   : > { %v3454_v40 = vpop.eup %3453  ;;  %3068 = vmatprep.mubr.msk.bf16.mxu1 %vm1357_vm0, %v1326_v31  ;;  %v3840_v53 = vmul.f32 %v3452_v34, %v3691_v51  ;;  %v1251_v59 = vsel %vm1235_vm1, %v1218_v29, %v1219_v38  ;;  %v887_v51 = vand.u32 15, %v3767_v26  ;;  %v2793_v26 = vmul.f32 -1.442695, %v3834_v52 }
  0x42   : > { %3069 = vmatmul.mubr.msk.bf16.vlgmr.msra.gmra.mrb[0].mxu1 %vm1357_vm0, %v1327_v6  ;;  %v3819_v46 = vpack.c.bf16 %v3795_v37, %v3792_v36  ;;  %3141 = vmatmul.mubr.msk.bf16.vlgmr.msra.gmra.mrb[0].mxu0 %vm1357_vm0, %v3805_v30  ;;  %v3843_v56 = vmul.f32 %v3454_v40, %v3696_v55  ;;  %v3456_v62 = vpop.eup %3455  ;;  %v3857_v55 = vadd.s32 88, %v3727_v35  ;;  %v2792_v7 = vmul.f32 -1.442695, %v3813_v42 }
  0x43   : > { %3085 = vmatpush3.bf16.msra.mxu1 %v3611_v2  ;;  %3157 = vmatpush3.bf16.msra.mxu0 %v3618_v3  ;;  %v1221_v2 = vrot.slane %v3792_v36, 1  ;;  %v3458_v5 = vpop.eup %3457  ;;  %v1299_v3 = vsel %vm3821_vm3, 0.0, %v1251_v59  ;;  %v1222_v25 = vrot.slane %v3795_v37, 1  ;;  %v1223_v12 = vrot.slane %v3840_v53, 1 }
  0x44   : > { %3144 = vmatprep.mubr.msk.bf16.mxu0 %vm1357_vm0, %v3819_v46  ;;  %3072 = vmatprep.mubr.msk.bf16.mxu1 %vm1357_vm0, %v3805_v30  ;;  %v3460_v10 = vpop.eup %3459  ;;  %v578_v14 = vadd.f32 1.0, %v3456_v62  ;;  %v3879_v6 = vpack.c.bf16 %v3843_v56, %v3840_v53  ;;  %v3884_v19 = vpack.c.bf16 %v1299_v3, %v1252_v50  ;;  %vm3888_vm5 = vcmp.eq.s32.totalorder %v887_v51, 15 }
  0x45   : > { %3174 = vmatprep.subr.bf16.mxu0 %v3810_v41  ;;  %3102 = vmatprep.subr.bf16.mxu1 %v3831_v49  ;;  %v3462_v15 = vpop.eup %3461  ;;  %v1249_v20 = vsel %vm1235_vm1, %v1220_v0, %v1221_v2  ;;  %v901_v24 = vand.u32 15, %v3799_v39  ;;  %v3894_v29 = vadd.f32 %v3643_v13, %v476_v9  ;;  %v3899_v4 = vmul.f32 %v3458_v5, %v3700_v57 }
  0x46   : > { %3465 = vrcp.f32 %v578_v14  ;;  %v579_v21 = vadd.f32 1.0, %v3462_v15  ;;  %v3464_v22 = vpop.eup %3463  ;;  %v3902_v31 = vmul.f32 %v3460_v10, %v3703_v58  ;;  %v1247_v34 = vsel %vm1235_vm1, %v1222_v25, %v1223_v12  ;;  %v4173_v15 = vld [vmem:[%s4455_s1 + $0x18] sm:$0xff]  }
  0x47   : > { %3467 = vpow2.f32 %v2792_v7  ;;  %v1250_v57 = vsel %vm1235_vm1, %v1219_v38, %v1220_v0  ;;  %v1301_v58 = vsel %vm3870_vm4, 0.0, %v1249_v20  ;;  %v915_v39 = vand.u32 15, %v3857_v55 }
  0x48   : > { %3469 = vrcp.f32 %v579_v21  ;;  %v1248_v40 = vsel %vm1235_vm1, %v1221_v2, %v1222_v25  ;;  %v3924_v45 = vmul.f32 %v3464_v22, %v3710_v63  ;;  %v3927_v47 = vadd.f32 %v3643_v13, %v477_v17 }
  0x49   : > { %3471 = vpow2.f32 %v2796_v16  ;;  %v1303_v38 = vsel %vm3888_vm5, 0.0, %v1247_v34  ;;  %v1224_v59 = vrot.slane %v3843_v56, 1  ;;  %v1225_v60 = vrot.slane %v3899_v4, 1 }
  0x4a   : > { %3073 = vmatmul.mubr.msk.bf16.gmra.mrb[4].mxu1 %vm1357_vm0, %v3819_v46  ;;  %3145 = vmatmul.mubr.msk.bf16.gmra.mrb[4].mxu0 %vm1357_vm0, %v3879_v6  ;;  %3473 = vpow2.f32 %v2793_v26  ;;  %v2794_v62 = vmul.f32 -1.442695, %v3894_v29  ;;  %v3936_v0 = vpack.c.bf16 %v3902_v31, %v3899_v4  ;;  %v1226_v63 = vrot.slane %v3902_v31, 1 }
  0x4b   : > { %3076 = vmatprep.mubr.msk.bf16.mxu1 %vm1357_vm0, %v3879_v6  ;;  %3158 = vmatprep.mubr.msk.bf16.mxu0 %vm1357_vm0, %v3884_v19  ;;  %v1227_v2 = vrot.slane %v3924_v45, 1  ;;  %v2795_v13 = vmul.f32 -1.442695, %v3927_v47  ;;  %v852_v51 = vand.u32 15, %v3742_v54  ;;  %v3942_v55 = vpack.c.bf16 %v1301_v58, %v1250_v57  ;;  %v3957_v54 = vld [vmem:[%s4455_s1 + $0x38] sm:$0xff]  }
  0x4c   : > { %v659_v5 = vadd.s32 104, %v3727_v35  ;;  %3475 = vpow2.f32 %v2794_v62  ;;  %v3945_v50 = vpack.c.bf16 %v1303_v38, %v1248_v40  ;;  %vm3948_vm6 = vcmp.eq.s32.totalorder %v901_v24, 15 }
  0x4d   : > { %3477 = vpow2.f32 %v2795_v13  ;;  %v1245_v7 = vsel %vm1235_vm1, %v1224_v59, %v1225_v60  ;;  %vm3962_vm8 = vcmp.eq.s32.totalorder %v915_v39, 15  ;;  %v1243_v11 = vsel %vm1235_vm1, %v1226_v63, %v1227_v2 }
  0x4e   : > { %v650_v25 = vadd.s32 32, %v3727_v35  ;;  %vm3971_vm9 = vcmp.eq.s32.totalorder %v852_v51, 0  ;;  %v929_v26 = vand.u32 15, %v659_v5  ;;  %v3981_v17 = vadd.s32 120, %v3727_v35 }
  0x4f   : > { %v1246_v21 = vsel %vm1235_vm1, %v1223_v12, %v1224_v59  ;;  %v1305_v22 = vsel %vm3948_vm6, 0.0, %v1245_v7  ;;  %v1244_v23 = vsel %vm1235_vm1, %v1225_v60, %v1226_v63  ;;  %v1307_v12 = vsel %vm3962_vm8, 0.0, %v1243_v11 }
  0x50   : > { %v3466_v9 = vpop.eup %3465  ;;  %v1096_v39 = vrot.slane %v3749_v61, 7  ;;  %v866_v38 = vand.u32 15, %v650_v25  ;;  %v1095_v59 = vrot.slane %v3780_v28, 7  ;;  %v4016_v63 = vpack.c.bf16 %v1307_v12, %v1244_v23 }
  0x51   : > { %v3468_v14 = vpop.eup %3467  ;;  %v3978_v16 = vmul.f32 %v3466_v9, %v3725_v33  ;;  %v732_v13 = vstv %s3996_s16  ;;  %v838_v51 = vand.u32 15, %v3727_v35  ;;  %vm4020_vm10 = vcmp.eq.s32.totalorder %v929_v26, 15  ;;  %s4384_s16 = scalar_lea.vmem %s4460_s6, %s2774_s13 }
  0x52   : > { %3077 = vmatmul.mubr.msk.bf16.gmra.mrb[8].mxu1 %vm1357_vm0, %v3936_v0  ;;  %3159 = vmatmul.mubr.msk.bf16.vlgmr.msra.gmra.mrb[0].mxu0 %vm1357_vm0, %v3942_v55  ;;  %v3470_v20 = vpop.eup %3469  ;;  %v580_v33 = vadd.f32 1.0, %v3468_v14  ;;  %v943_v9 = vand.u32 15, %v3981_v17  ;;  %v1097_v11 = vrot.slane %v3758_v8, 7  ;;  %vm4030_vm11 = vcmp.eq.s32.totalorder %v866_v38, 0 }
  0x53   : > { %3175 = vmatpush3.bf16.msra.mxu0 %v3810_v41  ;;  %3162 = vmatprep.mubr.msk.bf16.mxu0 %vm1357_vm0, %v3945_v50  ;;  %v3472_v24 = vpop.eup %3471  ;;  %v4000_v41 = vpack.c.bf16 %v3978_v16, %v3924_v45  ;;  %v4003_v34 = vmul.f32 %v3470_v20, %v3730_v43  ;;  %v1228_v57 = vrot.slane %v3978_v16, 1  ;;  %v4013_v43 = vpack.c.bf16 %v1305_v22, %v1246_v21 }
  0x54   : > { %3192 = vmatprep.subr.bf16.mxu0 %v3957_v54  ;;  %v3474_v58 = vpop.eup %3473  ;;  %3479 = vrcp.f32 %v580_v33  ;;  %v584_v40 = vadd.f32 1.0, %v3472_v24  ;;  %v1098_v14 = vrot.slane %v3774_v27, 7  ;;  %v1132_v20 = vsel %vm1114_vm7, %v1095_v59, %v1096_v39 }
  0x55   : > { %3080 = vmatprep.mubr.msk.bf16.mxu1 %vm1357_vm0, %v4000_v41  ;;  %v1229_v60 = vrot.slane %v4003_v34, 1  ;;  %v581_v62 = vadd.f32 1.0, %v3474_v58  ;;  %v1215_v21 = vrot.slane %v3771_v18, 1  ;;  %v1216_v22 = vrot.slane %v3780_v28, 1 }
  0x56   : > { %3481 = vrcp.f32 %v584_v40  ;;  %v3476_v5 = vpop.eup %3475  ;;  %v1242_v8 = vsel %vm1235_vm1, %v1227_v2, %v1228_v57  ;;  %v663_v33 = vadd.s32 136, %v3727_v35  ;;  %v1099_v28 = vrot.slane %v3789_v32, 7 }
  0x57   : > { %v1241_v7 = vsel %vm1235_vm1, %v1228_v57, %v1229_v60  ;;  %3483 = vrcp.f32 %v581_v62  ;;  %v3478_v10 = vpop.eup %3477  ;;  %v582_v26 = vadd.f32 1.0, %v3476_v5  ;;  %v652_v23 = vadd.s32 48, %v3727_v35 }
  0x58   : > { %v583_v17 = vadd.f32 1.0, %v3478_v10  ;;  %v1309_v27 = vsel %vm4020_vm10, 0.0, %v1241_v7  ;;  %v647_v24 = vadd.s32 8, %v3727_v35  ;;  %v1094_v12 = vrot.slane %v3771_v18, 7 }
  0x59   : > { %3485 = vrcp.f32 %v582_v26  ;;  %v1131_v58 = vsel %vm1114_vm7, %v1096_v39, %v1097_v11  ;;  %v1177_v2 = vsel %vm3971_vm9, 0.0, %v1132_v20  ;;  %v1130_v57 = vsel %vm1114_vm7, %v1097_v11, %v1098_v14 }
  0x5a   : > { %3163 = vmatmul.mubr.msk.bf16.gmra.mrb[4].mxu0 %vm1357_vm0, %v4013_v43  ;;  %3487 = vrcp.f32 %v583_v17  ;;  %v4060_v40 = vpack.c.bf16 %v1309_v27, %v1242_v8  ;;  %v845_v38 = vand.u32 15, %v647_v24  ;;  %v1253_v62 = vsel %vm1235_vm1, %v1216_v22, %v1217_v44 }
  0x5b   : > { %3166 = vmatprep.mubr.msk.bf16.mxu0 %vm1357_vm0, %v4016_v63  ;;  %v1254_v5 = vsel %vm1235_vm1, %v1215_v21, %v1216_v22  ;;  %vm4070_vm12 = vcmp.eq.s32.totalorder %v732_v13, 1  ;;  %vm4074_vm13 = vcmp.eq.s32.totalorder %v838_v51, 0  ;;  %vm4078_vm14 = vcmp.eq.s32.totalorder %v943_v9, 15 }
  0x5c   : > { %v957_v61 = vand.u32 15, %v663_v33  ;;  %v1129_v13 = vsel %vm1114_vm7, %v1098_v14, %v1099_v28  ;;  %v1179_v10 = vsel %vm4030_vm11, 0.0, %v1130_v57  ;;  %vm1196_vm15 = vcmp.eq.s32.totalorder %v845_v38, 15 }
  0x5d   : > { %v4091_v11 = vpack.c.bf16 %v1131_v58, %v1177_v2  ;;  %v1133_v9 = vsel %vm1114_vm7, %v1094_v12, %v1095_v59  ;;  %v880_v26 = vand.u32 15, %v652_v23  ;;  %v1297_v20 = vsel %vm1196_vm15, 0.0, %v1253_v62 }
  0x5e   : > { %v3480_v39 = vpop.eup %3479  ;;  %v654_v14 = vadd.s32 64, %v3727_v35  ;;  %v4107_v59 = vpack.c.bf16 %v1129_v13, %v1179_v10  ;;  %v4109_v27 = vpack.c.bf16 %v1297_v20, %v1254_v5  ;;  %v665_v33 = vadd.s32 152, %v3727_v35 }
  0x5f   : > { %v4083_v44 = vmul.f32 %v3480_v39, %v3813_v42  ;;  %vm4118_vm2 = vcmp.eq.s32.totalorder %v957_v61, 15  ;;  %v1101_v24 = vrot.slane %v3795_v37, 7  ;;  %vm4126_vm3 = vcmp.eq.s32.totalorder %v880_v26, 0 }
  0x60   : > { %v3482_v51 = vpop.eup %3481  ;;  %v1102_v62 = vrot.slane %v3840_v53, 7  ;;  %v894_v37 = vand.u32 15, %v654_v14  ;;  %v1103_v61 = vrot.slane %v3843_v56, 7  ;;  %v662_v7 = vadd.s32 128, %v3727_v35 }
  0x61   : > { %v3484_v22 = vpop.eup %3483  ;;  %v4097_v42 = vpack.c.bf16 %v4083_v44, %v4003_v34  ;;  %v644_v17 = vmul.f32 %v3482_v51, %v3826_v48  ;;  %v1230_v25 = vrot.slane %v4083_v44, 1  ;;  %v971_v51 = vand.u32 15, %v665_v33 }
  0x62   : > { %3167 = vmatmul.mubr.msk.bf16.gmra.mrb[8].mxu0 %vm1357_vm0, %v4060_v40  ;;  %v4105_v8 = vmul.f32 %v3484_v22, %v3834_v52  ;;  %v1100_v52 = vrot.slane %v3792_v36, 7  ;;  %vm4164_vm4 = vcmp.eq.s32.totalorder %v894_v37, 0  ;;  %v950_v14 = vand.u32 15, %v662_v7 }
  0x63   : > { %3081 = vmatmul.mubr.msk.bf16.gmra.mrb[12].mxu1 %vm1357_vm0, %v4097_v42  ;;  %v4116_v48 = vsel %vm4070_vm12, 0.0, %v644_v17  ;;  %v3486_v58 = vpop.eup %3485  ;;  %v1240_v39 = vsel %vm1235_vm1, %v1229_v60, %v1230_v25  ;;  %vm4183_vm5 = vcmp.eq.s32.totalorder %v971_v51, 15 }
  0x64   : > { %v1113_v2 = vrot.slane %v4116_v48, 7  ;;  %v1231_v57 = vrot.slane %v4105_v8, 1  ;;  %v3488_v5 = vpop.eup %3487  ;;  %v4136_v36 = vmul.f32 %v3486_v58, %v3894_v29  ;;  %v1234_v56 = vrot.slane %v4116_v48, 1 }
  0x65   : > { %v643_v10 = vmul.f32 %v3488_v5, %v3927_v47  ;;  %v656_v47 = vadd.s32 80, %v3727_v35  ;;  %v1128_v3 = vsel %vm1114_vm7, %v1099_v28, %v1100_v52  ;;  %v658_v28 = vadd.s32 96, %v3727_v35 }
  0x66   : > { %v1134_v13 = vsel %vm1114_vm7, %v1113_v2, %v1094_v12  ;;  %v1239_v53 = vsel %vm1235_vm1, %v1230_v25, %v1231_v57  ;;  %v1232_v26 = vrot.slane %v4136_v36, 1  ;;  %v1127_v58 = vsel %vm1114_vm7, %v1100_v52, %v1101_v24 }
  0x67   : > { %v1175_v60 = vsel %vm4074_vm13, 0.0, %v1134_v13  ;;  %v1311_v29 = vsel %vm4078_vm14, 0.0, %v1239_v53  ;;  %v4156_v12 = vsel %vm4070_vm12, 0.0, %v643_v10  ;;  %v1181_v37 = vsel %vm4126_vm3, 0.0, %v1128_v3  ;;  %v3408_v3 = vld [vmem:[%s4455_s1 + $0x40] sm:$0xff]  }
  0x68   : > { %v1316_v20 = vpack.c.bf16 %v1133_v9, %v1175_v60  ;;  %v4152_v22 = vpack.c.bf16 %v1311_v29, %v1240_v39  ;;  %v1233_v17 = vrot.slane %v4156_v12, 1  ;;  %v1126_v9 = vsel %vm1114_vm7, %v1101_v24, %v1102_v62 }
  0x69   : > { %v1238_v32 = vsel %vm1235_vm1, %v1231_v57, %v1232_v26  ;;  %v1335_v25 = vpack.c.bf16 %v4116_v48, %v4156_v12  ;;  %v1104_v57 = vrot.slane %v3899_v4, 7  ;;  %v1125_v13 = vsel %vm1114_vm7, %v1102_v62, %v1103_v61 }
  0x6a   : > { %3086 = vmatprep.mubr.msk.bf16.mxu1 %vm1357_vm0, %v1316_v20  ;;  %3170 = vmatprep.mubr.msk.bf16.mxu0 %vm1357_vm0, %v4152_v22  ;;  %v1237_v33 = vsel %vm1235_vm1, %v1232_v26, %v1233_v17  ;;  %v1236_v5 = vsel %vm1235_vm1, %v1233_v17, %v1234_v56  ;;  %v1255_v4 = vsel %vm1235_vm1, %v1234_v56, %v1215_v21  ;;  %v908_v24 = vand.u32 15, %v656_v47  ;;  %v2979_v26 = vld [vmem:[%s4371_s12 + $0x10] sm:$0xff]  }
  0x6b   : > { %3087 = vmatmul.mubr.msk.bf16.vlgmr.msra.gmra.mrb[0].mxu1 %vm1357_vm0, %v4091_v11  ;;  %v1313_v39 = vsel %vm4118_vm2, 0.0, %v1237_v33  ;;  %v1315_v23 = vsel %vm4183_vm5, 0.0, %v1255_v4  ;;  %v922_v38 = vand.u32 15, %v658_v28  ;;  %v1106_v53 = vrot.slane %v3924_v45, 7 }
  0x6c   : > { %3103 = vmatpush3.bf16.msra.mxu1 %v3831_v49  ;;  %3090 = vmatprep.mubr.msk.bf16.mxu1 %vm1357_vm0, %v4107_v59  ;;  %v4209_v52 = vpack.c.bf16 %v1313_v39, %v1238_v32  ;;  %v1183_v49 = vsel %vm4164_vm4, 0.0, %v1126_v9  ;;  %v4217_v62 = vpack.c.bf16 %v1315_v23, %v1236_v5  ;;  %v4221_v18 = vpack.c.bf16 %v1127_v58, %v1181_v37 }
  0x6d   : > { %3120 = vmatprep.subr.bf16.mxu1 %v4173_v15  ;;  %v4225_v21 = vpack.c.bf16 %v1125_v13, %v1183_v49  ;;  %v1105_v10 = vrot.slane %v3902_v31, 7  ;;  %vm4228_vm1 = vcmp.eq.s32.totalorder %v908_v24, 0  ;;  %v1124_v45 = vsel %vm1114_vm7, %v1103_v61, %v1104_v57 }
  0x6e   : > { %3171 = vmatmul.mubr.msk.bf16.gmra.mrb[12].mxu0 %vm1357_vm0, %v4209_v52  ;;  %v1107_v60 = vrot.slane %v3978_v16, 7  ;;  %v660_v29 = vadd.s32 112, %v3727_v35  ;;  %vm4236_vm6 = vcmp.eq.s32.totalorder %v922_v38, 0  ;;  %v1185_v16 = vsel %vm4228_vm1, 0.0, %v1124_v45 }
  0x6f   : > { %3176 = vmatprep.mubr.msk.bf16.mxu0 %vm1357_vm0, %v4107_v59  ;;  %v1122_v56 = vsel %vm1114_vm7, %v1105_v10, %v1106_v53  ;;  %v1123_v31 = vsel %vm1114_vm7, %v1104_v57, %v1105_v10  ;;  %v1108_v17 = vrot.slane %v4003_v34, 7  ;;  %v1109_v28 = vrot.slane %v4083_v44, 7 }
  0x70   : > { %v1121_v61 = vsel %vm1114_vm7, %v1106_v53, %v1107_v60  ;;  %v1187_v20 = vsel %vm4236_vm6, 0.0, %v1122_v56  ;;  %v936_v47 = vand.u32 15, %v660_v29  ;;  %v1321_v9 = vpack.c.bf16 %v1123_v31, %v1185_v16 }
  0x71   : > { %v1322_v32 = vpack.c.bf16 %v1121_v61, %v1187_v20  ;;  %v1120_v34 = vsel %vm1114_vm7, %v1107_v60, %v1108_v17  ;;  %v1110_v33 = vrot.slane %v4105_v8, 7  ;;  %v1111_v57 = vrot.slane %v4136_v36, 7  ;;  %v2980_v60 = vld [vmem:[%s4371_s12 + $0x18] sm:$0xff]  }
  0x72   : > { %vm1088_vm8 = vcmp.eq.s32.totalorder %v936_v47, 0  ;;  %v664_v44 = vadd.s32 144, %v3727_v35  ;;  %vm1090_vm9 = vcmp.eq.s32.totalorder %v950_v14, 0  ;;  %v1112_v49 = vrot.slane %v4156_v12, 7  ;;  %v3489_v35 = vld [vmem:[%s4455_s1 + $0x20] sm:$0xff]  }
  0x73   : > { %3091 = vmatmul.mubr.msk.bf16.gmra.mrb[4].mxu1 %vm1357_vm0, %v4221_v18  ;;  %v1189_v58 = vsel %vm1088_vm8, 0.0, %v1120_v34  ;;  %v1118_v5 = vsel %vm1114_vm7, %v1109_v28, %v1110_v33  ;;  %v1117_v37 = vsel %vm1114_vm7, %v1110_v33, %v1111_v57  ;;  %v2951_v61 = vunpack.c.l.bf16 %v2980_v60 }
  0x74   : > { %3094 = vmatprep.mubr.msk.bf16.mxu1 %vm1357_vm0, %v4225_v21  ;;  %v1191_v13 = vsel %vm1090_vm9, 0.0, %v1118_v5  ;;  %v964_v4 = vand.u32 15, %v664_v44  ;;  %v1116_v23 = vsel %vm1114_vm7, %v1111_v57, %v1112_v49  ;;  %v1115_v38 = vsel %vm1114_vm7, %v1112_v49, %v1113_v2 }
  0x75   : > { %v1324_v24 = vpack.c.bf16 %v1117_v37, %v1191_v13  ;;  %v2948_v33 = vunpack.c.h.bf16 %v2979_v26 }
  0x76   : > { %3177 = vmatmul.mubr.msk.bf16.vlgmr.msra.gmra.mrb[0].mxu0 %vm1357_vm0, %v4221_v18  ;;  %vm1092_vm10 = vcmp.eq.s32.totalorder %v964_v4, 0  ;;  %v2982_v4 = vld [vmem:[%s4371_s12 + $0x28] sm:$0xff]  }
  0x77   : > { %3193 = vmatpush3.bf16.msra.mxu0 %v3957_v54  ;;  %3180 = vmatprep.mubr.msk.bf16.mxu0 %vm1357_vm0, %v4225_v21  ;;  %v1119_v54 = vsel %vm1114_vm7, %v1108_v17, %v1109_v28  ;;  %v1193_v53 = vsel %vm1092_vm10, 0.0, %v1116_v23  ;;  %v2947_v17 = vunpack.c.l.bf16 %v2979_v26 }
  0x78   : > { %3210 = vmatprep.subr.bf16.mxu0 %v3408_v3  ;;  %v1323_v39 = vpack.c.bf16 %v1119_v54, %v1189_v58  ;;  %v1325_v10 = vpack.c.bf16 %v1115_v38, %v1193_v53 }
  0x7b   : > { %3095 = vmatmul.mubr.msk.bf16.gmra.mrb[8].mxu1 %vm1357_vm0, %v1321_v9 }
  0x7c   : > { %3098 = vmatprep.mubr.msk.bf16.mxu1 %vm1357_vm0, %v1322_v32 }
  0x7e   : > { %3181 = vmatmul.mubr.msk.bf16.gmra.mrb[4].mxu0 %vm1357_vm0, %v1321_v9 }
  0x7f   : > { %3184 = vmatprep.mubr.msk.bf16.mxu0 %vm1357_vm0, %v1322_v32 }
  0x83   : > { %3099 = vmatmul.mubr.msk.bf16.gmra.mrb[12].mxu1 %vm1357_vm0, %v1323_v39 }
  0x84   : > { %3104 = vmatprep.mubr.msk.bf16.mxu1 %vm1357_vm0, %v4109_v27 }
  0x86   : > { %3185 = vmatmul.mubr.msk.bf16.gmra.mrb[8].mxu0 %vm1357_vm0, %v1323_v39 }
  0x87   : > { %3188 = vmatprep.mubr.msk.bf16.mxu0 %vm1357_vm0, %v1324_v24 }
  0x8b   : > { %3105 = vmatmul.mubr.msk.bf16.vlgmr.msra.gmra.mrb[0].mxu1 %vm1357_vm0, %v3884_v19 }
  0x8c   : > { %3121 = vmatpush3.bf16.msra.mxu1 %v4173_v15  ;;  %3108 = vmatprep.mubr.msk.bf16.mxu1 %vm1357_vm0, %v3942_v55 }
  0x8d   : > { %3228 = vmatprep.subr.bf16.mxu1 %v3603_v1  ;;  %v1334_v1 = vpack.c.bf16 %v4136_v36, %v4105_v8 }
  0x8e   : > { %3189 = vmatmul.mubr.msk.bf16.gmra.mrb[12].mxu0 %vm1357_vm0, %v1325_v10  ;;  %v2959_v10 = vunpack.c.l.bf16 %v2982_v4 }
  0x8f   : > { %3194 = vmatprep.mubr.msk.bf16.mxu0 %vm1357_vm0, %v3805_v30 }
  0x93   : > { %3109 = vmatmul.mubr.msk.bf16.gmra.mrb[4].mxu1 %vm1357_vm0, %v3945_v50 }
  0x94   : > { %3112 = vmatprep.mubr.msk.bf16.mxu1 %vm1357_vm0, %v4013_v43 }
  0x96   : > { %3195 = vmatmul.mubr.msk.bf16.vlgmr.msra.gmra.mrb[0].mxu0 %vm1357_vm0, %v3819_v46 }
  0x97   : > { %3211 = vmatpush3.bf16.msra.mxu0 %v3408_v3  ;;  %3198 = vmatprep.mubr.msk.bf16.mxu0 %vm1357_vm0, %v3879_v6 }
  0x9b   : > { %3113 = vmatmul.mubr.msk.bf16.gmra.mrb[8].mxu1 %vm1357_vm0, %v4016_v63 }
  0x9c   : > { %3116 = vmatprep.mubr.msk.bf16.mxu1 %vm1357_vm0, %v4060_v40 }
  0x9e   : > { %3199 = vmatmul.mubr.msk.bf16.gmra.mrb[4].mxu0 %vm1357_vm0, %v3936_v0 }
  0x9f   : > { %3202 = vmatprep.mubr.msk.bf16.mxu0 %vm1357_vm0, %v4000_v41 }
  0xa3   : > { %3117 = vmatmul.mubr.msk.bf16.gmra.mrb[12].mxu1 %vm1357_vm0, %v4152_v22 }
  0xa4   : > { %3122 = vmatprep.mubr.msk.bf16.mxu1 %vm1357_vm0, %v4091_v11  ;;  %v4378_v11 = vld [vmem:[%s4456_s2] ss:$0 sm:$0xff] }
  0xa6   : > { %3203 = vmatmul.mubr.msk.bf16.gmra.mrb[8].mxu0 %vm1357_vm0, %v4097_v42 }
  0xa7   : > { %3206 = vmatprep.mubr.msk.bf16.mxu0 %vm1357_vm0, %v1334_v1 }
  0xab   : > { %3123 = vmatmul.mubr.msk.bf16.vlgmr.msra.gmra.mrb[0].mxu1 %vm1357_vm0, %v4107_v59 }
  0xac   : > { %3229 = vmatpush3.bf16.msra.mxu1 %v3489_v35  ;;  %3126 = vmatprep.mubr.msk.bf16.mxu1 %vm1357_vm0, %v4221_v18 }
  0xae   : > { %3207 = vmatmul.mubr.msk.bf16.gmra.mrb[12].mxu0 %vm1357_vm0, %v1335_v25 }
  0xaf   : > { %3212 = vmatprep.mubr.msk.bf16.mxu0 %vm1357_vm0, %v3942_v55 }
  0xb3   : > { %3127 = vmatmul.mubr.msk.bf16.gmra.mrb[4].mxu1 %vm1357_vm0, %v4225_v21 }
  0xb4   : > { %3130 = vmatprep.mubr.msk.bf16.mxu1 %vm1357_vm0, %v1321_v9 }
  0xb6   : > { %3213 = vmatmul.mubr.msk.bf16.vlgmr.msra.gmra.mrb[0].mxu0 %vm1357_vm0, %v3945_v50 }
  0xb7   : > { %3216 = vmatprep.mubr.msk.bf16.mxu0 %vm1357_vm0, %v4013_v43 }
  0xbb   : > { %3131 = vmatmul.mubr.msk.bf16.gmra.mrb[8].mxu1 %vm1357_vm0, %v1322_v32  ;;  %v2952_v32 = vunpack.c.h.bf16 %v2980_v60 }
  0xbc   : > { %3134 = vmatprep.mubr.msk.bf16.mxu1 %vm1357_vm0, %v1323_v39 }
  0xbe   : > { %3217 = vmatmul.mubr.msk.bf16.gmra.mrb[4].mxu0 %vm1357_vm0, %v4016_v63  ;;  %v2938_v63 = vld [vmem:[%s4371_s12] sm:$0xff]  }
  0xbf   : > { %3220 = vmatprep.mubr.msk.bf16.mxu0 %vm1357_vm0, %v4060_v40  ;;  %v2939_v48 = vunpack.c.l.bf16 %v2938_v63 }
  0xc3   : > { %3135 = vmatmul.mubr.msk.bf16.gmra.mrb[12].mxu1 %vm1357_vm0, %v1324_v24  ;;  %v2981_v24 = vld [vmem:[%s4371_s12 + $0x20] sm:$0xff]  }
  0xc4   : > { %3148 = vmatprep.mubr.msk.bf16.mxu1 %vm1357_vm0, %v3936_v0 }
  0xc6   : > { %3221 = vmatmul.mubr.msk.bf16.gmra.mrb[8].mxu0 %vm1357_vm0, %v4152_v22 }
  0xc7   : > { %3224 = vmatprep.mubr.msk.bf16.mxu0 %vm1357_vm0, %v4209_v52 }
  0xcb   : > { %3149 = vmatmul.mubr.msk.bf16.vlgmr.msra.gmra.mrb[8].mxu1 %vm1357_vm0, %v4000_v41  ;;  %v2978_v41 = vld [vmem:[%s4371_s12 + $0x8] sm:$0xff]  }
  0xcc   : > { %3152 = vmatprep.mubr.msk.bf16.mxu1 %vm1357_vm0, %v4097_v42  ;;  %v2943_v8 = vunpack.c.l.bf16 %v2978_v41  ;;  %v2944_v12 = vunpack.c.h.bf16 %v2978_v41 }
  0xce   : > { %3225 = vmatmul.mubr.msk.bf16.gmra.mrb[12].mxu0 %vm1357_vm0, %v4217_v62  ;;  %v2940_v62 = vunpack.c.h.bf16 %v2938_v63 }
  0xd3   : > { %3153 = vmatmul.mubr.msk.bf16.gmra.mrb[12].mxu1 %vm1357_vm0, %v1334_v1 }
 0x17e   : > { %v3124_v30 = vpop.f32.mrb[0].mxu1 }
 0x17f   : > { %v1798_v46 = vpop.f32.mrb[1].mxu1 }
 0x180   : > { %v3125_v6 = vpop.f32.mrb[2].mxu1 }
 0x181   : > { %v1801_v19 = vpop.f32.mrb[3].mxu1 }
 0x186   : > { %v3128_v0 = vpop.f32.mrb[4].mxu1 }
 0x187   : > { %v1814_v55 = vpop.f32.mrb[5].mxu1 }
 0x188   : > { %v3129_v50 = vpop.f32.mrb[6].mxu1 }
 0x189   : > { %v1817_v43 = vpop.f32.mrb[7].mxu1  ;;  %v3214_v40 = vpop.f32.mrb[0].mxu0 }
 0x18a   : > { %v3230_v42 = vadd.f32 %v3214_v40, %v3124_v30  ;;  %v2423_v59 = vpop.f32.mrb[1].mxu0  ;;  %v2955_v30 = vunpack.c.l.bf16 %v2981_v24 }
 0x18b   : > { %v3231_v27 = vadd.f32 %v2423_v59, %v1798_v46  ;;  %v3215_v2 = vpop.f32.mrb[2].mxu0 }
 0x18c   : > { %v2511_v36 = vadd.f32 %v3230_v42, %v4378_v11  ;;  %v3232_v22 = vadd.f32 %v3215_v2, %v3125_v6  ;;  %v2426_v15 = vpop.f32.mrb[3].mxu0 }
 0x18d   : > { %v2509_v25 = vadd.f32 %v3231_v27, %v4378_v11  ;;  %v3233_v52 = vadd.f32 %v2426_v15, %v1801_v19 }
 0x18e   : > { %v2559_v18 = vadd.f32 %v2943_v8, %v2511_v36  ;;  %v2512_v21 = vadd.f32 %v3232_v22, %v4378_v11  ;;  %v2983_v22 = vld [vmem:[%s4371_s12 + $0x30] sm:$0xff]  }
 0x18f   : > { %v2557_v51 = vadd.f32 %v2939_v48, %v2509_v25  ;;  %v2510_v45 = vadd.f32 %v3233_v52, %v4378_v11  ;;  %v2984_v48 = vld [vmem:[%s4371_s12 + $0x38] sm:$0xff]  }
 0x190   : > { %2575 = vst.msk [vmem:[%s4384_s16 + $0x10] sm:$0xff] %vm1357_vm0, %v2559_v18  ;;  %v2560_v29 = vadd.f32 %v2944_v12, %v2512_v21  ;;  %v2968_v26 = vunpack.c.h.bf16 %v2984_v48 }
 0x191   : > { %2573 = vst.msk [vmem:[%s4384_s16] sm:$0xff] %vm1357_vm0, %v2557_v51  ;;  %v2558_v56 = vadd.f32 %v2940_v62, %v2510_v45  ;;  %v3218_v31 = vpop.f32.mrb[4].mxu0  ;;  %v2967_v62 = vunpack.c.l.bf16 %v2984_v48  ;;  %v2963_v51 = vunpack.c.l.bf16 %v2983_v22 }
 0x192   : > { %2576 = vst.msk [vmem:[%s4384_s16 + $0x18] sm:$0xff] %vm1357_vm0, %v2560_v29  ;;  %v3234_v16 = vadd.f32 %v3218_v31, %v3128_v0  ;;  %v2439_v20 = vpop.f32.mrb[5].mxu0  ;;  %v2960_v0 = vunpack.c.h.bf16 %v2982_v4 }
 0x193   : > { %2574 = vst.msk [vmem:[%s4384_s16 + $0x8] sm:$0xff] %vm1357_vm0, %v2558_v56  ;;  %v3235_v47 = vadd.f32 %v2439_v20, %v1814_v55  ;;  %v3219_v3 = vpop.f32.mrb[6].mxu0 }
 0x194   : > { %v2515_v7 = vadd.f32 %v3234_v16, %v4378_v11  ;;  %v3236_v9 = vadd.f32 %v3219_v3, %v3129_v50  ;;  %v2442_v28 = vpop.f32.mrb[7].mxu0 }
 0x195   : > { %v2513_v34 = vadd.f32 %v3235_v47, %v4378_v11  ;;  %v3237_v14 = vadd.f32 %v2442_v28, %v1817_v43  ;;  %v2956_v43 = vunpack.c.h.bf16 %v2981_v24 }
 0x196   : > { %v2563_v54 = vadd.f32 %v2951_v61, %v2515_v7  ;;  %v2516_v58 = vadd.f32 %v3236_v9, %v4378_v11  ;;  %v2964_v61 = vunpack.c.h.bf16 %v2983_v22 }
 0x197   : > { %v2561_v57 = vadd.f32 %v2947_v17, %v2513_v34  ;;  %v2514_v44 = vadd.f32 %v3237_v14, %v4378_v11 }
 0x198   : > { %2579 = vst.msk [vmem:[%s4384_s16 + $0x30] sm:$0xff] %vm1357_vm0, %v2563_v54  ;;  %v2564_v5 = vadd.f32 %v2952_v32, %v2516_v58 }
 0x199   : > { %2577 = vst.msk [vmem:[%s4384_s16 + $0x20] sm:$0xff] %vm1357_vm0, %v2561_v57  ;;  %v2562_v39 = vadd.f32 %v2948_v33, %v2514_v44  ;;  %v3222_v37 = vpop.f32.mrb[8].mxu0 }
 0x19a   : > { %2580 = vst.msk [vmem:[%s4384_s16 + $0x38] sm:$0xff] %vm1357_vm0, %v2564_v5  ;;  %v2455_v13 = vpop.f32.mrb[9].mxu0 }
 0x19b   : > { %2578 = vst.msk [vmem:[%s4384_s16 + $0x28] sm:$0xff] %vm1357_vm0, %v2562_v39  ;;  %v3223_v49 = vpop.f32.mrb[10].mxu0 }
 0x19c   : > { %v2458_v23 = vpop.f32.mrb[11].mxu0 }
 0x19e   : > { %v3150_v38 = vpop.f32.mrb[8].mxu1 }
 0x19f   : > { %v3238_v53 = vadd.f32 %v3222_v37, %v3150_v38  ;;  %v1955_v1 = vpop.f32.mrb[9].mxu1 }
 0x1a0   : > { %v3239_v35 = vadd.f32 %v2455_v13, %v1955_v1  ;;  %v3151_v46 = vpop.f32.mrb[10].mxu1 }
 0x1a1   : > { %v2519_v6 = vadd.f32 %v3238_v53, %v4378_v11  ;;  %v3240_v19 = vadd.f32 %v3223_v49, %v3151_v46  ;;  %v1958_v55 = vpop.f32.mrb[11].mxu1  ;;  %v3226_v63 = vpop.f32.mrb[12].mxu0 }
 0x1a2   : > { %v2517_v50 = vadd.f32 %v3239_v35, %v4378_v11  ;;  %v3241_v41 = vadd.f32 %v2458_v23, %v1958_v55  ;;  %v2471_v8 = vpop.f32.mrb[13].mxu0 }
 0x1a3   : > { %v2567_v40 = vadd.f32 %v2959_v10, %v2519_v6  ;;  %v2520_v42 = vadd.f32 %v3240_v19, %v4378_v11  ;;  %v3227_v2 = vpop.f32.mrb[14].mxu0 }
 0x1a4   : > { %v2565_v59 = vadd.f32 %v2955_v30, %v2517_v50  ;;  %v2518_v27 = vadd.f32 %v3241_v41, %v4378_v11  ;;  %v2474_v12 = vpop.f32.mrb[15].mxu0 }
 0x1a5   : > { %2583 = vst.msk [vmem:[%s4384_s16 + $0x50] sm:$0xff] %vm1357_vm0, %v2567_v40  ;;  %v2568_v36 = vadd.f32 %v2960_v0, %v2520_v42 }
 0x1a6   : > { %2581 = vst.msk [vmem:[%s4384_s16 + $0x40] sm:$0xff] %vm1357_vm0, %v2565_v59  ;;  %v2566_v15 = vadd.f32 %v2956_v43, %v2518_v27  ;;  %v3154_v25 = vpop.f32.mrb[12].mxu1 }
 0x1a7   : > { %2584 = vst.msk [vmem:[%s4384_s16 + $0x58] sm:$0xff] %vm1357_vm0, %v2568_v36  ;;  %v3242_v52 = vadd.f32 %v3226_v63, %v3154_v25  ;;  %v1971_v18 = vpop.f32.mrb[13].mxu1 }
 0x1a8   : > { %2582 = vst.msk [vmem:[%s4384_s16 + $0x48] sm:$0xff] %vm1357_vm0, %v2566_v15  ;;  %v3243_v21 = vadd.f32 %v2471_v8, %v1971_v18  ;;  %v3155_v45 = vpop.f32.mrb[14].mxu1 }
 0x1a9   : > { %v2523_v60 = vadd.f32 %v3242_v52, %v4378_v11  ;;  %v3244_v29 = vadd.f32 %v3227_v2, %v3155_v45  ;;  %v1974_v56 = vpop.f32.mrb[15].mxu1 }
 0x1aa   : > { %v2521_v31 = vadd.f32 %v3243_v21, %v4378_v11  ;;  %v3245_v16 = vadd.f32 %v2474_v12, %v1974_v56 }
 0x1ab   : > { %v2571_v20 = vadd.f32 %v2967_v62, %v2523_v60  ;;  %v2524_v47 = vadd.f32 %v3244_v29, %v4378_v11 }
 0x1ac   : > { %v2569_v17 = vadd.f32 %v2963_v51, %v2521_v31  ;;  %v2522_v3 = vadd.f32 %v3245_v16, %v4378_v11 }
 0x1ad   : > { %2587 = vst.msk [vmem:[%s4384_s16 + $0x70] sm:$0xff] %vm1357_vm0, %v2571_v20  ;;  %v2572_v7 = vadd.f32 %v2968_v26, %v2524_v47 }
 0x1ae   : > { %2585 = vst.msk [vmem:[%s4384_s16 + $0x60] sm:$0xff] %vm1357_vm0, %v2569_v17  ;;  %v2570_v9 = vadd.f32 %v2964_v61, %v2522_v3 }
 0x1af   : > { %2588 = vst.msk [vmem:[%s4384_s16 + $0x78] sm:$0xff] %vm1357_vm0, %v2572_v7 }
 0x1b0   : > { %2586 = vst.msk [vmem:[%s4384_s16 + $0x68] sm:$0xff] %vm1357_vm0, %v2570_v9 }
 0x1b1 PF: > { %s16_s25 = sadd.s32 1, %s3528_s25   ;;  %s4497_s21 = smov %s3520_s23 }
 0x1b2   : > { %p13_p10 = scmp.ge.s32.totalorder %s16_s25, 6   ;;  %s4498_s22 = smov %s3524_s24 }
 0x1b3   : > { %s4499_s23 = smov %s4502_s26  ;;  %s4500_s24 = smov %s4506_s27 }
 0x1b4   :  { %15 = sbr.rel (!%p13_p10) target bundleno = 3 (0x3), region = 97 }

</bundles_post_ra>
